<compile_context>
chip_gen: v7x
topology: tpu7x:2x2x1
jax: 0.10.0
libtpu: 0.0.40
codegen_flags: <defaults>
</compile_context>

<pallas_src>
import functools

import jax
import jax.numpy as jnp
import numpy as np
from jax import lax
from jax.experimental import pallas as pl
from jax.experimental.pallas import tpu as pltpu


# --------------------------------------------------------------------------
# Hardware-aware sizing helpers
# --------------------------------------------------------------------------

def _vmem_limit_bytes():
    """Per-generation scoped-VMEM budget (v5e/v6e: 128 MiB physical, v7x: 64)."""
    kind = ""
    try:
        kind = jax.devices()[0].device_kind.lower()
    except Exception:
        pass
    if ("v5" in kind) or ("v6" in kind):
        return 96 * 1024 * 1024
    # v7x (64 MiB per TensorCore) or unknown generation: stay conservative.
    return 48 * 1024 * 1024


def _pick_hw_tile(hwp, c, vmem_bytes):
    """Largest 128-multiple tile of the padded HW axis that divides it while
    keeping ~6 live (C, hw_t) f32 buffers (double-buffered in + out + headroom)
    inside the VMEM budget.  Big tiles amortize the ~0.35us/step overhead."""
    per_lane = max(c, 1) * 4
    max_lanes = max(128, (vmem_bytes // (6 * per_lane) // 128) * 128)
    best, t = 128, 128
    while t <= min(hwp, max_lanes):
        if hwp % t == 0:
            best = t
        t += 128
    return best


# --------------------------------------------------------------------------
# Kernel 1: channel attention (global avg/max pool + shared MLP + sigmoid)
# --------------------------------------------------------------------------

def _channel_attn_kernel(x_ref, w1_ref, w2_ref, ca_ref, sum_sc, max_sc,
                         *, inv_hw, hw_t, hw_real, padded):
    """grid = (B, HW_padded/hw_t); t is the accumulation axis.

    Per-tile work is pure elementwise VPU add/max into (C, 128) accumulators;
    the single cross-lane reduce + tiny MLP + sigmoid run once per batch in the
    t == last finalize, writing ca directly in (C, 1) column form.
    """
    t = pl.program_id(1)

    @pl.when(t == 0)
    def _():
        sum_sc[...] = jnp.zeros_like(sum_sc)
        max_sc[...] = jnp.full_like(max_sc, -jnp.inf)

    x = x_ref[0]                                         # (C, hw_t)
    c = x.shape[0]
    s_acc = sum_sc[...]
    m_acc = max_sc[...]
    if padded:
        lane = lax.broadcasted_iota(jnp.int32, (c, 128), 1)
    for i in range(hw_t // 128):
        chunk = x[:, i * 128:(i + 1) * 128]              # (C, 128)
        s_acc = s_acc + chunk                            # zero padding: no-op for the sum
        if padded:
            pos = t * hw_t + i * 128 + lane
            chunk = jnp.where(pos < hw_real, chunk, -jnp.inf)   # mask pad lanes for max
        m_acc = jnp.maximum(m_acc, chunk)
    sum_sc[...] = s_acc
    max_sc[...] = m_acc

    @pl.when(t == pl.num_programs(1) - 1)
    def _():
        avg = jnp.sum(sum_sc[...], axis=1, keepdims=True) * inv_hw   # (C, 1)
        mx = jnp.max(max_sc[...], axis=1, keepdims=True)             # (C, 1)
        pooled = jnp.concatenate([avg, mx], axis=1)                  # (C, 2)
        # Shared SE-style MLP in native PyTorch layout: w1 (C/r, C), w2 (C, C/r).
        h = jnp.maximum(
            jnp.dot(w1_ref[...], pooled, preferred_element_type=jnp.float32,
                    precision=lax.Precision.HIGHEST), 0.0)           # (C/r, 2)
        z = jnp.dot(w2_ref[...], h, preferred_element_type=jnp.float32,
                    precision=lax.Precision.HIGHEST)                 # (C, 2)
        s = z[:, 0:1] + z[:, 1:2]                                    # avg_out + max_out
        ca_ref[0] = 1.0 / (1.0 + jnp.exp(-s))                        # (C, 1)


# --------------------------------------------------------------------------
# Shared lane-dense KxK conv + sigmoid on the flattened (2, HW_padded) map
# --------------------------------------------------------------------------

def _conv_sigmoid_flat(sp2, rows, cols, w_ref, *, H, W, K):
    """Zero-padded KxK cross-correlation (2 -> 1 channels) + sigmoid using
    static lane shifts + boundary masks (no (H, W) relayout, no padded scratch)."""
    pad = (K - 1) // 2
    hwp = sp2.shape[1]
    acc = jnp.zeros((1, hwp), jnp.float32)
    for ky in range(K):
        dy = ky - pad
        if abs(dy) >= H:
            continue
        rmask = (rows >= -dy) & (rows < H - dy)
        for kx in range(K):
            dx = kx - pad
            if abs(dx) >= W:
                continue
            d = dy * W + dx
            # sh[p] = sp2[p + d] (wrapped values are masked out below).
            sh = sp2 if d == 0 else jnp.concatenate([sp2[:, d:], sp2[:, :d]], axis=1)
            m = rmask & (cols >= -dx) & (cols < W - dx)
            contrib = (w_ref[ky * K + kx] * sh[0:1, :] +
                       w_ref[K * K + ky * K + kx] * sh[1:2, :])
            acc = acc + jnp.where(m, contrib, 0.0)
    return 1.0 / (1.0 + jnp.exp(-acc))                   # (1, hwp)


# --------------------------------------------------------------------------
# Kernel 2 (fused): x*ca -> channel mean/max -> KxK conv -> sigmoid -> gate
# --------------------------------------------------------------------------

def _spatial_gate_fused_kernel(rows_ref, cols_ref, x_ref, ca_ref, w_ref, o_ref,
                               *, H, W, K, inv_c):
    """grid = (B,).  The whole per-batch (C, HW_padded) block stays in VMEM, so
    x is read exactly once and x*ca / the pooled map never touch HBM."""
    x_ca = x_ref[0] * ca_ref[0]                          # (C, HWp)
    sp_avg = jnp.sum(x_ca, axis=0, keepdims=True) * inv_c
    sp_max = jnp.max(x_ca, axis=0, keepdims=True)
    sp2 = jnp.concatenate([sp_avg, sp_max], axis=0)      # (2, HWp)
    sa = _conv_sigmoid_flat(sp2, rows_ref[...], cols_ref[...], w_ref,
                            H=H, W=W, K=K)               # (1, HWp)
    o_ref[0] = x_ca * sa


# --------------------------------------------------------------------------
# Fallback kernels (image too large for a per-batch VMEM block)
# --------------------------------------------------------------------------

def _spatial_sa_kernel(rows_ref, cols_ref, x_ref, ca_ref, w_ref, sa_ref, sp_sc,
                       *, H, W, K, inv_c, hw_t):
    """Assemble the (2, HW_padded) pooled map tile by tile in VMEM scratch,
    run conv+sigmoid once at t == last and emit sa directly (no sp HBM trip)."""
    t = pl.program_id(1)
    x_ca = x_ref[0] * ca_ref[0]                          # (C, hw_t)
    sp_avg = jnp.sum(x_ca, axis=0, keepdims=True) * inv_c
    sp_max = jnp.max(x_ca, axis=0, keepdims=True)
    off = pl.multiple_of(t * hw_t, 128)
    sp_sc[:, pl.ds(off, hw_t)] = jnp.concatenate([sp_avg, sp_max], axis=0)

    @pl.when(t == pl.num_programs(1) - 1)
    def _():
        sa_ref[0] = _conv_sigmoid_flat(sp_sc[...], rows_ref[...], cols_ref[...],
                                       w_ref, H=H, W=W, K=K)


def _gate_kernel(x_ref, ca_ref, sa_ref, o_ref):
    """out = x * ca * sa (x*ca recomputed instead of round-tripping via HBM)."""
    o_ref[...] = x_ref[...] * ca_ref[...] * sa_ref[...]


# --------------------------------------------------------------------------
# pallas_call wrappers
# --------------------------------------------------------------------------

def channel_attention(x3, w1, w2, hw_t, hw_real, vmem_limit):
    B, C, HWp = x3.shape
    Cr = w1.shape[0]
    kern = functools.partial(_channel_attn_kernel, inv_hw=1.0 / hw_real,
                             hw_t=hw_t, hw_real=hw_real, padded=(HWp != hw_real))
    return pl.pallas_call(
        kern,
        out_shape=jax.ShapeDtypeStruct((B, C, 1), jnp.float32),
        grid=(B, HWp // hw_t),
        in_specs=[pl.BlockSpec((1, C, hw_t), lambda b, t: (b, 0, t)),
                  pl.BlockSpec((Cr, C), lambda b, t: (0, 0)),
                  pl.BlockSpec((C, Cr), lambda b, t: (0, 0))],
        out_specs=pl.BlockSpec((1, C, 1), lambda b, t: (b, 0, 0)),
        scratch_shapes=[pltpu.VMEM((C, 128), jnp.float32),
                        pltpu.VMEM((C, 128), jnp.float32)],
        # TODO(synk): on v7x use pltpu.CORE_PARALLEL on the batch axis so both
        # TensorCores are active; plain "parallel" kept for v5e/v6e compatibility.
        compiler_params=pltpu.CompilerParams(
            dimension_semantics=("parallel", "arbitrary"),
            vmem_limit_bytes=vmem_limit),
    )(x3, w1, w2)


def spatial_gate_fused(x3, ca, w_flat, rows, cols, H, W, K, vmem_limit):
    B, C, HWp = x3.shape
    kern = functools.partial(_spatial_gate_fused_kernel, H=H, W=W, K=K, inv_c=1.0 / C)
    return pl.pallas_call(
        kern,
        out_shape=jax.ShapeDtypeStruct((B, C, HWp), jnp.float32),
        grid=(B,),
        in_specs=[pl.BlockSpec((1, HWp), lambda b: (0, 0)),
                  pl.BlockSpec((1, HWp), lambda b: (0, 0)),
                  pl.BlockSpec((1, C, HWp), lambda b: (b, 0, 0)),
                  pl.BlockSpec((1, C, 1), lambda b: (b, 0, 0)),
                  pl.BlockSpec(memory_space=pltpu.MemorySpace.SMEM)],
        out_specs=pl.BlockSpec((1, C, HWp), lambda b: (b, 0, 0)),
        compiler_params=pltpu.CompilerParams(
            dimension_semantics=("parallel",),
            vmem_limit_bytes=vmem_limit),
    )(rows, cols, x3, ca, w_flat)


def spatial_attention_split(x3, ca, w_flat, rows, cols, H, W, K, hw_t, vmem_limit):
    B, C, HWp = x3.shape
    kern = functools.partial(_spatial_sa_kernel, H=H, W=W, K=K, inv_c=1.0 / C,
                             hw_t=hw_t)
    return pl.pallas_call(
        kern,
        out_shape=jax.ShapeDtypeStruct((B, 1, HWp), jnp.float32),
        grid=(B, HWp // hw_t),
        in_specs=[pl.BlockSpec((1, HWp), lambda b, t: (0, 0)),
                  pl.BlockSpec((1, HWp), lambda b, t: (0, 0)),
                  pl.BlockSpec((1, C, hw_t), lambda b, t: (b, 0, t)),
                  pl.BlockSpec((1, C, 1), lambda b, t: (b, 0, 0)),
                  pl.BlockSpec(memory_space=pltpu.MemorySpace.SMEM)],
        out_specs=pl.BlockSpec((1, 1, HWp), lambda b, t: (b, 0, 0)),
        scratch_shapes=[pltpu.VMEM((2, HWp), jnp.float32)],
        compiler_params=pltpu.CompilerParams(
            dimension_semantics=("parallel", "arbitrary"),
            vmem_limit_bytes=vmem_limit),
    )(rows, cols, x3, ca, w_flat)


def gate(x3, ca, sa, hw_t, vmem_limit):
    B, C, HWp = x3.shape
    return pl.pallas_call(
        _gate_kernel,
        out_shape=jax.ShapeDtypeStruct((B, C, HWp), jnp.float32),
        grid=(B, HWp // hw_t),
        in_specs=[pl.BlockSpec((1, C, hw_t), lambda b, t: (b, 0, t)),
                  pl.BlockSpec((1, C, 1), lambda b, t: (b, 0, 0)),
                  pl.BlockSpec((1, 1, hw_t), lambda b, t: (b, 0, t))],
        out_specs=pl.BlockSpec((1, C, hw_t), lambda b, t: (b, 0, t)),
        compiler_params=pltpu.CompilerParams(
            dimension_semantics=("parallel", "arbitrary"),
            vmem_limit_bytes=vmem_limit),
    )(x3, ca, sa)


# --------------------------------------------------------------------------
# JAX glue
# --------------------------------------------------------------------------

def init_params(key, channels, reduction, kernel_size=7):
    k1, k2, k3 = jax.random.split(key, 3)
    cr = max(channels // reduction, 1)
    return dict(
        mlp_w1=jax.random.normal(k1, (cr, channels), jnp.float32) / np.sqrt(channels),
        mlp_w2=jax.random.normal(k2, (channels, cr), jnp.float32) / np.sqrt(cr),
        sa_w=jax.random.normal(k3, (1, 2, kernel_size, kernel_size), jnp.float32)
        / np.sqrt(2.0 * kernel_size * kernel_size),
    )


def cbam_forward(x_nchw, params, *, hw_tile=None, force_split=False):
    B, C, H, W = x_nchw.shape
    HW = H * W
    HWp = ((HW + 127) // 128) * 128          # lane-dense HW; cropped at the end
    vmem_limit = _vmem_limit_bytes()

    x3 = x_nchw.reshape(B, C, HW).astype(jnp.float32)
    if HWp != HW:
        x3 = jnp.pad(x3, ((0, 0), (0, 0), (0, HWp - HW)))

    hw_t = _pick_hw_tile(HWp, C, vmem_limit) if hw_tile is None else hw_tile
    assert HWp % hw_t == 0 and hw_t % 128 == 0, \
        "hw_tile must be a 128-multiple dividing the padded H*W"

    w1 = jnp.asarray(params["mlp_w1"], jnp.float32)      # (C//r, C)  PyTorch layout
    w2 = jnp.asarray(params["mlp_w2"], jnp.float32)      # (C, C//r)
    K = int(params["sa_w"].shape[-1])
    w_flat = jnp.asarray(params["sa_w"], jnp.float32).reshape(-1)   # (2*K*K,) -> SMEM

    # Row/col index of every flattened spatial position (conv boundary masks).
    pos = jnp.arange(HWp, dtype=jnp.int32)
    rows = (pos // W).reshape(1, HWp)
    cols = (pos % W).reshape(1, HWp)

    # Pass 1: channel attention (pool + MLP + sigmoid fused) -- one read of x.
    ca = channel_attention(x3, w1, w2, hw_t, HW, vmem_limit)        # (B, C, 1)

    # Pass 2: spatial attention + gating.
    fused_bytes = 6 * C * HWp * 4            # double-buffered in/out + temporaries
    if (not force_split) and fused_bytes <= (vmem_limit * 3) // 4:
        out = spatial_gate_fused(x3, ca, w_flat, rows, cols, H, W, K, vmem_limit)
    else:
        # TODO(synk): a row-haloed fused kernel would keep the 2-read structure
        # for very large images; this split fallback costs one extra read of x.
        sa = spatial_attention_split(x3, ca, w_flat, rows, cols, H, W, K, hw_t,
                                     vmem_limit)                    # (B, 1, HWp)
        out = gate(x3, ca, sa, hw_t, vmem_limit)                    # (B, C, HWp)

    return out[:, :, :HW].reshape(B, C, H, W)


# --------------------------------------------------------------------------
# Pure-JAX reference
# --------------------------------------------------------------------------

def ref_forward(x_nchw, params):
    x = x_nchw.astype(jnp.float32)
    avg = jnp.mean(x, axis=(2, 3))
    mx = jnp.max(x, axis=(2, 3))

    def mlp(v):
        h = jax.nn.relu(jnp.dot(v, params["mlp_w1"].T,
                                precision=lax.Precision.HIGHEST))
        return jnp.dot(h, params["mlp_w2"].T, precision=lax.Precision.HIGHEST)

    ca = jax.nn.sigmoid(mlp(avg) + mlp(mx))
    x_ca = x * ca[:, :, None, None]
    sp = jnp.concatenate([jnp.mean(x_ca, axis=1, keepdims=True),
                          jnp.max(x_ca, axis=1, keepdims=True)], axis=1)
    K = params["sa_w"].shape[-1]
    pad = (K - 1) // 2
    sa = lax.conv_general_dilated(
        sp, params["sa_w"], (1, 1), [(pad, pad), (pad, pad)],
        dimension_numbers=("NCHW", "OIHW", "NCHW"),
        precision=lax.Precision.HIGHEST)
    return x_ca * jax.nn.sigmoid(sa)


# --------------------------------------------------------------------------
# main
# --------------------------------------------------------------------------

if __name__ == "__main__":
    key = jax.random.PRNGKey(0)
    kx1, kp1, kx2, kp2 = jax.random.split(key, 4)

    fwd = jax.jit(cbam_forward, static_argnames=("hw_tile", "force_split"))

    # Case 1: lane-aligned image -> fully fused spatial+gate path (2 reads + 1 write).
    B, C, H, W = 2, 32, 16, 16
    x = jax.random.normal(kx1, (B, C, H, W), dtype=jnp.float32)
    params = init_params(kp1, C, reduction=4, kernel_size=7)
    out = jax.block_until_ready(fwd(x, params))
    np.testing.assert_allclose(np.asarray(out), np.asarray(ref_forward(x, params)),
                               rtol=2e-3, atol=2e-3)

    # Case 2: non-128-multiple H*W -> exercises HW padding, masked max pooling,
    # multi-tile accumulation, and the VMEM-fallback split path.
    B2, C2, H2, W2 = 2, 16, 18, 18
    x2 = jax.random.normal(kx2, (B2, C2, H2, W2), dtype=jnp.float32)
    params2 = init_params(kp2, C2, reduction=4, kernel_size=7)
    out2 = jax.block_until_ready(fwd(x2, params2, hw_tile=128, force_split=True))
    np.testing.assert_allclose(np.asarray(out2), np.asarray(ref_forward(x2, params2)),
                               rtol=2e-3, atol=2e-3)

    print("KERNEL_OK")
</pallas_src>

<mosaic_0001>
module attributes {stable_mosaic.version = 11 : i64} {
  func.func @_channel_attn_kernel(%arg0: i32, %arg1: i32, %arg2: memref<1x32x256xf32, #tpu.memory_space<vmem>>, %arg3: memref<8x32xf32, #tpu.memory_space<vmem>>, %arg4: memref<32x8xf32, #tpu.memory_space<vmem>>, %arg5: memref<1x32x1xf32, #tpu.memory_space<vmem>>, %arg6: memref<32x128xf32, #tpu.memory_space<vmem>>, %arg7: memref<32x128xf32, #tpu.memory_space<vmem>>) attributes {dimension_semantics = [#tpu.dimension_semantics<parallel>, #tpu.dimension_semantics<arbitrary>], iteration_bounds = array<i64: 2, 1>, scalar_prefetch = 0 : i64, scratch_operands = 2 : i64, tpu.core_type = #tpu.core_type<tc>, window_params = [{transform_indices = @transform_0, window_bounds = array<i64: 1, 32, 256>}, {pipeline_mode = #tpu.pipeline_mode<synchronous>, transform_indices = @transform_1, window_bounds = array<i64: 8, 32>}, {pipeline_mode = #tpu.pipeline_mode<synchronous>, transform_indices = @transform_2, window_bounds = array<i64: 32, 8>}, {transform_indices = @transform_3, window_bounds = array<i64: 1, 32, 1>}]} {
    %c0_i32 = arith.constant 0 : i32
    %0 = arith.cmpi eq, %arg1, %c0_i32 : i32
    %1 = arith.extui %0 : i1 to i32
    %c0_i32_0 = arith.constant 0 : i32
    %2 = arith.cmpi ne, %1, %c0_i32_0 : i32
    scf.if %2 {
      %cst = arith.constant 0.000000e+00 : f32
      %18 = vector.broadcast %cst : f32 to vector<32x128xf32>
      %c0_13 = arith.constant 0 : index
      %c0_14 = arith.constant 0 : index
      %19 = vector.load %arg6[%c0_13, %c0_14] : memref<32x128xf32, #tpu.memory_space<vmem>>, vector<32x128xf32>
      tpu.vector_store %arg6[%c0_13, %c0_14], %18 {strides = array<i32>} : memref<32x128xf32, #tpu.memory_space<vmem>>, vector<32x128xf32>,
      %cst_15 = arith.constant 0xFF800000 : f32
      %20 = vector.broadcast %cst_15 : f32 to vector<32x128xf32>
      %c0_16 = arith.constant 0 : index
      %c0_17 = arith.constant 0 : index
      %21 = vector.load %arg7[%c0_16, %c0_17] : memref<32x128xf32, #tpu.memory_space<vmem>>, vector<32x128xf32>
      tpu.vector_store %arg7[%c0_16, %c0_17], %20 {strides = array<i32>} : memref<32x128xf32, #tpu.memory_space<vmem>>, vector<32x128xf32>,
    } else {
    }
    %c0 = arith.constant 0 : index
    %c0_1 = arith.constant 0 : index
    %c0_2 = arith.constant 0 : index
    %3 = vector.load %arg2[%c0, %c0_1, %c0_2] : memref<1x32x256xf32, #tpu.memory_space<vmem>>, vector<1x32x256xf32>
    %4 = vector.shape_cast %3 : vector<1x32x256xf32> to vector<32x256xf32>
    %c0_3 = arith.constant 0 : index
    %c0_4 = arith.constant 0 : index
    %5 = vector.load %arg6[%c0_3, %c0_4] : memref<32x128xf32, #tpu.memory_space<vmem>>, vector<32x128xf32>
    %c0_5 = arith.constant 0 : index
    %c0_6 = arith.constant 0 : index
    %6 = vector.load %arg7[%c0_5, %c0_6] : memref<32x128xf32, #tpu.memory_space<vmem>>, vector<32x128xf32>
    %7 = vector.extract_strided_slice %4 {offsets = [0, 0], sizes = [32, 128], strides = [1, 1]} : vector<32x256xf32> to vector<32x128xf32>
    %8 = arith.addf %5, %7 : vector<32x128xf32>
    %9 = arith.maximumf %6, %7 : vector<32x128xf32>
    %10 = vector.extract_strided_slice %4 {offsets = [0, 128], sizes = [32, 128], strides = [1, 1]} : vector<32x256xf32> to vector<32x128xf32>
    %11 = arith.addf %8, %10 : vector<32x128xf32>
    %12 = arith.maximumf %9, %10 : vector<32x128xf32>
    %c0_7 = arith.constant 0 : index
    %c0_8 = arith.constant 0 : index
    %13 = vector.load %arg6[%c0_7, %c0_8] : memref<32x128xf32, #tpu.memory_space<vmem>>, vector<32x128xf32>
    tpu.vector_store %arg6[%c0_7, %c0_8], %11 {strides = array<i32>} : memref<32x128xf32, #tpu.memory_space<vmem>>, vector<32x128xf32>,
    %c0_9 = arith.constant 0 : index
    %c0_10 = arith.constant 0 : index
    %14 = vector.load %arg7[%c0_9, %c0_10] : memref<32x128xf32, #tpu.memory_space<vmem>>, vector<32x128xf32>
    tpu.vector_store %arg7[%c0_9, %c0_10], %12 {strides = array<i32>} : memref<32x128xf32, #tpu.memory_space<vmem>>, vector<32x128xf32>,
    %c0_i32_11 = arith.constant 0 : i32
    %15 = arith.cmpi eq, %arg1, %c0_i32_11 : i32
    %16 = arith.extui %15 : i1 to i32
    %c0_i32_12 = arith.constant 0 : i32
    %17 = arith.cmpi ne, %16, %c0_i32_12 : i32
    scf.if %17 {
      %c0_13 = arith.constant 0 : index
      %c0_14 = arith.constant 0 : index
      %18 = vector.load %arg6[%c0_13, %c0_14] : memref<32x128xf32, #tpu.memory_space<vmem>>, vector<32x128xf32>
      %cst = arith.constant dense<0.000000e+00> : vector<32xf32>
      %19 = vector.multi_reduction <add>, %18, %cst [1] : vector<32x128xf32> to vector<32xf32>
      %20 = vector.shape_cast %19 : vector<32xf32> to vector<32x1xf32>
      %cst_15 = arith.constant 3.906250e-03 : f32
      %21 = vector.broadcast %cst_15 : f32 to vector<32x1xf32>
      %22 = arith.mulf %20, %21 : vector<32x1xf32>
      %c0_16 = arith.constant 0 : index
      %c0_17 = arith.constant 0 : index
      %23 = vector.load %arg7[%c0_16, %c0_17] : memref<32x128xf32, #tpu.memory_space<vmem>>, vector<32x128xf32>
      %cst_18 = arith.constant dense<0xFF800000> : vector<32xf32>
      %24 = vector.multi_reduction <maximumf>, %23, %cst_18 [1] : vector<32x128xf32> to vector<32xf32>
      %25 = vector.shape_cast %24 : vector<32xf32> to vector<32x1xf32>
      %26 = tpu.concatenate %22, %25 in 1 : vector<32x1xf32>, vector<32x1xf32> -> vector<32x2xf32>
      %c0_19 = arith.constant 0 : index
      %c0_20 = arith.constant 0 : index
      %27 = vector.load %arg3[%c0_19, %c0_20] : memref<8x32xf32, #tpu.memory_space<vmem>>, vector<8x32xf32>
      %cst_21 = arith.constant dense<0.000000e+00> : vector<8x2xf32>
      %28 = tpu.matmul %27, %26, %cst_21 {dimension_numbers = #tpu.dot_dimension_numbers<[1], [0], [0], [1], [0, 0, 1, 1], [], []>, precision = #tpu.contract_precision<fp32>} : vector<8x32xf32>, vector<32x2xf32>, vector<8x2xf32> -> vector<8x2xf32>
      %cst_22 = arith.constant 0.000000e+00 : f32
      %29 = vector.broadcast %cst_22 : f32 to vector<8x2xf32>
      %30 = arith.maximumf %28, %29 : vector<8x2xf32>
      %c0_23 = arith.constant 0 : index
      %c0_24 = arith.constant 0 : index
      %31 = vector.load %arg4[%c0_23, %c0_24] : memref<32x8xf32, #tpu.memory_space<vmem>>, vector<32x8xf32>
      %cst_25 = arith.constant dense<0.000000e+00> : vector<32x2xf32>
      %32 = tpu.matmul %31, %30, %cst_25 {dimension_numbers = #tpu.dot_dimension_numbers<[1], [0], [0], [1], [0, 0, 1, 1], [], []>, precision = #tpu.contract_precision<fp32>} : vector<32x8xf32>, vector<8x2xf32>, vector<32x2xf32> -> vector<32x2xf32>
      %33 = vector.extract_strided_slice %32 {offsets = [0, 0], sizes = [32, 1], strides = [1, 1]} : vector<32x2xf32> to vector<32x1xf32>
      %34 = vector.extract_strided_slice %32 {offsets = [0, 1], sizes = [32, 1], strides = [1, 1]} : vector<32x2xf32> to vector<32x1xf32>
      %35 = arith.addf %33, %34 : vector<32x1xf32>
      %cst_26 = arith.constant 0.000000e+00 : f32
      %36 = vector.broadcast %cst_26 : f32 to vector<32x1xf32>
      %37 = arith.subf %36, %35 : vector<32x1xf32>
      %38 = math.exp %37 : vector<32x1xf32>
      %cst_27 = arith.constant 1.000000e+00 : f32
      %39 = vector.broadcast %cst_27 : f32 to vector<32x1xf32>
      %40 = arith.addf %39, %38 : vector<32x1xf32>
      %cst_28 = arith.constant 1.000000e+00 : f32
      %41 = vector.broadcast %cst_28 : f32 to vector<32x1xf32>
      %42 = arith.divf %41, %40 : vector<32x1xf32>
      %c0_29 = arith.constant 0 : index
      %c0_30 = arith.constant 0 : index
      %c0_31 = arith.constant 0 : index
      %43 = vector.load %arg5[%c0_29, %c0_30, %c0_31] : memref<1x32x1xf32, #tpu.memory_space<vmem>>, vector<1x32x1xf32>
      %44 = vector.shape_cast %43 : vector<1x32x1xf32> to vector<32x1xf32>
      %45 = vector.shape_cast %42 : vector<32x1xf32> to vector<1x32x1xf32>
      tpu.vector_store %arg5[%c0_29, %c0_30, %c0_31], %45 {strides = array<i32>} : memref<1x32x1xf32, #tpu.memory_space<vmem>>, vector<1x32x1xf32>,
    } else {
    }
    return
  }
  func.func @transform_0(%arg0: i32, %arg1: i32) -> (i32, i32, i32) {
    %c0_i32 = arith.constant 0 : i32
    %c0_i32_0 = arith.constant 0 : i32
    return %arg0, %c0_i32, %arg1 : i32, i32, i32
  }
  func.func @transform_1(%arg0: i32, %arg1: i32) -> (i32, i32) {
    %c0_i32 = arith.constant 0 : i32
    %c0_i32_0 = arith.constant 0 : i32
    %c0_i32_1 = arith.constant 0 : i32
    return %c0_i32, %c0_i32_0 : i32, i32
  }
  func.func @transform_2(%arg0: i32, %arg1: i32) -> (i32, i32) {
    %c0_i32 = arith.constant 0 : i32
    %c0_i32_0 = arith.constant 0 : i32
    %c0_i32_1 = arith.constant 0 : i32
    return %c0_i32, %c0_i32_0 : i32, i32
  }
  func.func @transform_3(%arg0: i32, %arg1: i32) -> (i32, i32, i32) {
    %c0_i32 = arith.constant 0 : i32
    %c0_i32_0 = arith.constant 0 : i32
    %c0_i32_1 = arith.constant 0 : i32
    return %arg0, %c0_i32, %c0_i32_0 : i32, i32, i32
  }
}

module attributes {stable_mosaic.version = 11 : i64} {
  func.func @_spatial_gate_fused_kernel(%arg0: i32, %arg1: memref<1x256xi32, #tpu.memory_space<vmem>>, %arg2: memref<1x256xi32, #tpu.memory_space<vmem>>, %arg3: memref<1x32x256xf32, #tpu.memory_space<vmem>>, %arg4: memref<1x32x1xf32, #tpu.memory_space<vmem>>, %arg5: memref<98xf32, #tpu.memory_space<smem>>, %arg6: memref<1x32x256xf32, #tpu.memory_space<vmem>>) attributes {dimension_semantics = [#tpu.dimension_semantics<parallel>], iteration_bounds = array<i64: 2>, scalar_prefetch = 0 : i64, scratch_operands = 0 : i64, tpu.core_type = #tpu.core_type<tc>, window_params = [{pipeline_mode = #tpu.pipeline_mode<synchronous>, transform_indices = @transform_0, window_bounds = array<i64: 1, 256>}, {pipeline_mode = #tpu.pipeline_mode<synchronous>, transform_indices = @transform_1, window_bounds = array<i64: 1, 256>}, {transform_indices = @transform_2, window_bounds = array<i64: 1, 32, 256>}, {transform_indices = @transform_3, window_bounds = array<i64: 1, 32, 1>}, {transform_indices = @transform_4, window_bounds = array<i64: 98>}, {transform_indices = @transform_5, window_bounds = array<i64: 1, 32, 256>}]} {
    %c0 = arith.constant 0 : index
    %c0_0 = arith.constant 0 : index
    %c0_1 = arith.constant 0 : index
    %0 = vector.load %arg3[%c0, %c0_0, %c0_1] : memref<1x32x256xf32, #tpu.memory_space<vmem>>, vector<1x32x256xf32>
    %1 = vector.shape_cast %0 : vector<1x32x256xf32> to vector<32x256xf32>
    %c0_2 = arith.constant 0 : index
    %c0_3 = arith.constant 0 : index
    %c0_4 = arith.constant 0 : index
    %2 = vector.load %arg4[%c0_2, %c0_3, %c0_4] : memref<1x32x1xf32, #tpu.memory_space<vmem>>, vector<1x32x1xf32>
    %3 = vector.shape_cast %2 : vector<1x32x1xf32> to vector<32x1xf32>
    %4 = vector.broadcast %3 : vector<32x1xf32> to vector<32x256xf32>
    %5 = arith.mulf %1, %4 : vector<32x256xf32>
    %cst = arith.constant dense<0.000000e+00> : vector<256xf32>
    %6 = vector.multi_reduction <add>, %5, %cst [0] : vector<32x256xf32> to vector<256xf32>
    %7 = vector.shape_cast %6 : vector<256xf32> to vector<1x256xf32>
    %cst_5 = arith.constant 3.125000e-02 : f32
    %8 = vector.broadcast %cst_5 : f32 to vector<1x256xf32>
    %9 = arith.mulf %7, %8 : vector<1x256xf32>
    %cst_6 = arith.constant dense<0xFF800000> : vector<256xf32>
    %10 = vector.multi_reduction <maximumf>, %5, %cst_6 [0] : vector<32x256xf32> to vector<256xf32>
    %11 = vector.shape_cast %10 : vector<256xf32> to vector<1x256xf32>
    %12 = tpu.concatenate %9, %11 in 0 : vector<1x256xf32>, vector<1x256xf32> -> vector<2x256xf32>
    %c0_7 = arith.constant 0 : index
    %c0_8 = arith.constant 0 : index
    %13 = vector.load %arg1[%c0_7, %c0_8] : memref<1x256xi32, #tpu.memory_space<vmem>>, vector<1x256xi32>
    %c0_9 = arith.constant 0 : index
    %c0_10 = arith.constant 0 : index
    %14 = vector.load %arg2[%c0_9, %c0_10] : memref<1x256xi32, #tpu.memory_space<vmem>>, vector<1x256xi32>
    %cst_11 = arith.constant 0.000000e+00 : f32
    %15 = vector.broadcast %cst_11 : f32 to vector<1x256xf32>
    %c3_i32 = arith.constant 3 : i32
    %16 = vector.broadcast %c3_i32 : i32 to vector<1x256xi32>
    %17 = arith.cmpi sge, %13, %16 : vector<1x256xi32>
    %c19_i32 = arith.constant 19 : i32
    %18 = vector.broadcast %c19_i32 : i32 to vector<1x256xi32>
    %19 = arith.cmpi slt, %13, %18 : vector<1x256xi32>
    %20 = arith.andi %17, %19 : vector<1x256xi1>
    %21 = vector.extract_strided_slice %12 {offsets = [0, 205], sizes = [2, 51], strides = [1, 1]} : vector<2x256xf32> to vector<2x51xf32>
    %22 = vector.extract_strided_slice %12 {offsets = [0, 0], sizes = [2, 205], strides = [1, 1]} : vector<2x256xf32> to vector<2x205xf32>
    %23 = tpu.concatenate %21, %22 in 1 : vector<2x51xf32>, vector<2x205xf32> -> vector<2x256xf32>
    %c3_i32_12 = arith.constant 3 : i32
    %24 = vector.broadcast %c3_i32_12 : i32 to vector<1x256xi32>
    %25 = arith.cmpi sge, %14, %24 : vector<1x256xi32>
    %26 = arith.andi %20, %25 : vector<1x256xi1>
    %c19_i32_13 = arith.constant 19 : i32
    %27 = vector.broadcast %c19_i32_13 : i32 to vector<1x256xi32>
    %28 = arith.cmpi slt, %14, %27 : vector<1x256xi32>
    %29 = arith.andi %26, %28 : vector<1x256xi1>
    %c0_14 = arith.constant 0 : index
    %30 = memref.load %arg5[%c0_14] : memref<98xf32, #tpu.memory_space<smem>>
    %31 = vector.extract_strided_slice %23 {offsets = [0, 0], sizes = [1, 256], strides = [1, 1]} : vector<2x256xf32> to vector<1x256xf32>
    %32 = vector.broadcast %30 : f32 to vector<1x256xf32>
    %33 = arith.mulf %32, %31 : vector<1x256xf32>
    %c49 = arith.constant 49 : index
    %34 = memref.load %arg5[%c49] : memref<98xf32, #tpu.memory_space<smem>>
    %35 = vector.extract_strided_slice %23 {offsets = [1, 0], sizes = [1, 256], strides = [1, 1]} : vector<2x256xf32> to vector<1x256xf32>
    %36 = vector.broadcast %34 : f32 to vector<1x256xf32>
    %37 = arith.mulf %36, %35 : vector<1x256xf32>
    %38 = arith.addf %33, %37 : vector<1x256xf32>
    %cst_15 = arith.constant 0.000000e+00 : f32
    %39 = vector.broadcast %cst_15 : f32 to vector<1x256xf32>
    %40 = arith.select %29, %38, %39 : vector<1x256xi1>, vector<1x256xf32>
    %41 = arith.addf %15, %40 : vector<1x256xf32>
    %42 = vector.extract_strided_slice %12 {offsets = [0, 206], sizes = [2, 50], strides = [1, 1]} : vector<2x256xf32> to vector<2x50xf32>
    %43 = vector.extract_strided_slice %12 {offsets = [0, 0], sizes = [2, 206], strides = [1, 1]} : vector<2x256xf32> to vector<2x206xf32>
    %44 = tpu.concatenate %42, %43 in 1 : vector<2x50xf32>, vector<2x206xf32> -> vector<2x256xf32>
    %c2_i32 = arith.constant 2 : i32
    %45 = vector.broadcast %c2_i32 : i32 to vector<1x256xi32>
    %46 = arith.cmpi sge, %14, %45 : vector<1x256xi32>
    %47 = arith.andi %20, %46 : vector<1x256xi1>
    %c18_i32 = arith.constant 18 : i32
    %48 = vector.broadcast %c18_i32 : i32 to vector<1x256xi32>
    %49 = arith.cmpi slt, %14, %48 : vector<1x256xi32>
    %50 = arith.andi %47, %49 : vector<1x256xi1>
    %c1 = arith.constant 1 : index
    %51 = memref.load %arg5[%c1] : memref<98xf32, #tpu.memory_space<smem>>
    %52 = vector.extract_strided_slice %44 {offsets = [0, 0], sizes = [1, 256], strides = [1, 1]} : vector<2x256xf32> to vector<1x256xf32>
    %53 = vector.broadcast %51 : f32 to vector<1x256xf32>
    %54 = arith.mulf %53, %52 : vector<1x256xf32>
    %c50 = arith.constant 50 : index
    %55 = memref.load %arg5[%c50] : memref<98xf32, #tpu.memory_space<smem>>
    %56 = vector.extract_strided_slice %44 {offsets = [1, 0], sizes = [1, 256], strides = [1, 1]} : vector<2x256xf32> to vector<1x256xf32>
    %57 = vector.broadcast %55 : f32 to vector<1x256xf32>
    %58 = arith.mulf %57, %56 : vector<1x256xf32>
    %59 = arith.addf %54, %58 : vector<1x256xf32>
    %cst_16 = arith.constant 0.000000e+00 : f32
    %60 = vector.broadcast %cst_16 : f32 to vector<1x256xf32>
    %61 = arith.select %50, %59, %60 : vector<1x256xi1>, vector<1x256xf32>
    %62 = arith.addf %41, %61 : vector<1x256xf32>
    %63 = vector.extract_strided_slice %12 {offsets = [0, 207], sizes = [2, 49], strides = [1, 1]} : vector<2x256xf32> to vector<2x49xf32>
    %64 = vector.extract_strided_slice %12 {offsets = [0, 0], sizes = [2, 207], strides = [1, 1]} : vector<2x256xf32> to vector<2x207xf32>
    %65 = tpu.concatenate %63, %64 in 1 : vector<2x49xf32>, vector<2x207xf32> -> vector<2x256xf32>
    %c1_i32 = arith.constant 1 : i32
    %66 = vector.broadcast %c1_i32 : i32 to vector<1x256xi32>
    %67 = arith.cmpi sge, %14, %66 : vector<1x256xi32>
    %68 = arith.andi %20, %67 : vector<1x256xi1>
    %c17_i32 = arith.constant 17 : i32
    %69 = vector.broadcast %c17_i32 : i32 to vector<1x256xi32>
    %70 = arith.cmpi slt, %14, %69 : vector<1x256xi32>
    %71 = arith.andi %68, %70 : vector<1x256xi1>
    %c2 = arith.constant 2 : index
    %72 = memref.load %arg5[%c2] : memref<98xf32, #tpu.memory_space<smem>>
    %73 = vector.extract_strided_slice %65 {offsets = [0, 0], sizes = [1, 256], strides = [1, 1]} : vector<2x256xf32> to vector<1x256xf32>
    %74 = vector.broadcast %72 : f32 to vector<1x256xf32>
    %75 = arith.mulf %74, %73 : vector<1x256xf32>
    %c51 = arith.constant 51 : index
    %76 = memref.load %arg5[%c51] : memref<98xf32, #tpu.memory_space<smem>>
    %77 = vector.extract_strided_slice %65 {offsets = [1, 0], sizes = [1, 256], strides = [1, 1]} : vector<2x256xf32> to vector<1x256xf32>
    %78 = vector.broadcast %76 : f32 to vector<1x256xf32>
    %79 = arith.mulf %78, %77 : vector<1x256xf32>
    %80 = arith.addf %75, %79 : vector<1x256xf32>
    %cst_17 = arith.constant 0.000000e+00 : f32
    %81 = vector.broadcast %cst_17 : f32 to vector<1x256xf32>
    %82 = arith.select %71, %80, %81 : vector<1x256xi1>, vector<1x256xf32>
    %83 = arith.addf %62, %82 : vector<1x256xf32>
    %84 = vector.extract_strided_slice %12 {offsets = [0, 208], sizes = [2, 48], strides = [1, 1]} : vector<2x256xf32> to vector<2x48xf32>
    %85 = vector.extract_strided_slice %12 {offsets = [0, 0], sizes = [2, 208], strides = [1, 1]} : vector<2x256xf32> to vector<2x208xf32>
    %86 = tpu.concatenate %84, %85 in 1 : vector<2x48xf32>, vector<2x208xf32> -> vector<2x256xf32>
    %c0_i32 = arith.constant 0 : i32
    %87 = vector.broadcast %c0_i32 : i32 to vector<1x256xi32>
    %88 = arith.cmpi sge, %14, %87 : vector<1x256xi32>
    %89 = arith.andi %20, %88 : vector<1x256xi1>
    %c16_i32 = arith.constant 16 : i32
    %90 = vector.broadcast %c16_i32 : i32 to vector<1x256xi32>
    %91 = arith.cmpi slt, %14, %90 : vector<1x256xi32>
    %92 = arith.andi %89, %91 : vector<1x256xi1>
    %c3 = arith.constant 3 : index
    %93 = memref.load %arg5[%c3] : memref<98xf32, #tpu.memory_space<smem>>
    %94 = vector.extract_strided_slice %86 {offsets = [0, 0], sizes = [1, 256], strides = [1, 1]} : vector<2x256xf32> to vector<1x256xf32>
    %95 = vector.broadcast %93 : f32 to vector<1x256xf32>
    %96 = arith.mulf %95, %94 : vector<1x256xf32>
    %c52 = arith.constant 52 : index
    %97 = memref.load %arg5[%c52] : memref<98xf32, #tpu.memory_space<smem>>
    %98 = vector.extract_strided_slice %86 {offsets = [1, 0], sizes = [1, 256], strides = [1, 1]} : vector<2x256xf32> to vector<1x256xf32>
    %99 = vector.broadcast %97 : f32 to vector<1x256xf32>
    %100 = arith.mulf %99, %98 : vector<1x256xf32>
    %101 = arith.addf %96, %100 : vector<1x256xf32>
    %cst_18 = arith.constant 0.000000e+00 : f32
    %102 = vector.broadcast %cst_18 : f32 to vector<1x256xf32>
    %103 = arith.select %92, %101, %102 : vector<1x256xi1>, vector<1x256xf32>
    %104 = arith.addf %83, %103 : vector<1x256xf32>
    %105 = vector.extract_strided_slice %12 {offsets = [0, 209], sizes = [2, 47], strides = [1, 1]} : vector<2x256xf32> to vector<2x47xf32>
    %106 = vector.extract_strided_slice %12 {offsets = [0, 0], sizes = [2, 209], strides = [1, 1]} : vector<2x256xf32> to vector<2x209xf32>
    %107 = tpu.concatenate %105, %106 in 1 : vector<2x47xf32>, vector<2x209xf32> -> vector<2x256xf32>
    %c-1_i32 = arith.constant -1 : i32
    %108 = vector.broadcast %c-1_i32 : i32 to vector<1x256xi32>
    %109 = arith.cmpi sge, %14, %108 : vector<1x256xi32>
    %110 = arith.andi %20, %109 : vector<1x256xi1>
    %c15_i32 = arith.constant 15 : i32
    %111 = vector.broadcast %c15_i32 : i32 to vector<1x256xi32>
    %112 = arith.cmpi slt, %14, %111 : vector<1x256xi32>
    %113 = arith.andi %110, %112 : vector<1x256xi1>
    %c4 = arith.constant 4 : index
    %114 = memref.load %arg5[%c4] : memref<98xf32, #tpu.memory_space<smem>>
    %115 = vector.extract_strided_slice %107 {offsets = [0, 0], sizes = [1, 256], strides = [1, 1]} : vector<2x256xf32> to vector<1x256xf32>
    %116 = vector.broadcast %114 : f32 to vector<1x256xf32>
    %117 = arith.mulf %116, %115 : vector<1x256xf32>
    %c53 = arith.constant 53 : index
    %118 = memref.load %arg5[%c53] : memref<98xf32, #tpu.memory_space<smem>>
    %119 = vector.extract_strided_slice %107 {offsets = [1, 0], sizes = [1, 256], strides = [1, 1]} : vector<2x256xf32> to vector<1x256xf32>
    %120 = vector.broadcast %118 : f32 to vector<1x256xf32>
    %121 = arith.mulf %120, %119 : vector<1x256xf32>
    %122 = arith.addf %117, %121 : vector<1x256xf32>
    %cst_19 = arith.constant 0.000000e+00 : f32
    %123 = vector.broadcast %cst_19 : f32 to vector<1x256xf32>
    %124 = arith.select %113, %122, %123 : vector<1x256xi1>, vector<1x256xf32>
    %125 = arith.addf %104, %124 : vector<1x256xf32>
    %126 = vector.extract_strided_slice %12 {offsets = [0, 210], sizes = [2, 46], strides = [1, 1]} : vector<2x256xf32> to vector<2x46xf32>
    %127 = vector.extract_strided_slice %12 {offsets = [0, 0], sizes = [2, 210], strides = [1, 1]} : vector<2x256xf32> to vector<2x210xf32>
    %128 = tpu.concatenate %126, %127 in 1 : vector<2x46xf32>, vector<2x210xf32> -> vector<2x256xf32>
    %c-2_i32 = arith.constant -2 : i32
    %129 = vector.broadcast %c-2_i32 : i32 to vector<1x256xi32>
    %130 = arith.cmpi sge, %14, %129 : vector<1x256xi32>
    %131 = arith.andi %20, %130 : vector<1x256xi1>
    %c14_i32 = arith.constant 14 : i32
    %132 = vector.broadcast %c14_i32 : i32 to vector<1x256xi32>
    %133 = arith.cmpi slt, %14, %132 : vector<1x256xi32>
    %134 = arith.andi %131, %133 : vector<1x256xi1>
    %c5 = arith.constant 5 : index
    %135 = memref.load %arg5[%c5] : memref<98xf32, #tpu.memory_space<smem>>
    %136 = vector.extract_strided_slice %128 {offsets = [0, 0], sizes = [1, 256], strides = [1, 1]} : vector<2x256xf32> to vector<1x256xf32>
    %137 = vector.broadcast %135 : f32 to vector<1x256xf32>
    %138 = arith.mulf %137, %136 : vector<1x256xf32>
    %c54 = arith.constant 54 : index
    %139 = memref.load %arg5[%c54] : memref<98xf32, #tpu.memory_space<smem>>
    %140 = vector.extract_strided_slice %128 {offsets = [1, 0], sizes = [1, 256], strides = [1, 1]} : vector<2x256xf32> to vector<1x256xf32>
    %141 = vector.broadcast %139 : f32 to vector<1x256xf32>
    %142 = arith.mulf %141, %140 : vector<1x256xf32>
    %143 = arith.addf %138, %142 : vector<1x256xf32>
    %cst_20 = arith.constant 0.000000e+00 : f32
    %144 = vector.broadcast %cst_20 : f32 to vector<1x256xf32>
    %145 = arith.select %134, %143, %144 : vector<1x256xi1>, vector<1x256xf32>
    %146 = arith.addf %125, %145 : vector<1x256xf32>
    %147 = vector.extract_strided_slice %12 {offsets = [0, 211], sizes = [2, 45], strides = [1, 1]} : vector<2x256xf32> to vector<2x45xf32>
    %148 = vector.extract_strided_slice %12 {offsets = [0, 0], sizes = [2, 211], strides = [1, 1]} : vector<2x256xf32> to vector<2x211xf32>
    %149 = tpu.concatenate %147, %148 in 1 : vector<2x45xf32>, vector<2x211xf32> -> vector<2x256xf32>
    %c-3_i32 = arith.constant -3 : i32
    %150 = vector.broadcast %c-3_i32 : i32 to vector<1x256xi32>
    %151 = arith.cmpi sge, %14, %150 : vector<1x256xi32>
    %152 = arith.andi %20, %151 : vector<1x256xi1>
    %c13_i32 = arith.constant 13 : i32
    %153 = vector.broadcast %c13_i32 : i32 to vector<1x256xi32>
    %154 = arith.cmpi slt, %14, %153 : vector<1x256xi32>
    %155 = arith.andi %152, %154 : vector<1x256xi1>
    %c6 = arith.constant 6 : index
    %156 = memref.load %arg5[%c6] : memref<98xf32, #tpu.memory_space<smem>>
    %157 = vector.extract_strided_slice %149 {offsets = [0, 0], sizes = [1, 256], strides = [1, 1]} : vector<2x256xf32> to vector<1x256xf32>
    %158 = vector.broadcast %156 : f32 to vector<1x256xf32>
    %159 = arith.mulf %158, %157 : vector<1x256xf32>
    %c55 = arith.constant 55 : index
    %160 = memref.load %arg5[%c55] : memref<98xf32, #tpu.memory_space<smem>>
    %161 = vector.extract_strided_slice %149 {offsets = [1, 0], sizes = [1, 256], strides = [1, 1]} : vector<2x256xf32> to vector<1x256xf32>
    %162 = vector.broadcast %160 : f32 to vector<1x256xf32>
    %163 = arith.mulf %162, %161 : vector<1x256xf32>
    %164 = arith.addf %159, %163 : vector<1x256xf32>
    %cst_21 = arith.constant 0.000000e+00 : f32
    %165 = vector.broadcast %cst_21 : f32 to vector<1x256xf32>
    %166 = arith.select %155, %164, %165 : vector<1x256xi1>, vector<1x256xf32>
    %167 = arith.addf %146, %166 : vector<1x256xf32>
    %c2_i32_22 = arith.constant 2 : i32
    %168 = vector.broadcast %c2_i32_22 : i32 to vector<1x256xi32>
    %169 = arith.cmpi sge, %13, %168 : vector<1x256xi32>
    %c18_i32_23 = arith.constant 18 : i32
    %170 = vector.broadcast %c18_i32_23 : i32 to vector<1x256xi32>
    %171 = arith.cmpi slt, %13, %170 : vector<1x256xi32>
    %172 = arith.andi %169, %171 : vector<1x256xi1>
    %173 = vector.extract_strided_slice %12 {offsets = [0, 221], sizes = [2, 35], strides = [1, 1]} : vector<2x256xf32> to vector<2x35xf32>
    %174 = vector.extract_strided_slice %12 {offsets = [0, 0], sizes = [2, 221], strides = [1, 1]} : vector<2x256xf32> to vector<2x221xf32>
    %175 = tpu.concatenate %173, %174 in 1 : vector<2x35xf32>, vector<2x221xf32> -> vector<2x256xf32>
    %c3_i32_24 = arith.constant 3 : i32
    %176 = vector.broadcast %c3_i32_24 : i32 to vector<1x256xi32>
    %177 = arith.cmpi sge, %14, %176 : vector<1x256xi32>
    %178 = arith.andi %172, %177 : vector<1x256xi1>
    %c19_i32_25 = arith.constant 19 : i32
    %179 = vector.broadcast %c19_i32_25 : i32 to vector<1x256xi32>
    %180 = arith.cmpi slt, %14, %179 : vector<1x256xi32>
    %181 = arith.andi %178, %180 : vector<1x256xi1>
    %c7 = arith.constant 7 : index
    %182 = memref.load %arg5[%c7] : memref<98xf32, #tpu.memory_space<smem>>
    %183 = vector.extract_strided_slice %175 {offsets = [0, 0], sizes = [1, 256], strides = [1, 1]} : vector<2x256xf32> to vector<1x256xf32>
    %184 = vector.broadcast %182 : f32 to vector<1x256xf32>
    %185 = arith.mulf %184, %183 : vector<1x256xf32>
    %c56 = arith.constant 56 : index
    %186 = memref.load %arg5[%c56] : memref<98xf32, #tpu.memory_space<smem>>
    %187 = vector.extract_strided_slice %175 {offsets = [1, 0], sizes = [1, 256], strides = [1, 1]} : vector<2x256xf32> to vector<1x256xf32>
    %188 = vector.broadcast %186 : f32 to vector<1x256xf32>
    %189 = arith.mulf %188, %187 : vector<1x256xf32>
    %190 = arith.addf %185, %189 : vector<1x256xf32>
    %cst_26 = arith.constant 0.000000e+00 : f32
    %191 = vector.broadcast %cst_26 : f32 to vector<1x256xf32>
    %192 = arith.select %181, %190, %191 : vector<1x256xi1>, vector<1x256xf32>
    %193 = arith.addf %167, %192 : vector<1x256xf32>
    %194 = vector.extract_strided_slice %12 {offsets = [0, 222], sizes = [2, 34], strides = [1, 1]} : vector<2x256xf32> to vector<2x34xf32>
    %195 = vector.extract_strided_slice %12 {offsets = [0, 0], sizes = [2, 222], strides = [1, 1]} : vector<2x256xf32> to vector<2x222xf32>
    %196 = tpu.concatenate %194, %195 in 1 : vector<2x34xf32>, vector<2x222xf32> -> vector<2x256xf32>
    %c2_i32_27 = arith.constant 2 : i32
    %197 = vector.broadcast %c2_i32_27 : i32 to vector<1x256xi32>
    %198 = arith.cmpi sge, %14, %197 : vector<1x256xi32>
    %199 = arith.andi %172, %198 : vector<1x256xi1>
    %c18_i32_28 = arith.constant 18 : i32
    %200 = vector.broadcast %c18_i32_28 : i32 to vector<1x256xi32>
    %201 = arith.cmpi slt, %14, %200 : vector<1x256xi32>
    %202 = arith.andi %199, %201 : vector<1x256xi1>
    %c8 = arith.constant 8 : index
    %203 = memref.load %arg5[%c8] : memref<98xf32, #tpu.memory_space<smem>>
    %204 = vector.extract_strided_slice %196 {offsets = [0, 0], sizes = [1, 256], strides = [1, 1]} : vector<2x256xf32> to vector<1x256xf32>
    %205 = vector.broadcast %203 : f32 to vector<1x256xf32>
    %206 = arith.mulf %205, %204 : vector<1x256xf32>
    %c57 = arith.constant 57 : index
    %207 = memref.load %arg5[%c57] : memref<98xf32, #tpu.memory_space<smem>>
    %208 = vector.extract_strided_slice %196 {offsets = [1, 0], sizes = [1, 256], strides = [1, 1]} : vector<2x256xf32> to vector<1x256xf32>
    %209 = vector.broadcast %207 : f32 to vector<1x256xf32>
    %210 = arith.mulf %209, %208 : vector<1x256xf32>
    %211 = arith.addf %206, %210 : vector<1x256xf32>
    %cst_29 = arith.constant 0.000000e+00 : f32
    %212 = vector.broadcast %cst_29 : f32 to vector<1x256xf32>
    %213 = arith.select %202, %211, %212 : vector<1x256xi1>, vector<1x256xf32>
    %214 = arith.addf %193, %213 : vector<1x256xf32>
    %215 = vector.extract_strided_slice %12 {offsets = [0, 223], sizes = [2, 33], strides = [1, 1]} : vector<2x256xf32> to vector<2x33xf32>
    %216 = vector.extract_strided_slice %12 {offsets = [0, 0], sizes = [2, 223], strides = [1, 1]} : vector<2x256xf32> to vector<2x223xf32>
    %217 = tpu.concatenate %215, %216 in 1 : vector<2x33xf32>, vector<2x223xf32> -> vector<2x256xf32>
    %c1_i32_30 = arith.constant 1 : i32
    %218 = vector.broadcast %c1_i32_30 : i32 to vector<1x256xi32>
    %219 = arith.cmpi sge, %14, %218 : vector<1x256xi32>
    %220 = arith.andi %172, %219 : vector<1x256xi1>
    %c17_i32_31 = arith.constant 17 : i32
    %221 = vector.broadcast %c17_i32_31 : i32 to vector<1x256xi32>
    %222 = arith.cmpi slt, %14, %221 : vector<1x256xi32>
    %223 = arith.andi %220, %222 : vector<1x256xi1>
    %c9 = arith.constant 9 : index
    %224 = memref.load %arg5[%c9] : memref<98xf32, #tpu.memory_space<smem>>
    %225 = vector.extract_strided_slice %217 {offsets = [0, 0], sizes = [1, 256], strides = [1, 1]} : vector<2x256xf32> to vector<1x256xf32>
    %226 = vector.broadcast %224 : f32 to vector<1x256xf32>
    %227 = arith.mulf %226, %225 : vector<1x256xf32>
    %c58 = arith.constant 58 : index
    %228 = memref.load %arg5[%c58] : memref<98xf32, #tpu.memory_space<smem>>
    %229 = vector.extract_strided_slice %217 {offsets = [1, 0], sizes = [1, 256], strides = [1, 1]} : vector<2x256xf32> to vector<1x256xf32>
    %230 = vector.broadcast %228 : f32 to vector<1x256xf32>
    %231 = arith.mulf %230, %229 : vector<1x256xf32>
    %232 = arith.addf %227, %231 : vector<1x256xf32>
    %cst_32 = arith.constant 0.000000e+00 : f32
    %233 = vector.broadcast %cst_32 : f32 to vector<1x256xf32>
    %234 = arith.select %223, %232, %233 : vector<1x256xi1>, vector<1x256xf32>
    %235 = arith.addf %214, %234 : vector<1x256xf32>
    %236 = vector.extract_strided_slice %12 {offsets = [0, 224], sizes = [2, 32], strides = [1, 1]} : vector<2x256xf32> to vector<2x32xf32>
    %237 = vector.extract_strided_slice %12 {offsets = [0, 0], sizes = [2, 224], strides = [1, 1]} : vector<2x256xf32> to vector<2x224xf32>
    %238 = tpu.concatenate %236, %237 in 1 : vector<2x32xf32>, vector<2x224xf32> -> vector<2x256xf32>
    %c0_i32_33 = arith.constant 0 : i32
    %239 = vector.broadcast %c0_i32_33 : i32 to vector<1x256xi32>
    %240 = arith.cmpi sge, %14, %239 : vector<1x256xi32>
    %241 = arith.andi %172, %240 : vector<1x256xi1>
    %c16_i32_34 = arith.constant 16 : i32
    %242 = vector.broadcast %c16_i32_34 : i32 to vector<1x256xi32>
    %243 = arith.cmpi slt, %14, %242 : vector<1x256xi32>
    %244 = arith.andi %241, %243 : vector<1x256xi1>
    %c10 = arith.constant 10 : index
    %245 = memref.load %arg5[%c10] : memref<98xf32, #tpu.memory_space<smem>>
    %246 = vector.extract_strided_slice %238 {offsets = [0, 0], sizes = [1, 256], strides = [1, 1]} : vector<2x256xf32> to vector<1x256xf32>
    %247 = vector.broadcast %245 : f32 to vector<1x256xf32>
    %248 = arith.mulf %247, %246 : vector<1x256xf32>
    %c59 = arith.constant 59 : index
    %249 = memref.load %arg5[%c59] : memref<98xf32, #tpu.memory_space<smem>>
    %250 = vector.extract_strided_slice %238 {offsets = [1, 0], sizes = [1, 256], strides = [1, 1]} : vector<2x256xf32> to vector<1x256xf32>
    %251 = vector.broadcast %249 : f32 to vector<1x256xf32>
    %252 = arith.mulf %251, %250 : vector<1x256xf32>
    %253 = arith.addf %248, %252 : vector<1x256xf32>
    %cst_35 = arith.constant 0.000000e+00 : f32
    %254 = vector.broadcast %cst_35 : f32 to vector<1x256xf32>
    %255 = arith.select %244, %253, %254 : vector<1x256xi1>, vector<1x256xf32>
    %256 = arith.addf %235, %255 : vector<1x256xf32>
    %257 = vector.extract_strided_slice %12 {offsets = [0, 225], sizes = [2, 31], strides = [1, 1]} : vector<2x256xf32> to vector<2x31xf32>
    %258 = vector.extract_strided_slice %12 {offsets = [0, 0], sizes = [2, 225], strides = [1, 1]} : vector<2x256xf32> to vector<2x225xf32>
    %259 = tpu.concatenate %257, %258 in 1 : vector<2x31xf32>, vector<2x225xf32> -> vector<2x256xf32>
    %c-1_i32_36 = arith.constant -1 : i32
    %260 = vector.broadcast %c-1_i32_36 : i32 to vector<1x256xi32>
    %261 = arith.cmpi sge, %14, %260 : vector<1x256xi32>
    %262 = arith.andi %172, %261 : vector<1x256xi1>
    %c15_i32_37 = arith.constant 15 : i32
    %263 = vector.broadcast %c15_i32_37 : i32 to vector<1x256xi32>
    %264 = arith.cmpi slt, %14, %263 : vector<1x256xi32>
    %265 = arith.andi %262, %264 : vector<1x256xi1>
    %c11 = arith.constant 11 : index
    %266 = memref.load %arg5[%c11] : memref<98xf32, #tpu.memory_space<smem>>
    %267 = vector.extract_strided_slice %259 {offsets = [0, 0], sizes = [1, 256], strides = [1, 1]} : vector<2x256xf32> to vector<1x256xf32>
    %268 = vector.broadcast %266 : f32 to vector<1x256xf32>
    %269 = arith.mulf %268, %267 : vector<1x256xf32>
    %c60 = arith.constant 60 : index
    %270 = memref.load %arg5[%c60] : memref<98xf32, #tpu.memory_space<smem>>
    %271 = vector.extract_strided_slice %259 {offsets = [1, 0], sizes = [1, 256], strides = [1, 1]} : vector<2x256xf32> to vector<1x256xf32>
    %272 = vector.broadcast %270 : f32 to vector<1x256xf32>
    %273 = arith.mulf %272, %271 : vector<1x256xf32>
    %274 = arith.addf %269, %273 : vector<1x256xf32>
    %cst_38 = arith.constant 0.000000e+00 : f32
    %275 = vector.broadcast %cst_38 : f32 to vector<1x256xf32>
    %276 = arith.select %265, %274, %275 : vector<1x256xi1>, vector<1x256xf32>
    %277 = arith.addf %256, %276 : vector<1x256xf32>
    %278 = vector.extract_strided_slice %12 {offsets = [0, 226], sizes = [2, 30], strides = [1, 1]} : vector<2x256xf32> to vector<2x30xf32>
    %279 = vector.extract_strided_slice %12 {offsets = [0, 0], sizes = [2, 226], strides = [1, 1]} : vector<2x256xf32> to vector<2x226xf32>
    %280 = tpu.concatenate %278, %279 in 1 : vector<2x30xf32>, vector<2x226xf32> -> vector<2x256xf32>
    %c-2_i32_39 = arith.constant -2 : i32
    %281 = vector.broadcast %c-2_i32_39 : i32 to vector<1x256xi32>
    %282 = arith.cmpi sge, %14, %281 : vector<1x256xi32>
    %283 = arith.andi %172, %282 : vector<1x256xi1>
    %c14_i32_40 = arith.constant 14 : i32
    %284 = vector.broadcast %c14_i32_40 : i32 to vector<1x256xi32>
    %285 = arith.cmpi slt, %14, %284 : vector<1x256xi32>
    %286 = arith.andi %283, %285 : vector<1x256xi1>
    %c12 = arith.constant 12 : index
    %287 = memref.load %arg5[%c12] : memref<98xf32, #tpu.memory_space<smem>>
    %288 = vector.extract_strided_slice %280 {offsets = [0, 0], sizes = [1, 256], strides = [1, 1]} : vector<2x256xf32> to vector<1x256xf32>
    %289 = vector.broadcast %287 : f32 to vector<1x256xf32>
    %290 = arith.mulf %289, %288 : vector<1x256xf32>
    %c61 = arith.constant 61 : index
    %291 = memref.load %arg5[%c61] : memref<98xf32, #tpu.memory_space<smem>>
    %292 = vector.extract_strided_slice %280 {offsets = [1, 0], sizes = [1, 256], strides = [1, 1]} : vector<2x256xf32> to vector<1x256xf32>
    %293 = vector.broadcast %291 : f32 to vector<1x256xf32>
    %294 = arith.mulf %293, %292 : vector<1x256xf32>
    %295 = arith.addf %290, %294 : vector<1x256xf32>
    %cst_41 = arith.constant 0.000000e+00 : f32
    %296 = vector.broadcast %cst_41 : f32 to vector<1x256xf32>
    %297 = arith.select %286, %295, %296 : vector<1x256xi1>, vector<1x256xf32>
    %298 = arith.addf %277, %297 : vector<1x256xf32>
    %299 = vector.extract_strided_slice %12 {offsets = [0, 227], sizes = [2, 29], strides = [1, 1]} : vector<2x256xf32> to vector<2x29xf32>
    %300 = vector.extract_strided_slice %12 {offsets = [0, 0], sizes = [2, 227], strides = [1, 1]} : vector<2x256xf32> to vector<2x227xf32>
    %301 = tpu.concatenate %299, %300 in 1 : vector<2x29xf32>, vector<2x227xf32> -> vector<2x256xf32>
    %c-3_i32_42 = arith.constant -3 : i32
    %302 = vector.broadcast %c-3_i32_42 : i32 to vector<1x256xi32>
    %303 = arith.cmpi sge, %14, %302 : vector<1x256xi32>
    %304 = arith.andi %172, %303 : vector<1x256xi1>
    %c13_i32_43 = arith.constant 13 : i32
    %305 = vector.broadcast %c13_i32_43 : i32 to vector<1x256xi32>
    %306 = arith.cmpi slt, %14, %305 : vector<1x256xi32>
    %307 = arith.andi %304, %306 : vector<1x256xi1>
    %c13 = arith.constant 13 : index
    %308 = memref.load %arg5[%c13] : memref<98xf32, #tpu.memory_space<smem>>
    %309 = vector.extract_strided_slice %301 {offsets = [0, 0], sizes = [1, 256], strides = [1, 1]} : vector<2x256xf32> to vector<1x256xf32>
    %310 = vector.broadcast %308 : f32 to vector<1x256xf32>
    %311 = arith.mulf %310, %309 : vector<1x256xf32>
    %c62 = arith.constant 62 : index
    %312 = memref.load %arg5[%c62] : memref<98xf32, #tpu.memory_space<smem>>
    %313 = vector.extract_strided_slice %301 {offsets = [1, 0], sizes = [1, 256], strides = [1, 1]} : vector<2x256xf32> to vector<1x256xf32>
    %314 = vector.broadcast %312 : f32 to vector<1x256xf32>
    %315 = arith.mulf %314, %313 : vector<1x256xf32>
    %316 = arith.addf %311, %315 : vector<1x256xf32>
    %cst_44 = arith.constant 0.000000e+00 : f32
    %317 = vector.broadcast %cst_44 : f32 to vector<1x256xf32>
    %318 = arith.select %307, %316, %317 : vector<1x256xi1>, vector<1x256xf32>
    %319 = arith.addf %298, %318 : vector<1x256xf32>
    %c1_i32_45 = arith.constant 1 : i32
    %320 = vector.broadcast %c1_i32_45 : i32 to vector<1x256xi32>
    %321 = arith.cmpi sge, %13, %320 : vector<1x256xi32>
    %c17_i32_46 = arith.constant 17 : i32
    %322 = vector.broadcast %c17_i32_46 : i32 to vector<1x256xi32>
    %323 = arith.cmpi slt, %13, %322 : vector<1x256xi32>
    %324 = arith.andi %321, %323 : vector<1x256xi1>
    %325 = vector.extract_strided_slice %12 {offsets = [0, 237], sizes = [2, 19], strides = [1, 1]} : vector<2x256xf32> to vector<2x19xf32>
    %326 = vector.extract_strided_slice %12 {offsets = [0, 0], sizes = [2, 237], strides = [1, 1]} : vector<2x256xf32> to vector<2x237xf32>
    %327 = tpu.concatenate %325, %326 in 1 : vector<2x19xf32>, vector<2x237xf32> -> vector<2x256xf32>
    %c3_i32_47 = arith.constant 3 : i32
    %328 = vector.broadcast %c3_i32_47 : i32 to vector<1x256xi32>
    %329 = arith.cmpi sge, %14, %328 : vector<1x256xi32>
    %330 = arith.andi %324, %329 : vector<1x256xi1>
    %c19_i32_48 = arith.constant 19 : i32
    %331 = vector.broadcast %c19_i32_48 : i32 to vector<1x256xi32>
    %332 = arith.cmpi slt, %14, %331 : vector<1x256xi32>
    %333 = arith.andi %330, %332 : vector<1x256xi1>
    %c14 = arith.constant 14 : index
    %334 = memref.load %arg5[%c14] : memref<98xf32, #tpu.memory_space<smem>>
    %335 = vector.extract_strided_slice %327 {offsets = [0, 0], sizes = [1, 256], strides = [1, 1]} : vector<2x256xf32> to vector<1x256xf32>
    %336 = vector.broadcast %334 : f32 to vector<1x256xf32>
    %337 = arith.mulf %336, %335 : vector<1x256xf32>
    %c63 = arith.constant 63 : index
    %338 = memref.load %arg5[%c63] : memref<98xf32, #tpu.memory_space<smem>>
    %339 = vector.extract_strided_slice %327 {offsets = [1, 0], sizes = [1, 256], strides = [1, 1]} : vector<2x256xf32> to vector<1x256xf32>
    %340 = vector.broadcast %338 : f32 to vector<1x256xf32>
    %341 = arith.mulf %340, %339 : vector<1x256xf32>
    %342 = arith.addf %337, %341 : vector<1x256xf32>
    %cst_49 = arith.constant 0.000000e+00 : f32
    %343 = vector.broadcast %cst_49 : f32 to vector<1x256xf32>
    %344 = arith.select %333, %342, %343 : vector<1x256xi1>, vector<1x256xf32>
    %345 = arith.addf %319, %344 : vector<1x256xf32>
    %346 = vector.extract_strided_slice %12 {offsets = [0, 238], sizes = [2, 18], strides = [1, 1]} : vector<2x256xf32> to vector<2x18xf32>
    %347 = vector.extract_strided_slice %12 {offsets = [0, 0], sizes = [2, 238], strides = [1, 1]} : vector<2x256xf32> to vector<2x238xf32>
    %348 = tpu.concatenate %346, %347 in 1 : vector<2x18xf32>, vector<2x238xf32> -> vector<2x256xf32>
    %c2_i32_50 = arith.constant 2 : i32
    %349 = vector.broadcast %c2_i32_50 : i32 to vector<1x256xi32>
    %350 = arith.cmpi sge, %14, %349 : vector<1x256xi32>
    %351 = arith.andi %324, %350 : vector<1x256xi1>
    %c18_i32_51 = arith.constant 18 : i32
    %352 = vector.broadcast %c18_i32_51 : i32 to vector<1x256xi32>
    %353 = arith.cmpi slt, %14, %352 : vector<1x256xi32>
    %354 = arith.andi %351, %353 : vector<1x256xi1>
    %c15 = arith.constant 15 : index
    %355 = memref.load %arg5[%c15] : memref<98xf32, #tpu.memory_space<smem>>
    %356 = vector.extract_strided_slice %348 {offsets = [0, 0], sizes = [1, 256], strides = [1, 1]} : vector<2x256xf32> to vector<1x256xf32>
    %357 = vector.broadcast %355 : f32 to vector<1x256xf32>
    %358 = arith.mulf %357, %356 : vector<1x256xf32>
    %c64 = arith.constant 64 : index
    %359 = memref.load %arg5[%c64] : memref<98xf32, #tpu.memory_space<smem>>
    %360 = vector.extract_strided_slice %348 {offsets = [1, 0], sizes = [1, 256], strides = [1, 1]} : vector<2x256xf32> to vector<1x256xf32>
    %361 = vector.broadcast %359 : f32 to vector<1x256xf32>
    %362 = arith.mulf %361, %360 : vector<1x256xf32>
    %363 = arith.addf %358, %362 : vector<1x256xf32>
    %cst_52 = arith.constant 0.000000e+00 : f32
    %364 = vector.broadcast %cst_52 : f32 to vector<1x256xf32>
    %365 = arith.select %354, %363, %364 : vector<1x256xi1>, vector<1x256xf32>
    %366 = arith.addf %345, %365 : vector<1x256xf32>
    %367 = vector.extract_strided_slice %12 {offsets = [0, 239], sizes = [2, 17], strides = [1, 1]} : vector<2x256xf32> to vector<2x17xf32>
    %368 = vector.extract_strided_slice %12 {offsets = [0, 0], sizes = [2, 239], strides = [1, 1]} : vector<2x256xf32> to vector<2x239xf32>
    %369 = tpu.concatenate %367, %368 in 1 : vector<2x17xf32>, vector<2x239xf32> -> vector<2x256xf32>
    %c1_i32_53 = arith.constant 1 : i32
    %370 = vector.broadcast %c1_i32_53 : i32 to vector<1x256xi32>
    %371 = arith.cmpi sge, %14, %370 : vector<1x256xi32>
    %372 = arith.andi %324, %371 : vector<1x256xi1>
    %c17_i32_54 = arith.constant 17 : i32
    %373 = vector.broadcast %c17_i32_54 : i32 to vector<1x256xi32>
    %374 = arith.cmpi slt, %14, %373 : vector<1x256xi32>
    %375 = arith.andi %372, %374 : vector<1x256xi1>
    %c16 = arith.constant 16 : index
    %376 = memref.load %arg5[%c16] : memref<98xf32, #tpu.memory_space<smem>>
    %377 = vector.extract_strided_slice %369 {offsets = [0, 0], sizes = [1, 256], strides = [1, 1]} : vector<2x256xf32> to vector<1x256xf32>
    %378 = vector.broadcast %376 : f32 to vector<1x256xf32>
    %379 = arith.mulf %378, %377 : vector<1x256xf32>
    %c65 = arith.constant 65 : index
    %380 = memref.load %arg5[%c65] : memref<98xf32, #tpu.memory_space<smem>>
    %381 = vector.extract_strided_slice %369 {offsets = [1, 0], sizes = [1, 256], strides = [1, 1]} : vector<2x256xf32> to vector<1x256xf32>
    %382 = vector.broadcast %380 : f32 to vector<1x256xf32>
    %383 = arith.mulf %382, %381 : vector<1x256xf32>
    %384 = arith.addf %379, %383 : vector<1x256xf32>
    %cst_55 = arith.constant 0.000000e+00 : f32
    %385 = vector.broadcast %cst_55 : f32 to vector<1x256xf32>
    %386 = arith.select %375, %384, %385 : vector<1x256xi1>, vector<1x256xf32>
    %387 = arith.addf %366, %386 : vector<1x256xf32>
    %388 = vector.extract_strided_slice %12 {offsets = [0, 240], sizes = [2, 16], strides = [1, 1]} : vector<2x256xf32> to vector<2x16xf32>
    %389 = vector.extract_strided_slice %12 {offsets = [0, 0], sizes = [2, 240], strides = [1, 1]} : vector<2x256xf32> to vector<2x240xf32>
    %390 = tpu.concatenate %388, %389 in 1 : vector<2x16xf32>, vector<2x240xf32> -> vector<2x256xf32>
    %c0_i32_56 = arith.constant 0 : i32
    %391 = vector.broadcast %c0_i32_56 : i32 to vector<1x256xi32>
    %392 = arith.cmpi sge, %14, %391 : vector<1x256xi32>
    %393 = arith.andi %324, %392 : vector<1x256xi1>
    %c16_i32_57 = arith.constant 16 : i32
    %394 = vector.broadcast %c16_i32_57 : i32 to vector<1x256xi32>
    %395 = arith.cmpi slt, %14, %394 : vector<1x256xi32>
    %396 = arith.andi %393, %395 : vector<1x256xi1>
    %c17 = arith.constant 17 : index
    %397 = memref.load %arg5[%c17] : memref<98xf32, #tpu.memory_space<smem>>
    %398 = vector.extract_strided_slice %390 {offsets = [0, 0], sizes = [1, 256], strides = [1, 1]} : vector<2x256xf32> to vector<1x256xf32>
    %399 = vector.broadcast %397 : f32 to vector<1x256xf32>
    %400 = arith.mulf %399, %398 : vector<1x256xf32>
    %c66 = arith.constant 66 : index
    %401 = memref.load %arg5[%c66] : memref<98xf32, #tpu.memory_space<smem>>
    %402 = vector.extract_strided_slice %390 {offsets = [1, 0], sizes = [1, 256], strides = [1, 1]} : vector<2x256xf32> to vector<1x256xf32>
    %403 = vector.broadcast %401 : f32 to vector<1x256xf32>
    %404 = arith.mulf %403, %402 : vector<1x256xf32>
    %405 = arith.addf %400, %404 : vector<1x256xf32>
    %cst_58 = arith.constant 0.000000e+00 : f32
    %406 = vector.broadcast %cst_58 : f32 to vector<1x256xf32>
    %407 = arith.select %396, %405, %406 : vector<1x256xi1>, vector<1x256xf32>
    %408 = arith.addf %387, %407 : vector<1x256xf32>
    %409 = vector.extract_strided_slice %12 {offsets = [0, 241], sizes = [2, 15], strides = [1, 1]} : vector<2x256xf32> to vector<2x15xf32>
    %410 = vector.extract_strided_slice %12 {offsets = [0, 0], sizes = [2, 241], strides = [1, 1]} : vector<2x256xf32> to vector<2x241xf32>
    %411 = tpu.concatenate %409, %410 in 1 : vector<2x15xf32>, vector<2x241xf32> -> vector<2x256xf32>
    %c-1_i32_59 = arith.constant -1 : i32
    %412 = vector.broadcast %c-1_i32_59 : i32 to vector<1x256xi32>
    %413 = arith.cmpi sge, %14, %412 : vector<1x256xi32>
    %414 = arith.andi %324, %413 : vector<1x256xi1>
    %c15_i32_60 = arith.constant 15 : i32
    %415 = vector.broadcast %c15_i32_60 : i32 to vector<1x256xi32>
    %416 = arith.cmpi slt, %14, %415 : vector<1x256xi32>
    %417 = arith.andi %414, %416 : vector<1x256xi1>
    %c18 = arith.constant 18 : index
    %418 = memref.load %arg5[%c18] : memref<98xf32, #tpu.memory_space<smem>>
    %419 = vector.extract_strided_slice %411 {offsets = [0, 0], sizes = [1, 256], strides = [1, 1]} : vector<2x256xf32> to vector<1x256xf32>
    %420 = vector.broadcast %418 : f32 to vector<1x256xf32>
    %421 = arith.mulf %420, %419 : vector<1x256xf32>
    %c67 = arith.constant 67 : index
    %422 = memref.load %arg5[%c67] : memref<98xf32, #tpu.memory_space<smem>>
    %423 = vector.extract_strided_slice %411 {offsets = [1, 0], sizes = [1, 256], strides = [1, 1]} : vector<2x256xf32> to vector<1x256xf32>
    %424 = vector.broadcast %422 : f32 to vector<1x256xf32>
    %425 = arith.mulf %424, %423 : vector<1x256xf32>
    %426 = arith.addf %421, %425 : vector<1x256xf32>
    %cst_61 = arith.constant 0.000000e+00 : f32
    %427 = vector.broadcast %cst_61 : f32 to vector<1x256xf32>
    %428 = arith.select %417, %426, %427 : vector<1x256xi1>, vector<1x256xf32>
    %429 = arith.addf %408, %428 : vector<1x256xf32>
    %430 = vector.extract_strided_slice %12 {offsets = [0, 242], sizes = [2, 14], strides = [1, 1]} : vector<2x256xf32> to vector<2x14xf32>
    %431 = vector.extract_strided_slice %12 {offsets = [0, 0], sizes = [2, 242], strides = [1, 1]} : vector<2x256xf32> to vector<2x242xf32>
    %432 = tpu.concatenate %430, %431 in 1 : vector<2x14xf32>, vector<2x242xf32> -> vector<2x256xf32>
    %c-2_i32_62 = arith.constant -2 : i32
    %433 = vector.broadcast %c-2_i32_62 : i32 to vector<1x256xi32>
    %434 = arith.cmpi sge, %14, %433 : vector<1x256xi32>
    %435 = arith.andi %324, %434 : vector<1x256xi1>
    %c14_i32_63 = arith.constant 14 : i32
    %436 = vector.broadcast %c14_i32_63 : i32 to vector<1x256xi32>
    %437 = arith.cmpi slt, %14, %436 : vector<1x256xi32>
    %438 = arith.andi %435, %437 : vector<1x256xi1>
    %c19 = arith.constant 19 : index
    %439 = memref.load %arg5[%c19] : memref<98xf32, #tpu.memory_space<smem>>
    %440 = vector.extract_strided_slice %432 {offsets = [0, 0], sizes = [1, 256], strides = [1, 1]} : vector<2x256xf32> to vector<1x256xf32>
    %441 = vector.broadcast %439 : f32 to vector<1x256xf32>
    %442 = arith.mulf %441, %440 : vector<1x256xf32>
    %c68 = arith.constant 68 : index
    %443 = memref.load %arg5[%c68] : memref<98xf32, #tpu.memory_space<smem>>
    %444 = vector.extract_strided_slice %432 {offsets = [1, 0], sizes = [1, 256], strides = [1, 1]} : vector<2x256xf32> to vector<1x256xf32>
    %445 = vector.broadcast %443 : f32 to vector<1x256xf32>
    %446 = arith.mulf %445, %444 : vector<1x256xf32>
    %447 = arith.addf %442, %446 : vector<1x256xf32>
    %cst_64 = arith.constant 0.000000e+00 : f32
    %448 = vector.broadcast %cst_64 : f32 to vector<1x256xf32>
    %449 = arith.select %438, %447, %448 : vector<1x256xi1>, vector<1x256xf32>
    %450 = arith.addf %429, %449 : vector<1x256xf32>
    %451 = vector.extract_strided_slice %12 {offsets = [0, 243], sizes = [2, 13], strides = [1, 1]} : vector<2x256xf32> to vector<2x13xf32>
    %452 = vector.extract_strided_slice %12 {offsets = [0, 0], sizes = [2, 243], strides = [1, 1]} : vector<2x256xf32> to vector<2x243xf32>
    %453 = tpu.concatenate %451, %452 in 1 : vector<2x13xf32>, vector<2x243xf32> -> vector<2x256xf32>
    %c-3_i32_65 = arith.constant -3 : i32
    %454 = vector.broadcast %c-3_i32_65 : i32 to vector<1x256xi32>
    %455 = arith.cmpi sge, %14, %454 : vector<1x256xi32>
    %456 = arith.andi %324, %455 : vector<1x256xi1>
    %c13_i32_66 = arith.constant 13 : i32
    %457 = vector.broadcast %c13_i32_66 : i32 to vector<1x256xi32>
    %458 = arith.cmpi slt, %14, %457 : vector<1x256xi32>
    %459 = arith.andi %456, %458 : vector<1x256xi1>
    %c20 = arith.constant 20 : index
    %460 = memref.load %arg5[%c20] : memref<98xf32, #tpu.memory_space<smem>>
    %461 = vector.extract_strided_slice %453 {offsets = [0, 0], sizes = [1, 256], strides = [1, 1]} : vector<2x256xf32> to vector<1x256xf32>
    %462 = vector.broadcast %460 : f32 to vector<1x256xf32>
    %463 = arith.mulf %462, %461 : vector<1x256xf32>
    %c69 = arith.constant 69 : index
    %464 = memref.load %arg5[%c69] : memref<98xf32, #tpu.memory_space<smem>>
    %465 = vector.extract_strided_slice %453 {offsets = [1, 0], sizes = [1, 256], strides = [1, 1]} : vector<2x256xf32> to vector<1x256xf32>
    %466 = vector.broadcast %464 : f32 to vector<1x256xf32>
    %467 = arith.mulf %466, %465 : vector<1x256xf32>
    %468 = arith.addf %463, %467 : vector<1x256xf32>
    %cst_67 = arith.constant 0.000000e+00 : f32
    %469 = vector.broadcast %cst_67 : f32 to vector<1x256xf32>
    %470 = arith.select %459, %468, %469 : vector<1x256xi1>, vector<1x256xf32>
    %471 = arith.addf %450, %470 : vector<1x256xf32>
    %c0_i32_68 = arith.constant 0 : i32
    %472 = vector.broadcast %c0_i32_68 : i32 to vector<1x256xi32>
    %473 = arith.cmpi sge, %13, %472 : vector<1x256xi32>
    %c16_i32_69 = arith.constant 16 : i32
    %474 = vector.broadcast %c16_i32_69 : i32 to vector<1x256xi32>
    %475 = arith.cmpi slt, %13, %474 : vector<1x256xi32>
    %476 = arith.andi %473, %475 : vector<1x256xi1>
    %477 = vector.extract_strided_slice %12 {offsets = [0, 253], sizes = [2, 3], strides = [1, 1]} : vector<2x256xf32> to vector<2x3xf32>
    %478 = vector.extract_strided_slice %12 {offsets = [0, 0], sizes = [2, 253], strides = [1, 1]} : vector<2x256xf32> to vector<2x253xf32>
    %479 = tpu.concatenate %477, %478 in 1 : vector<2x3xf32>, vector<2x253xf32> -> vector<2x256xf32>
    %c3_i32_70 = arith.constant 3 : i32
    %480 = vector.broadcast %c3_i32_70 : i32 to vector<1x256xi32>
    %481 = arith.cmpi sge, %14, %480 : vector<1x256xi32>
    %482 = arith.andi %476, %481 : vector<1x256xi1>
    %c19_i32_71 = arith.constant 19 : i32
    %483 = vector.broadcast %c19_i32_71 : i32 to vector<1x256xi32>
    %484 = arith.cmpi slt, %14, %483 : vector<1x256xi32>
    %485 = arith.andi %482, %484 : vector<1x256xi1>
    %c21 = arith.constant 21 : index
    %486 = memref.load %arg5[%c21] : memref<98xf32, #tpu.memory_space<smem>>
    %487 = vector.extract_strided_slice %479 {offsets = [0, 0], sizes = [1, 256], strides = [1, 1]} : vector<2x256xf32> to vector<1x256xf32>
    %488 = vector.broadcast %486 : f32 to vector<1x256xf32>
    %489 = arith.mulf %488, %487 : vector<1x256xf32>
    %c70 = arith.constant 70 : index
    %490 = memref.load %arg5[%c70] : memref<98xf32, #tpu.memory_space<smem>>
    %491 = vector.extract_strided_slice %479 {offsets = [1, 0], sizes = [1, 256], strides = [1, 1]} : vector<2x256xf32> to vector<1x256xf32>
    %492 = vector.broadcast %490 : f32 to vector<1x256xf32>
    %493 = arith.mulf %492, %491 : vector<1x256xf32>
    %494 = arith.addf %489, %493 : vector<1x256xf32>
    %cst_72 = arith.constant 0.000000e+00 : f32
    %495 = vector.broadcast %cst_72 : f32 to vector<1x256xf32>
    %496 = arith.select %485, %494, %495 : vector<1x256xi1>, vector<1x256xf32>
    %497 = arith.addf %471, %496 : vector<1x256xf32>
    %498 = vector.extract_strided_slice %12 {offsets = [0, 254], sizes = [2, 2], strides = [1, 1]} : vector<2x256xf32> to vector<2x2xf32>
    %499 = vector.extract_strided_slice %12 {offsets = [0, 0], sizes = [2, 254], strides = [1, 1]} : vector<2x256xf32> to vector<2x254xf32>
    %500 = tpu.concatenate %498, %499 in 1 : vector<2x2xf32>, vector<2x254xf32> -> vector<2x256xf32>
    %c2_i32_73 = arith.constant 2 : i32
    %501 = vector.broadcast %c2_i32_73 : i32 to vector<1x256xi32>
    %502 = arith.cmpi sge, %14, %501 : vector<1x256xi32>
    %503 = arith.andi %476, %502 : vector<1x256xi1>
    %c18_i32_74 = arith.constant 18 : i32
    %504 = vector.broadcast %c18_i32_74 : i32 to vector<1x256xi32>
    %505 = arith.cmpi slt, %14, %504 : vector<1x256xi32>
    %506 = arith.andi %503, %505 : vector<1x256xi1>
    %c22 = arith.constant 22 : index
    %507 = memref.load %arg5[%c22] : memref<98xf32, #tpu.memory_space<smem>>
    %508 = vector.extract_strided_slice %500 {offsets = [0, 0], sizes = [1, 256], strides = [1, 1]} : vector<2x256xf32> to vector<1x256xf32>
    %509 = vector.broadcast %507 : f32 to vector<1x256xf32>
    %510 = arith.mulf %509, %508 : vector<1x256xf32>
    %c71 = arith.constant 71 : index
    %511 = memref.load %arg5[%c71] : memref<98xf32, #tpu.memory_space<smem>>
    %512 = vector.extract_strided_slice %500 {offsets = [1, 0], sizes = [1, 256], strides = [1, 1]} : vector<2x256xf32> to vector<1x256xf32>
    %513 = vector.broadcast %511 : f32 to vector<1x256xf32>
    %514 = arith.mulf %513, %512 : vector<1x256xf32>
    %515 = arith.addf %510, %514 : vector<1x256xf32>
    %cst_75 = arith.constant 0.000000e+00 : f32
    %516 = vector.broadcast %cst_75 : f32 to vector<1x256xf32>
    %517 = arith.select %506, %515, %516 : vector<1x256xi1>, vector<1x256xf32>
    %518 = arith.addf %497, %517 : vector<1x256xf32>
    %519 = vector.extract_strided_slice %12 {offsets = [0, 255], sizes = [2, 1], strides = [1, 1]} : vector<2x256xf32> to vector<2x1xf32>
    %520 = vector.extract_strided_slice %12 {offsets = [0, 0], sizes = [2, 255], strides = [1, 1]} : vector<2x256xf32> to vector<2x255xf32>
    %521 = tpu.concatenate %519, %520 in 1 : vector<2x1xf32>, vector<2x255xf32> -> vector<2x256xf32>
    %c1_i32_76 = arith.constant 1 : i32
    %522 = vector.broadcast %c1_i32_76 : i32 to vector<1x256xi32>
    %523 = arith.cmpi sge, %14, %522 : vector<1x256xi32>
    %524 = arith.andi %476, %523 : vector<1x256xi1>
    %c17_i32_77 = arith.constant 17 : i32
    %525 = vector.broadcast %c17_i32_77 : i32 to vector<1x256xi32>
    %526 = arith.cmpi slt, %14, %525 : vector<1x256xi32>
    %527 = arith.andi %524, %526 : vector<1x256xi1>
    %c23 = arith.constant 23 : index
    %528 = memref.load %arg5[%c23] : memref<98xf32, #tpu.memory_space<smem>>
    %529 = vector.extract_strided_slice %521 {offsets = [0, 0], sizes = [1, 256], strides = [1, 1]} : vector<2x256xf32> to vector<1x256xf32>
    %530 = vector.broadcast %528 : f32 to vector<1x256xf32>
    %531 = arith.mulf %530, %529 : vector<1x256xf32>
    %c72 = arith.constant 72 : index
    %532 = memref.load %arg5[%c72] : memref<98xf32, #tpu.memory_space<smem>>
    %533 = vector.extract_strided_slice %521 {offsets = [1, 0], sizes = [1, 256], strides = [1, 1]} : vector<2x256xf32> to vector<1x256xf32>
    %534 = vector.broadcast %532 : f32 to vector<1x256xf32>
    %535 = arith.mulf %534, %533 : vector<1x256xf32>
    %536 = arith.addf %531, %535 : vector<1x256xf32>
    %cst_78 = arith.constant 0.000000e+00 : f32
    %537 = vector.broadcast %cst_78 : f32 to vector<1x256xf32>
    %538 = arith.select %527, %536, %537 : vector<1x256xi1>, vector<1x256xf32>
    %539 = arith.addf %518, %538 : vector<1x256xf32>
    %c0_i32_79 = arith.constant 0 : i32
    %540 = vector.broadcast %c0_i32_79 : i32 to vector<1x256xi32>
    %541 = arith.cmpi sge, %14, %540 : vector<1x256xi32>
    %542 = arith.andi %476, %541 : vector<1x256xi1>
    %c16_i32_80 = arith.constant 16 : i32
    %543 = vector.broadcast %c16_i32_80 : i32 to vector<1x256xi32>
    %544 = arith.cmpi slt, %14, %543 : vector<1x256xi32>
    %545 = arith.andi %542, %544 : vector<1x256xi1>
    %c24 = arith.constant 24 : index
    %546 = memref.load %arg5[%c24] : memref<98xf32, #tpu.memory_space<smem>>
    %547 = vector.extract_strided_slice %12 {offsets = [0, 0], sizes = [1, 256], strides = [1, 1]} : vector<2x256xf32> to vector<1x256xf32>
    %548 = vector.broadcast %546 : f32 to vector<1x256xf32>
    %549 = arith.mulf %548, %547 : vector<1x256xf32>
    %c73 = arith.constant 73 : index
    %550 = memref.load %arg5[%c73] : memref<98xf32, #tpu.memory_space<smem>>
    %551 = vector.extract_strided_slice %12 {offsets = [1, 0], sizes = [1, 256], strides = [1, 1]} : vector<2x256xf32> to vector<1x256xf32>
    %552 = vector.broadcast %550 : f32 to vector<1x256xf32>
    %553 = arith.mulf %552, %551 : vector<1x256xf32>
    %554 = arith.addf %549, %553 : vector<1x256xf32>
    %cst_81 = arith.constant 0.000000e+00 : f32
    %555 = vector.broadcast %cst_81 : f32 to vector<1x256xf32>
    %556 = arith.select %545, %554, %555 : vector<1x256xi1>, vector<1x256xf32>
    %557 = arith.addf %539, %556 : vector<1x256xf32>
    %558 = vector.extract_strided_slice %12 {offsets = [0, 1], sizes = [2, 255], strides = [1, 1]} : vector<2x256xf32> to vector<2x255xf32>
    %559 = vector.extract_strided_slice %12 {offsets = [0, 0], sizes = [2, 1], strides = [1, 1]} : vector<2x256xf32> to vector<2x1xf32>
    %560 = tpu.concatenate %558, %559 in 1 : vector<2x255xf32>, vector<2x1xf32> -> vector<2x256xf32>
    %c-1_i32_82 = arith.constant -1 : i32
    %561 = vector.broadcast %c-1_i32_82 : i32 to vector<1x256xi32>
    %562 = arith.cmpi sge, %14, %561 : vector<1x256xi32>
    %563 = arith.andi %476, %562 : vector<1x256xi1>
    %c15_i32_83 = arith.constant 15 : i32
    %564 = vector.broadcast %c15_i32_83 : i32 to vector<1x256xi32>
    %565 = arith.cmpi slt, %14, %564 : vector<1x256xi32>
    %566 = arith.andi %563, %565 : vector<1x256xi1>
    %c25 = arith.constant 25 : index
    %567 = memref.load %arg5[%c25] : memref<98xf32, #tpu.memory_space<smem>>
    %568 = vector.extract_strided_slice %560 {offsets = [0, 0], sizes = [1, 256], strides = [1, 1]} : vector<2x256xf32> to vector<1x256xf32>
    %569 = vector.broadcast %567 : f32 to vector<1x256xf32>
    %570 = arith.mulf %569, %568 : vector<1x256xf32>
    %c74 = arith.constant 74 : index
    %571 = memref.load %arg5[%c74] : memref<98xf32, #tpu.memory_space<smem>>
    %572 = vector.extract_strided_slice %560 {offsets = [1, 0], sizes = [1, 256], strides = [1, 1]} : vector<2x256xf32> to vector<1x256xf32>
    %573 = vector.broadcast %571 : f32 to vector<1x256xf32>
    %574 = arith.mulf %573, %572 : vector<1x256xf32>
    %575 = arith.addf %570, %574 : vector<1x256xf32>
    %cst_84 = arith.constant 0.000000e+00 : f32
    %576 = vector.broadcast %cst_84 : f32 to vector<1x256xf32>
    %577 = arith.select %566, %575, %576 : vector<1x256xi1>, vector<1x256xf32>
    %578 = arith.addf %557, %577 : vector<1x256xf32>
    %579 = vector.extract_strided_slice %12 {offsets = [0, 2], sizes = [2, 254], strides = [1, 1]} : vector<2x256xf32> to vector<2x254xf32>
    %580 = vector.extract_strided_slice %12 {offsets = [0, 0], sizes = [2, 2], strides = [1, 1]} : vector<2x256xf32> to vector<2x2xf32>
    %581 = tpu.concatenate %579, %580 in 1 : vector<2x254xf32>, vector<2x2xf32> -> vector<2x256xf32>
    %c-2_i32_85 = arith.constant -2 : i32
    %582 = vector.broadcast %c-2_i32_85 : i32 to vector<1x256xi32>
    %583 = arith.cmpi sge, %14, %582 : vector<1x256xi32>
    %584 = arith.andi %476, %583 : vector<1x256xi1>
    %c14_i32_86 = arith.constant 14 : i32
    %585 = vector.broadcast %c14_i32_86 : i32 to vector<1x256xi32>
    %586 = arith.cmpi slt, %14, %585 : vector<1x256xi32>
    %587 = arith.andi %584, %586 : vector<1x256xi1>
    %c26 = arith.constant 26 : index
    %588 = memref.load %arg5[%c26] : memref<98xf32, #tpu.memory_space<smem>>
    %589 = vector.extract_strided_slice %581 {offsets = [0, 0], sizes = [1, 256], strides = [1, 1]} : vector<2x256xf32> to vector<1x256xf32>
    %590 = vector.broadcast %588 : f32 to vector<1x256xf32>
    %591 = arith.mulf %590, %589 : vector<1x256xf32>
    %c75 = arith.constant 75 : index
    %592 = memref.load %arg5[%c75] : memref<98xf32, #tpu.memory_space<smem>>
    %593 = vector.extract_strided_slice %581 {offsets = [1, 0], sizes = [1, 256], strides = [1, 1]} : vector<2x256xf32> to vector<1x256xf32>
    %594 = vector.broadcast %592 : f32 to vector<1x256xf32>
    %595 = arith.mulf %594, %593 : vector<1x256xf32>
    %596 = arith.addf %591, %595 : vector<1x256xf32>
    %cst_87 = arith.constant 0.000000e+00 : f32
    %597 = vector.broadcast %cst_87 : f32 to vector<1x256xf32>
    %598 = arith.select %587, %596, %597 : vector<1x256xi1>, vector<1x256xf32>
    %599 = arith.addf %578, %598 : vector<1x256xf32>
    %600 = vector.extract_strided_slice %12 {offsets = [0, 3], sizes = [2, 253], strides = [1, 1]} : vector<2x256xf32> to vector<2x253xf32>
    %601 = vector.extract_strided_slice %12 {offsets = [0, 0], sizes = [2, 3], strides = [1, 1]} : vector<2x256xf32> to vector<2x3xf32>
    %602 = tpu.concatenate %600, %601 in 1 : vector<2x253xf32>, vector<2x3xf32> -> vector<2x256xf32>
    %c-3_i32_88 = arith.constant -3 : i32
    %603 = vector.broadcast %c-3_i32_88 : i32 to vector<1x256xi32>
    %604 = arith.cmpi sge, %14, %603 : vector<1x256xi32>
    %605 = arith.andi %476, %604 : vector<1x256xi1>
    %c13_i32_89 = arith.constant 13 : i32
    %606 = vector.broadcast %c13_i32_89 : i32 to vector<1x256xi32>
    %607 = arith.cmpi slt, %14, %606 : vector<1x256xi32>
    %608 = arith.andi %605, %607 : vector<1x256xi1>
    %c27 = arith.constant 27 : index
    %609 = memref.load %arg5[%c27] : memref<98xf32, #tpu.memory_space<smem>>
    %610 = vector.extract_strided_slice %602 {offsets = [0, 0], sizes = [1, 256], strides = [1, 1]} : vector<2x256xf32> to vector<1x256xf32>
    %611 = vector.broadcast %609 : f32 to vector<1x256xf32>
    %612 = arith.mulf %611, %610 : vector<1x256xf32>
    %c76 = arith.constant 76 : index
    %613 = memref.load %arg5[%c76] : memref<98xf32, #tpu.memory_space<smem>>
    %614 = vector.extract_strided_slice %602 {offsets = [1, 0], sizes = [1, 256], strides = [1, 1]} : vector<2x256xf32> to vector<1x256xf32>
    %615 = vector.broadcast %613 : f32 to vector<1x256xf32>
    %616 = arith.mulf %615, %614 : vector<1x256xf32>
    %617 = arith.addf %612, %616 : vector<1x256xf32>
    %cst_90 = arith.constant 0.000000e+00 : f32
    %618 = vector.broadcast %cst_90 : f32 to vector<1x256xf32>
    %619 = arith.select %608, %617, %618 : vector<1x256xi1>, vector<1x256xf32>
    %620 = arith.addf %599, %619 : vector<1x256xf32>
    %c-1_i32_91 = arith.constant -1 : i32
    %621 = vector.broadcast %c-1_i32_91 : i32 to vector<1x256xi32>
    %622 = arith.cmpi sge, %13, %621 : vector<1x256xi32>
    %c15_i32_92 = arith.constant 15 : i32
    %623 = vector.broadcast %c15_i32_92 : i32 to vector<1x256xi32>
    %624 = arith.cmpi slt, %13, %623 : vector<1x256xi32>
    %625 = arith.andi %622, %624 : vector<1x256xi1>
    %626 = vector.extract_strided_slice %12 {offsets = [0, 13], sizes = [2, 243], strides = [1, 1]} : vector<2x256xf32> to vector<2x243xf32>
    %627 = vector.extract_strided_slice %12 {offsets = [0, 0], sizes = [2, 13], strides = [1, 1]} : vector<2x256xf32> to vector<2x13xf32>
    %628 = tpu.concatenate %626, %627 in 1 : vector<2x243xf32>, vector<2x13xf32> -> vector<2x256xf32>
    %c3_i32_93 = arith.constant 3 : i32
    %629 = vector.broadcast %c3_i32_93 : i32 to vector<1x256xi32>
    %630 = arith.cmpi sge, %14, %629 : vector<1x256xi32>
    %631 = arith.andi %625, %630 : vector<1x256xi1>
    %c19_i32_94 = arith.constant 19 : i32
    %632 = vector.broadcast %c19_i32_94 : i32 to vector<1x256xi32>
    %633 = arith.cmpi slt, %14, %632 : vector<1x256xi32>
    %634 = arith.andi %631, %633 : vector<1x256xi1>
    %c28 = arith.constant 28 : index
    %635 = memref.load %arg5[%c28] : memref<98xf32, #tpu.memory_space<smem>>
    %636 = vector.extract_strided_slice %628 {offsets = [0, 0], sizes = [1, 256], strides = [1, 1]} : vector<2x256xf32> to vector<1x256xf32>
    %637 = vector.broadcast %635 : f32 to vector<1x256xf32>
    %638 = arith.mulf %637, %636 : vector<1x256xf32>
    %c77 = arith.constant 77 : index
    %639 = memref.load %arg5[%c77] : memref<98xf32, #tpu.memory_space<smem>>
    %640 = vector.extract_strided_slice %628 {offsets = [1, 0], sizes = [1, 256], strides = [1, 1]} : vector<2x256xf32> to vector<1x256xf32>
    %641 = vector.broadcast %639 : f32 to vector<1x256xf32>
    %642 = arith.mulf %641, %640 : vector<1x256xf32>
    %643 = arith.addf %638, %642 : vector<1x256xf32>
    %cst_95 = arith.constant 0.000000e+00 : f32
    %644 = vector.broadcast %cst_95 : f32 to vector<1x256xf32>
    %645 = arith.select %634, %643, %644 : vector<1x256xi1>, vector<1x256xf32>
    %646 = arith.addf %620, %645 : vector<1x256xf32>
    %647 = vector.extract_strided_slice %12 {offsets = [0, 14], sizes = [2, 242], strides = [1, 1]} : vector<2x256xf32> to vector<2x242xf32>
    %648 = vector.extract_strided_slice %12 {offsets = [0, 0], sizes = [2, 14], strides = [1, 1]} : vector<2x256xf32> to vector<2x14xf32>
    %649 = tpu.concatenate %647, %648 in 1 : vector<2x242xf32>, vector<2x14xf32> -> vector<2x256xf32>
    %c2_i32_96 = arith.constant 2 : i32
    %650 = vector.broadcast %c2_i32_96 : i32 to vector<1x256xi32>
    %651 = arith.cmpi sge, %14, %650 : vector<1x256xi32>
    %652 = arith.andi %625, %651 : vector<1x256xi1>
    %c18_i32_97 = arith.constant 18 : i32
    %653 = vector.broadcast %c18_i32_97 : i32 to vector<1x256xi32>
    %654 = arith.cmpi slt, %14, %653 : vector<1x256xi32>
    %655 = arith.andi %652, %654 : vector<1x256xi1>
    %c29 = arith.constant 29 : index
    %656 = memref.load %arg5[%c29] : memref<98xf32, #tpu.memory_space<smem>>
    %657 = vector.extract_strided_slice %649 {offsets = [0, 0], sizes = [1, 256], strides = [1, 1]} : vector<2x256xf32> to vector<1x256xf32>
    %658 = vector.broadcast %656 : f32 to vector<1x256xf32>
    %659 = arith.mulf %658, %657 : vector<1x256xf32>
    %c78 = arith.constant 78 : index
    %660 = memref.load %arg5[%c78] : memref<98xf32, #tpu.memory_space<smem>>
    %661 = vector.extract_strided_slice %649 {offsets = [1, 0], sizes = [1, 256], strides = [1, 1]} : vector<2x256xf32> to vector<1x256xf32>
    %662 = vector.broadcast %660 : f32 to vector<1x256xf32>
    %663 = arith.mulf %662, %661 : vector<1x256xf32>
    %664 = arith.addf %659, %663 : vector<1x256xf32>
    %cst_98 = arith.constant 0.000000e+00 : f32
    %665 = vector.broadcast %cst_98 : f32 to vector<1x256xf32>
    %666 = arith.select %655, %664, %665 : vector<1x256xi1>, vector<1x256xf32>
    %667 = arith.addf %646, %666 : vector<1x256xf32>
    %668 = vector.extract_strided_slice %12 {offsets = [0, 15], sizes = [2, 241], strides = [1, 1]} : vector<2x256xf32> to vector<2x241xf32>
    %669 = vector.extract_strided_slice %12 {offsets = [0, 0], sizes = [2, 15], strides = [1, 1]} : vector<2x256xf32> to vector<2x15xf32>
    %670 = tpu.concatenate %668, %669 in 1 : vector<2x241xf32>, vector<2x15xf32> -> vector<2x256xf32>
    %c1_i32_99 = arith.constant 1 : i32
    %671 = vector.broadcast %c1_i32_99 : i32 to vector<1x256xi32>
    %672 = arith.cmpi sge, %14, %671 : vector<1x256xi32>
    %673 = arith.andi %625, %672 : vector<1x256xi1>
    %c17_i32_100 = arith.constant 17 : i32
    %674 = vector.broadcast %c17_i32_100 : i32 to vector<1x256xi32>
    %675 = arith.cmpi slt, %14, %674 : vector<1x256xi32>
    %676 = arith.andi %673, %675 : vector<1x256xi1>
    %c30 = arith.constant 30 : index
    %677 = memref.load %arg5[%c30] : memref<98xf32, #tpu.memory_space<smem>>
    %678 = vector.extract_strided_slice %670 {offsets = [0, 0], sizes = [1, 256], strides = [1, 1]} : vector<2x256xf32> to vector<1x256xf32>
    %679 = vector.broadcast %677 : f32 to vector<1x256xf32>
    %680 = arith.mulf %679, %678 : vector<1x256xf32>
    %c79 = arith.constant 79 : index
    %681 = memref.load %arg5[%c79] : memref<98xf32, #tpu.memory_space<smem>>
    %682 = vector.extract_strided_slice %670 {offsets = [1, 0], sizes = [1, 256], strides = [1, 1]} : vector<2x256xf32> to vector<1x256xf32>
    %683 = vector.broadcast %681 : f32 to vector<1x256xf32>
    %684 = arith.mulf %683, %682 : vector<1x256xf32>
    %685 = arith.addf %680, %684 : vector<1x256xf32>
    %cst_101 = arith.constant 0.000000e+00 : f32
    %686 = vector.broadcast %cst_101 : f32 to vector<1x256xf32>
    %687 = arith.select %676, %685, %686 : vector<1x256xi1>, vector<1x256xf32>
    %688 = arith.addf %667, %687 : vector<1x256xf32>
    %689 = vector.extract_strided_slice %12 {offsets = [0, 16], sizes = [2, 240], strides = [1, 1]} : vector<2x256xf32> to vector<2x240xf32>
    %690 = vector.extract_strided_slice %12 {offsets = [0, 0], sizes = [2, 16], strides = [1, 1]} : vector<2x256xf32> to vector<2x16xf32>
    %691 = tpu.concatenate %689, %690 in 1 : vector<2x240xf32>, vector<2x16xf32> -> vector<2x256xf32>
    %c0_i32_102 = arith.constant 0 : i32
    %692 = vector.broadcast %c0_i32_102 : i32 to vector<1x256xi32>
    %693 = arith.cmpi sge, %14, %692 : vector<1x256xi32>
    %694 = arith.andi %625, %693 : vector<1x256xi1>
    %c16_i32_103 = arith.constant 16 : i32
    %695 = vector.broadcast %c16_i32_103 : i32 to vector<1x256xi32>
    %696 = arith.cmpi slt, %14, %695 : vector<1x256xi32>
    %697 = arith.andi %694, %696 : vector<1x256xi1>
    %c31 = arith.constant 31 : index
    %698 = memref.load %arg5[%c31] : memref<98xf32, #tpu.memory_space<smem>>
    %699 = vector.extract_strided_slice %691 {offsets = [0, 0], sizes = [1, 256], strides = [1, 1]} : vector<2x256xf32> to vector<1x256xf32>
    %700 = vector.broadcast %698 : f32 to vector<1x256xf32>
    %701 = arith.mulf %700, %699 : vector<1x256xf32>
    %c80 = arith.constant 80 : index
    %702 = memref.load %arg5[%c80] : memref<98xf32, #tpu.memory_space<smem>>
    %703 = vector.extract_strided_slice %691 {offsets = [1, 0], sizes = [1, 256], strides = [1, 1]} : vector<2x256xf32> to vector<1x256xf32>
    %704 = vector.broadcast %702 : f32 to vector<1x256xf32>
    %705 = arith.mulf %704, %703 : vector<1x256xf32>
    %706 = arith.addf %701, %705 : vector<1x256xf32>
    %cst_104 = arith.constant 0.000000e+00 : f32
    %707 = vector.broadcast %cst_104 : f32 to vector<1x256xf32>
    %708 = arith.select %697, %706, %707 : vector<1x256xi1>, vector<1x256xf32>
    %709 = arith.addf %688, %708 : vector<1x256xf32>
    %710 = vector.extract_strided_slice %12 {offsets = [0, 17], sizes = [2, 239], strides = [1, 1]} : vector<2x256xf32> to vector<2x239xf32>
    %711 = vector.extract_strided_slice %12 {offsets = [0, 0], sizes = [2, 17], strides = [1, 1]} : vector<2x256xf32> to vector<2x17xf32>
    %712 = tpu.concatenate %710, %711 in 1 : vector<2x239xf32>, vector<2x17xf32> -> vector<2x256xf32>
    %c-1_i32_105 = arith.constant -1 : i32
    %713 = vector.broadcast %c-1_i32_105 : i32 to vector<1x256xi32>
    %714 = arith.cmpi sge, %14, %713 : vector<1x256xi32>
    %715 = arith.andi %625, %714 : vector<1x256xi1>
    %c15_i32_106 = arith.constant 15 : i32
    %716 = vector.broadcast %c15_i32_106 : i32 to vector<1x256xi32>
    %717 = arith.cmpi slt, %14, %716 : vector<1x256xi32>
    %718 = arith.andi %715, %717 : vector<1x256xi1>
    %c32 = arith.constant 32 : index
    %719 = memref.load %arg5[%c32] : memref<98xf32, #tpu.memory_space<smem>>
    %720 = vector.extract_strided_slice %712 {offsets = [0, 0], sizes = [1, 256], strides = [1, 1]} : vector<2x256xf32> to vector<1x256xf32>
    %721 = vector.broadcast %719 : f32 to vector<1x256xf32>
    %722 = arith.mulf %721, %720 : vector<1x256xf32>
    %c81 = arith.constant 81 : index
    %723 = memref.load %arg5[%c81] : memref<98xf32, #tpu.memory_space<smem>>
    %724 = vector.extract_strided_slice %712 {offsets = [1, 0], sizes = [1, 256], strides = [1, 1]} : vector<2x256xf32> to vector<1x256xf32>
    %725 = vector.broadcast %723 : f32 to vector<1x256xf32>
    %726 = arith.mulf %725, %724 : vector<1x256xf32>
    %727 = arith.addf %722, %726 : vector<1x256xf32>
    %cst_107 = arith.constant 0.000000e+00 : f32
    %728 = vector.broadcast %cst_107 : f32 to vector<1x256xf32>
    %729 = arith.select %718, %727, %728 : vector<1x256xi1>, vector<1x256xf32>
    %730 = arith.addf %709, %729 : vector<1x256xf32>
    %731 = vector.extract_strided_slice %12 {offsets = [0, 18], sizes = [2, 238], strides = [1, 1]} : vector<2x256xf32> to vector<2x238xf32>
    %732 = vector.extract_strided_slice %12 {offsets = [0, 0], sizes = [2, 18], strides = [1, 1]} : vector<2x256xf32> to vector<2x18xf32>
    %733 = tpu.concatenate %731, %732 in 1 : vector<2x238xf32>, vector<2x18xf32> -> vector<2x256xf32>
    %c-2_i32_108 = arith.constant -2 : i32
    %734 = vector.broadcast %c-2_i32_108 : i32 to vector<1x256xi32>
    %735 = arith.cmpi sge, %14, %734 : vector<1x256xi32>
    %736 = arith.andi %625, %735 : vector<1x256xi1>
    %c14_i32_109 = arith.constant 14 : i32
    %737 = vector.broadcast %c14_i32_109 : i32 to vector<1x256xi32>
    %738 = arith.cmpi slt, %14, %737 : vector<1x256xi32>
    %739 = arith.andi %736, %738 : vector<1x256xi1>
    %c33 = arith.constant 33 : index
    %740 = memref.load %arg5[%c33] : memref<98xf32, #tpu.memory_space<smem>>
    %741 = vector.extract_strided_slice %733 {offsets = [0, 0], sizes = [1, 256], strides = [1, 1]} : vector<2x256xf32> to vector<1x256xf32>
    %742 = vector.broadcast %740 : f32 to vector<1x256xf32>
    %743 = arith.mulf %742, %741 : vector<1x256xf32>
    %c82 = arith.constant 82 : index
    %744 = memref.load %arg5[%c82] : memref<98xf32, #tpu.memory_space<smem>>
    %745 = vector.extract_strided_slice %733 {offsets = [1, 0], sizes = [1, 256], strides = [1, 1]} : vector<2x256xf32> to vector<1x256xf32>
    %746 = vector.broadcast %744 : f32 to vector<1x256xf32>
    %747 = arith.mulf %746, %745 : vector<1x256xf32>
    %748 = arith.addf %743, %747 : vector<1x256xf32>
    %cst_110 = arith.constant 0.000000e+00 : f32
    %749 = vector.broadcast %cst_110 : f32 to vector<1x256xf32>
    %750 = arith.select %739, %748, %749 : vector<1x256xi1>, vector<1x256xf32>
    %751 = arith.addf %730, %750 : vector<1x256xf32>
    %752 = vector.extract_strided_slice %12 {offsets = [0, 19], sizes = [2, 237], strides = [1, 1]} : vector<2x256xf32> to vector<2x237xf32>
    %753 = vector.extract_strided_slice %12 {offsets = [0, 0], sizes = [2, 19], strides = [1, 1]} : vector<2x256xf32> to vector<2x19xf32>
    %754 = tpu.concatenate %752, %753 in 1 : vector<2x237xf32>, vector<2x19xf32> -> vector<2x256xf32>
    %c-3_i32_111 = arith.constant -3 : i32
    %755 = vector.broadcast %c-3_i32_111 : i32 to vector<1x256xi32>
    %756 = arith.cmpi sge, %14, %755 : vector<1x256xi32>
    %757 = arith.andi %625, %756 : vector<1x256xi1>
    %c13_i32_112 = arith.constant 13 : i32
    %758 = vector.broadcast %c13_i32_112 : i32 to vector<1x256xi32>
    %759 = arith.cmpi slt, %14, %758 : vector<1x256xi32>
    %760 = arith.andi %757, %759 : vector<1x256xi1>
    %c34 = arith.constant 34 : index
    %761 = memref.load %arg5[%c34] : memref<98xf32, #tpu.memory_space<smem>>
    %762 = vector.extract_strided_slice %754 {offsets = [0, 0], sizes = [1, 256], strides = [1, 1]} : vector<2x256xf32> to vector<1x256xf32>
    %763 = vector.broadcast %761 : f32 to vector<1x256xf32>
    %764 = arith.mulf %763, %762 : vector<1x256xf32>
    %c83 = arith.constant 83 : index
    %765 = memref.load %arg5[%c83] : memref<98xf32, #tpu.memory_space<smem>>
    %766 = vector.extract_strided_slice %754 {offsets = [1, 0], sizes = [1, 256], strides = [1, 1]} : vector<2x256xf32> to vector<1x256xf32>
    %767 = vector.broadcast %765 : f32 to vector<1x256xf32>
    %768 = arith.mulf %767, %766 : vector<1x256xf32>
    %769 = arith.addf %764, %768 : vector<1x256xf32>
    %cst_113 = arith.constant 0.000000e+00 : f32
    %770 = vector.broadcast %cst_113 : f32 to vector<1x256xf32>
    %771 = arith.select %760, %769, %770 : vector<1x256xi1>, vector<1x256xf32>
    %772 = arith.addf %751, %771 : vector<1x256xf32>
    %c-2_i32_114 = arith.constant -2 : i32
    %773 = vector.broadcast %c-2_i32_114 : i32 to vector<1x256xi32>
    %774 = arith.cmpi sge, %13, %773 : vector<1x256xi32>
    %c14_i32_115 = arith.constant 14 : i32
    %775 = vector.broadcast %c14_i32_115 : i32 to vector<1x256xi32>
    %776 = arith.cmpi slt, %13, %775 : vector<1x256xi32>
    %777 = arith.andi %774, %776 : vector<1x256xi1>
    %778 = vector.extract_strided_slice %12 {offsets = [0, 29], sizes = [2, 227], strides = [1, 1]} : vector<2x256xf32> to vector<2x227xf32>
    %779 = vector.extract_strided_slice %12 {offsets = [0, 0], sizes = [2, 29], strides = [1, 1]} : vector<2x256xf32> to vector<2x29xf32>
    %780 = tpu.concatenate %778, %779 in 1 : vector<2x227xf32>, vector<2x29xf32> -> vector<2x256xf32>
    %c3_i32_116 = arith.constant 3 : i32
    %781 = vector.broadcast %c3_i32_116 : i32 to vector<1x256xi32>
    %782 = arith.cmpi sge, %14, %781 : vector<1x256xi32>
    %783 = arith.andi %777, %782 : vector<1x256xi1>
    %c19_i32_117 = arith.constant 19 : i32
    %784 = vector.broadcast %c19_i32_117 : i32 to vector<1x256xi32>
    %785 = arith.cmpi slt, %14, %784 : vector<1x256xi32>
    %786 = arith.andi %783, %785 : vector<1x256xi1>
    %c35 = arith.constant 35 : index
    %787 = memref.load %arg5[%c35] : memref<98xf32, #tpu.memory_space<smem>>
    %788 = vector.extract_strided_slice %780 {offsets = [0, 0], sizes = [1, 256], strides = [1, 1]} : vector<2x256xf32> to vector<1x256xf32>
    %789 = vector.broadcast %787 : f32 to vector<1x256xf32>
    %790 = arith.mulf %789, %788 : vector<1x256xf32>
    %c84 = arith.constant 84 : index
    %791 = memref.load %arg5[%c84] : memref<98xf32, #tpu.memory_space<smem>>
    %792 = vector.extract_strided_slice %780 {offsets = [1, 0], sizes = [1, 256], strides = [1, 1]} : vector<2x256xf32> to vector<1x256xf32>
    %793 = vector.broadcast %791 : f32 to vector<1x256xf32>
    %794 = arith.mulf %793, %792 : vector<1x256xf32>
    %795 = arith.addf %790, %794 : vector<1x256xf32>
    %cst_118 = arith.constant 0.000000e+00 : f32
    %796 = vector.broadcast %cst_118 : f32 to vector<1x256xf32>
    %797 = arith.select %786, %795, %796 : vector<1x256xi1>, vector<1x256xf32>
    %798 = arith.addf %772, %797 : vector<1x256xf32>
    %799 = vector.extract_strided_slice %12 {offsets = [0, 30], sizes = [2, 226], strides = [1, 1]} : vector<2x256xf32> to vector<2x226xf32>
    %800 = vector.extract_strided_slice %12 {offsets = [0, 0], sizes = [2, 30], strides = [1, 1]} : vector<2x256xf32> to vector<2x30xf32>
    %801 = tpu.concatenate %799, %800 in 1 : vector<2x226xf32>, vector<2x30xf32> -> vector<2x256xf32>
    %c2_i32_119 = arith.constant 2 : i32
    %802 = vector.broadcast %c2_i32_119 : i32 to vector<1x256xi32>
    %803 = arith.cmpi sge, %14, %802 : vector<1x256xi32>
    %804 = arith.andi %777, %803 : vector<1x256xi1>
    %c18_i32_120 = arith.constant 18 : i32
    %805 = vector.broadcast %c18_i32_120 : i32 to vector<1x256xi32>
    %806 = arith.cmpi slt, %14, %805 : vector<1x256xi32>
    %807 = arith.andi %804, %806 : vector<1x256xi1>
    %c36 = arith.constant 36 : index
    %808 = memref.load %arg5[%c36] : memref<98xf32, #tpu.memory_space<smem>>
    %809 = vector.extract_strided_slice %801 {offsets = [0, 0], sizes = [1, 256], strides = [1, 1]} : vector<2x256xf32> to vector<1x256xf32>
    %810 = vector.broadcast %808 : f32 to vector<1x256xf32>
    %811 = arith.mulf %810, %809 : vector<1x256xf32>
    %c85 = arith.constant 85 : index
    %812 = memref.load %arg5[%c85] : memref<98xf32, #tpu.memory_space<smem>>
    %813 = vector.extract_strided_slice %801 {offsets = [1, 0], sizes = [1, 256], strides = [1, 1]} : vector<2x256xf32> to vector<1x256xf32>
    %814 = vector.broadcast %812 : f32 to vector<1x256xf32>
    %815 = arith.mulf %814, %813 : vector<1x256xf32>
    %816 = arith.addf %811, %815 : vector<1x256xf32>
    %cst_121 = arith.constant 0.000000e+00 : f32
    %817 = vector.broadcast %cst_121 : f32 to vector<1x256xf32>
    %818 = arith.select %807, %816, %817 : vector<1x256xi1>, vector<1x256xf32>
    %819 = arith.addf %798, %818 : vector<1x256xf32>
    %820 = vector.extract_strided_slice %12 {offsets = [0, 31], sizes = [2, 225], strides = [1, 1]} : vector<2x256xf32> to vector<2x225xf32>
    %821 = vector.extract_strided_slice %12 {offsets = [0, 0], sizes = [2, 31], strides = [1, 1]} : vector<2x256xf32> to vector<2x31xf32>
    %822 = tpu.concatenate %820, %821 in 1 : vector<2x225xf32>, vector<2x31xf32> -> vector<2x256xf32>
    %c1_i32_122 = arith.constant 1 : i32
    %823 = vector.broadcast %c1_i32_122 : i32 to vector<1x256xi32>
    %824 = arith.cmpi sge, %14, %823 : vector<1x256xi32>
    %825 = arith.andi %777, %824 : vector<1x256xi1>
    %c17_i32_123 = arith.constant 17 : i32
    %826 = vector.broadcast %c17_i32_123 : i32 to vector<1x256xi32>
    %827 = arith.cmpi slt, %14, %826 : vector<1x256xi32>
    %828 = arith.andi %825, %827 : vector<1x256xi1>
    %c37 = arith.constant 37 : index
    %829 = memref.load %arg5[%c37] : memref<98xf32, #tpu.memory_space<smem>>
    %830 = vector.extract_strided_slice %822 {offsets = [0, 0], sizes = [1, 256], strides = [1, 1]} : vector<2x256xf32> to vector<1x256xf32>
    %831 = vector.broadcast %829 : f32 to vector<1x256xf32>
    %832 = arith.mulf %831, %830 : vector<1x256xf32>
    %c86 = arith.constant 86 : index
    %833 = memref.load %arg5[%c86] : memref<98xf32, #tpu.memory_space<smem>>
    %834 = vector.extract_strided_slice %822 {offsets = [1, 0], sizes = [1, 256], strides = [1, 1]} : vector<2x256xf32> to vector<1x256xf32>
    %835 = vector.broadcast %833 : f32 to vector<1x256xf32>
    %836 = arith.mulf %835, %834 : vector<1x256xf32>
    %837 = arith.addf %832, %836 : vector<1x256xf32>
    %cst_124 = arith.constant 0.000000e+00 : f32
    %838 = vector.broadcast %cst_124 : f32 to vector<1x256xf32>
    %839 = arith.select %828, %837, %838 : vector<1x256xi1>, vector<1x256xf32>
    %840 = arith.addf %819, %839 : vector<1x256xf32>
    %841 = vector.extract_strided_slice %12 {offsets = [0, 32], sizes = [2, 224], strides = [1, 1]} : vector<2x256xf32> to vector<2x224xf32>
    %842 = vector.extract_strided_slice %12 {offsets = [0, 0], sizes = [2, 32], strides = [1, 1]} : vector<2x256xf32> to vector<2x32xf32>
    %843 = tpu.concatenate %841, %842 in 1 : vector<2x224xf32>, vector<2x32xf32> -> vector<2x256xf32>
    %c0_i32_125 = arith.constant 0 : i32
    %844 = vector.broadcast %c0_i32_125 : i32 to vector<1x256xi32>
    %845 = arith.cmpi sge, %14, %844 : vector<1x256xi32>
    %846 = arith.andi %777, %845 : vector<1x256xi1>
    %c16_i32_126 = arith.constant 16 : i32
    %847 = vector.broadcast %c16_i32_126 : i32 to vector<1x256xi32>
    %848 = arith.cmpi slt, %14, %847 : vector<1x256xi32>
    %849 = arith.andi %846, %848 : vector<1x256xi1>
    %c38 = arith.constant 38 : index
    %850 = memref.load %arg5[%c38] : memref<98xf32, #tpu.memory_space<smem>>
    %851 = vector.extract_strided_slice %843 {offsets = [0, 0], sizes = [1, 256], strides = [1, 1]} : vector<2x256xf32> to vector<1x256xf32>
    %852 = vector.broadcast %850 : f32 to vector<1x256xf32>
    %853 = arith.mulf %852, %851 : vector<1x256xf32>
    %c87 = arith.constant 87 : index
    %854 = memref.load %arg5[%c87] : memref<98xf32, #tpu.memory_space<smem>>
    %855 = vector.extract_strided_slice %843 {offsets = [1, 0], sizes = [1, 256], strides = [1, 1]} : vector<2x256xf32> to vector<1x256xf32>
    %856 = vector.broadcast %854 : f32 to vector<1x256xf32>
    %857 = arith.mulf %856, %855 : vector<1x256xf32>
    %858 = arith.addf %853, %857 : vector<1x256xf32>
    %cst_127 = arith.constant 0.000000e+00 : f32
    %859 = vector.broadcast %cst_127 : f32 to vector<1x256xf32>
    %860 = arith.select %849, %858, %859 : vector<1x256xi1>, vector<1x256xf32>
    %861 = arith.addf %840, %860 : vector<1x256xf32>
    %862 = vector.extract_strided_slice %12 {offsets = [0, 33], sizes = [2, 223], strides = [1, 1]} : vector<2x256xf32> to vector<2x223xf32>
    %863 = vector.extract_strided_slice %12 {offsets = [0, 0], sizes = [2, 33], strides = [1, 1]} : vector<2x256xf32> to vector<2x33xf32>
    %864 = tpu.concatenate %862, %863 in 1 : vector<2x223xf32>, vector<2x33xf32> -> vector<2x256xf32>
    %c-1_i32_128 = arith.constant -1 : i32
    %865 = vector.broadcast %c-1_i32_128 : i32 to vector<1x256xi32>
    %866 = arith.cmpi sge, %14, %865 : vector<1x256xi32>
    %867 = arith.andi %777, %866 : vector<1x256xi1>
    %c15_i32_129 = arith.constant 15 : i32
    %868 = vector.broadcast %c15_i32_129 : i32 to vector<1x256xi32>
    %869 = arith.cmpi slt, %14, %868 : vector<1x256xi32>
    %870 = arith.andi %867, %869 : vector<1x256xi1>
    %c39 = arith.constant 39 : index
    %871 = memref.load %arg5[%c39] : memref<98xf32, #tpu.memory_space<smem>>
    %872 = vector.extract_strided_slice %864 {offsets = [0, 0], sizes = [1, 256], strides = [1, 1]} : vector<2x256xf32> to vector<1x256xf32>
    %873 = vector.broadcast %871 : f32 to vector<1x256xf32>
    %874 = arith.mulf %873, %872 : vector<1x256xf32>
    %c88 = arith.constant 88 : index
    %875 = memref.load %arg5[%c88] : memref<98xf32, #tpu.memory_space<smem>>
    %876 = vector.extract_strided_slice %864 {offsets = [1, 0], sizes = [1, 256], strides = [1, 1]} : vector<2x256xf32> to vector<1x256xf32>
    %877 = vector.broadcast %875 : f32 to vector<1x256xf32>
    %878 = arith.mulf %877, %876 : vector<1x256xf32>
    %879 = arith.addf %874, %878 : vector<1x256xf32>
    %cst_130 = arith.constant 0.000000e+00 : f32
    %880 = vector.broadcast %cst_130 : f32 to vector<1x256xf32>
    %881 = arith.select %870, %879, %880 : vector<1x256xi1>, vector<1x256xf32>
    %882 = arith.addf %861, %881 : vector<1x256xf32>
    %883 = vector.extract_strided_slice %12 {offsets = [0, 34], sizes = [2, 222], strides = [1, 1]} : vector<2x256xf32> to vector<2x222xf32>
    %884 = vector.extract_strided_slice %12 {offsets = [0, 0], sizes = [2, 34], strides = [1, 1]} : vector<2x256xf32> to vector<2x34xf32>
    %885 = tpu.concatenate %883, %884 in 1 : vector<2x222xf32>, vector<2x34xf32> -> vector<2x256xf32>
    %c-2_i32_131 = arith.constant -2 : i32
    %886 = vector.broadcast %c-2_i32_131 : i32 to vector<1x256xi32>
    %887 = arith.cmpi sge, %14, %886 : vector<1x256xi32>
    %888 = arith.andi %777, %887 : vector<1x256xi1>
    %c14_i32_132 = arith.constant 14 : i32
    %889 = vector.broadcast %c14_i32_132 : i32 to vector<1x256xi32>
    %890 = arith.cmpi slt, %14, %889 : vector<1x256xi32>
    %891 = arith.andi %888, %890 : vector<1x256xi1>
    %c40 = arith.constant 40 : index
    %892 = memref.load %arg5[%c40] : memref<98xf32, #tpu.memory_space<smem>>
    %893 = vector.extract_strided_slice %885 {offsets = [0, 0], sizes = [1, 256], strides = [1, 1]} : vector<2x256xf32> to vector<1x256xf32>
    %894 = vector.broadcast %892 : f32 to vector<1x256xf32>
    %895 = arith.mulf %894, %893 : vector<1x256xf32>
    %c89 = arith.constant 89 : index
    %896 = memref.load %arg5[%c89] : memref<98xf32, #tpu.memory_space<smem>>
    %897 = vector.extract_strided_slice %885 {offsets = [1, 0], sizes = [1, 256], strides = [1, 1]} : vector<2x256xf32> to vector<1x256xf32>
    %898 = vector.broadcast %896 : f32 to vector<1x256xf32>
    %899 = arith.mulf %898, %897 : vector<1x256xf32>
    %900 = arith.addf %895, %899 : vector<1x256xf32>
    %cst_133 = arith.constant 0.000000e+00 : f32
    %901 = vector.broadcast %cst_133 : f32 to vector<1x256xf32>
    %902 = arith.select %891, %900, %901 : vector<1x256xi1>, vector<1x256xf32>
    %903 = arith.addf %882, %902 : vector<1x256xf32>
    %904 = vector.extract_strided_slice %12 {offsets = [0, 35], sizes = [2, 221], strides = [1, 1]} : vector<2x256xf32> to vector<2x221xf32>
    %905 = vector.extract_strided_slice %12 {offsets = [0, 0], sizes = [2, 35], strides = [1, 1]} : vector<2x256xf32> to vector<2x35xf32>
    %906 = tpu.concatenate %904, %905 in 1 : vector<2x221xf32>, vector<2x35xf32> -> vector<2x256xf32>
    %c-3_i32_134 = arith.constant -3 : i32
    %907 = vector.broadcast %c-3_i32_134 : i32 to vector<1x256xi32>
    %908 = arith.cmpi sge, %14, %907 : vector<1x256xi32>
    %909 = arith.andi %777, %908 : vector<1x256xi1>
    %c13_i32_135 = arith.constant 13 : i32
    %910 = vector.broadcast %c13_i32_135 : i32 to vector<1x256xi32>
    %911 = arith.cmpi slt, %14, %910 : vector<1x256xi32>
    %912 = arith.andi %909, %911 : vector<1x256xi1>
    %c41 = arith.constant 41 : index
    %913 = memref.load %arg5[%c41] : memref<98xf32, #tpu.memory_space<smem>>
    %914 = vector.extract_strided_slice %906 {offsets = [0, 0], sizes = [1, 256], strides = [1, 1]} : vector<2x256xf32> to vector<1x256xf32>
    %915 = vector.broadcast %913 : f32 to vector<1x256xf32>
    %916 = arith.mulf %915, %914 : vector<1x256xf32>
    %c90 = arith.constant 90 : index
    %917 = memref.load %arg5[%c90] : memref<98xf32, #tpu.memory_space<smem>>
    %918 = vector.extract_strided_slice %906 {offsets = [1, 0], sizes = [1, 256], strides = [1, 1]} : vector<2x256xf32> to vector<1x256xf32>
    %919 = vector.broadcast %917 : f32 to vector<1x256xf32>
    %920 = arith.mulf %919, %918 : vector<1x256xf32>
    %921 = arith.addf %916, %920 : vector<1x256xf32>
    %cst_136 = arith.constant 0.000000e+00 : f32
    %922 = vector.broadcast %cst_136 : f32 to vector<1x256xf32>
    %923 = arith.select %912, %921, %922 : vector<1x256xi1>, vector<1x256xf32>
    %924 = arith.addf %903, %923 : vector<1x256xf32>
    %c-3_i32_137 = arith.constant -3 : i32
    %925 = vector.broadcast %c-3_i32_137 : i32 to vector<1x256xi32>
    %926 = arith.cmpi sge, %13, %925 : vector<1x256xi32>
    %c13_i32_138 = arith.constant 13 : i32
    %927 = vector.broadcast %c13_i32_138 : i32 to vector<1x256xi32>
    %928 = arith.cmpi slt, %13, %927 : vector<1x256xi32>
    %929 = arith.andi %926, %928 : vector<1x256xi1>
    %930 = vector.extract_strided_slice %12 {offsets = [0, 45], sizes = [2, 211], strides = [1, 1]} : vector<2x256xf32> to vector<2x211xf32>
    %931 = vector.extract_strided_slice %12 {offsets = [0, 0], sizes = [2, 45], strides = [1, 1]} : vector<2x256xf32> to vector<2x45xf32>
    %932 = tpu.concatenate %930, %931 in 1 : vector<2x211xf32>, vector<2x45xf32> -> vector<2x256xf32>
    %c3_i32_139 = arith.constant 3 : i32
    %933 = vector.broadcast %c3_i32_139 : i32 to vector<1x256xi32>
    %934 = arith.cmpi sge, %14, %933 : vector<1x256xi32>
    %935 = arith.andi %929, %934 : vector<1x256xi1>
    %c19_i32_140 = arith.constant 19 : i32
    %936 = vector.broadcast %c19_i32_140 : i32 to vector<1x256xi32>
    %937 = arith.cmpi slt, %14, %936 : vector<1x256xi32>
    %938 = arith.andi %935, %937 : vector<1x256xi1>
    %c42 = arith.constant 42 : index
    %939 = memref.load %arg5[%c42] : memref<98xf32, #tpu.memory_space<smem>>
    %940 = vector.extract_strided_slice %932 {offsets = [0, 0], sizes = [1, 256], strides = [1, 1]} : vector<2x256xf32> to vector<1x256xf32>
    %941 = vector.broadcast %939 : f32 to vector<1x256xf32>
    %942 = arith.mulf %941, %940 : vector<1x256xf32>
    %c91 = arith.constant 91 : index
    %943 = memref.load %arg5[%c91] : memref<98xf32, #tpu.memory_space<smem>>
    %944 = vector.extract_strided_slice %932 {offsets = [1, 0], sizes = [1, 256], strides = [1, 1]} : vector<2x256xf32> to vector<1x256xf32>
    %945 = vector.broadcast %943 : f32 to vector<1x256xf32>
    %946 = arith.mulf %945, %944 : vector<1x256xf32>
    %947 = arith.addf %942, %946 : vector<1x256xf32>
    %cst_141 = arith.constant 0.000000e+00 : f32
    %948 = vector.broadcast %cst_141 : f32 to vector<1x256xf32>
    %949 = arith.select %938, %947, %948 : vector<1x256xi1>, vector<1x256xf32>
    %950 = arith.addf %924, %949 : vector<1x256xf32>
    %951 = vector.extract_strided_slice %12 {offsets = [0, 46], sizes = [2, 210], strides = [1, 1]} : vector<2x256xf32> to vector<2x210xf32>
    %952 = vector.extract_strided_slice %12 {offsets = [0, 0], sizes = [2, 46], strides = [1, 1]} : vector<2x256xf32> to vector<2x46xf32>
    %953 = tpu.concatenate %951, %952 in 1 : vector<2x210xf32>, vector<2x46xf32> -> vector<2x256xf32>
    %c2_i32_142 = arith.constant 2 : i32
    %954 = vector.broadcast %c2_i32_142 : i32 to vector<1x256xi32>
    %955 = arith.cmpi sge, %14, %954 : vector<1x256xi32>
    %956 = arith.andi %929, %955 : vector<1x256xi1>
    %c18_i32_143 = arith.constant 18 : i32
    %957 = vector.broadcast %c18_i32_143 : i32 to vector<1x256xi32>
    %958 = arith.cmpi slt, %14, %957 : vector<1x256xi32>
    %959 = arith.andi %956, %958 : vector<1x256xi1>
    %c43 = arith.constant 43 : index
    %960 = memref.load %arg5[%c43] : memref<98xf32, #tpu.memory_space<smem>>
    %961 = vector.extract_strided_slice %953 {offsets = [0, 0], sizes = [1, 256], strides = [1, 1]} : vector<2x256xf32> to vector<1x256xf32>
    %962 = vector.broadcast %960 : f32 to vector<1x256xf32>
    %963 = arith.mulf %962, %961 : vector<1x256xf32>
    %c92 = arith.constant 92 : index
    %964 = memref.load %arg5[%c92] : memref<98xf32, #tpu.memory_space<smem>>
    %965 = vector.extract_strided_slice %953 {offsets = [1, 0], sizes = [1, 256], strides = [1, 1]} : vector<2x256xf32> to vector<1x256xf32>
    %966 = vector.broadcast %964 : f32 to vector<1x256xf32>
    %967 = arith.mulf %966, %965 : vector<1x256xf32>
    %968 = arith.addf %963, %967 : vector<1x256xf32>
    %cst_144 = arith.constant 0.000000e+00 : f32
    %969 = vector.broadcast %cst_144 : f32 to vector<1x256xf32>
    %970 = arith.select %959, %968, %969 : vector<1x256xi1>, vector<1x256xf32>
    %971 = arith.addf %950, %970 : vector<1x256xf32>
    %972 = vector.extract_strided_slice %12 {offsets = [0, 47], sizes = [2, 209], strides = [1, 1]} : vector<2x256xf32> to vector<2x209xf32>
    %973 = vector.extract_strided_slice %12 {offsets = [0, 0], sizes = [2, 47], strides = [1, 1]} : vector<2x256xf32> to vector<2x47xf32>
    %974 = tpu.concatenate %972, %973 in 1 : vector<2x209xf32>, vector<2x47xf32> -> vector<2x256xf32>
    %c1_i32_145 = arith.constant 1 : i32
    %975 = vector.broadcast %c1_i32_145 : i32 to vector<1x256xi32>
    %976 = arith.cmpi sge, %14, %975 : vector<1x256xi32>
    %977 = arith.andi %929, %976 : vector<1x256xi1>
    %c17_i32_146 = arith.constant 17 : i32
    %978 = vector.broadcast %c17_i32_146 : i32 to vector<1x256xi32>
    %979 = arith.cmpi slt, %14, %978 : vector<1x256xi32>
    %980 = arith.andi %977, %979 : vector<1x256xi1>
    %c44 = arith.constant 44 : index
    %981 = memref.load %arg5[%c44] : memref<98xf32, #tpu.memory_space<smem>>
    %982 = vector.extract_strided_slice %974 {offsets = [0, 0], sizes = [1, 256], strides = [1, 1]} : vector<2x256xf32> to vector<1x256xf32>
    %983 = vector.broadcast %981 : f32 to vector<1x256xf32>
    %984 = arith.mulf %983, %982 : vector<1x256xf32>
    %c93 = arith.constant 93 : index
    %985 = memref.load %arg5[%c93] : memref<98xf32, #tpu.memory_space<smem>>
    %986 = vector.extract_strided_slice %974 {offsets = [1, 0], sizes = [1, 256], strides = [1, 1]} : vector<2x256xf32> to vector<1x256xf32>
    %987 = vector.broadcast %985 : f32 to vector<1x256xf32>
    %988 = arith.mulf %987, %986 : vector<1x256xf32>
    %989 = arith.addf %984, %988 : vector<1x256xf32>
    %cst_147 = arith.constant 0.000000e+00 : f32
    %990 = vector.broadcast %cst_147 : f32 to vector<1x256xf32>
    %991 = arith.select %980, %989, %990 : vector<1x256xi1>, vector<1x256xf32>
    %992 = arith.addf %971, %991 : vector<1x256xf32>
    %993 = vector.extract_strided_slice %12 {offsets = [0, 48], sizes = [2, 208], strides = [1, 1]} : vector<2x256xf32> to vector<2x208xf32>
    %994 = vector.extract_strided_slice %12 {offsets = [0, 0], sizes = [2, 48], strides = [1, 1]} : vector<2x256xf32> to vector<2x48xf32>
    %995 = tpu.concatenate %993, %994 in 1 : vector<2x208xf32>, vector<2x48xf32> -> vector<2x256xf32>
    %c0_i32_148 = arith.constant 0 : i32
    %996 = vector.broadcast %c0_i32_148 : i32 to vector<1x256xi32>
    %997 = arith.cmpi sge, %14, %996 : vector<1x256xi32>
    %998 = arith.andi %929, %997 : vector<1x256xi1>
    %c16_i32_149 = arith.constant 16 : i32
    %999 = vector.broadcast %c16_i32_149 : i32 to vector<1x256xi32>
    %1000 = arith.cmpi slt, %14, %999 : vector<1x256xi32>
    %1001 = arith.andi %998, %1000 : vector<1x256xi1>
    %c45 = arith.constant 45 : index
    %1002 = memref.load %arg5[%c45] : memref<98xf32, #tpu.memory_space<smem>>
    %1003 = vector.extract_strided_slice %995 {offsets = [0, 0], sizes = [1, 256], strides = [1, 1]} : vector<2x256xf32> to vector<1x256xf32>
    %1004 = vector.broadcast %1002 : f32 to vector<1x256xf32>
    %1005 = arith.mulf %1004, %1003 : vector<1x256xf32>
    %c94 = arith.constant 94 : index
    %1006 = memref.load %arg5[%c94] : memref<98xf32, #tpu.memory_space<smem>>
    %1007 = vector.extract_strided_slice %995 {offsets = [1, 0], sizes = [1, 256], strides = [1, 1]} : vector<2x256xf32> to vector<1x256xf32>
    %1008 = vector.broadcast %1006 : f32 to vector<1x256xf32>
    %1009 = arith.mulf %1008, %1007 : vector<1x256xf32>
    %1010 = arith.addf %1005, %1009 : vector<1x256xf32>
    %cst_150 = arith.constant 0.000000e+00 : f32
    %1011 = vector.broadcast %cst_150 : f32 to vector<1x256xf32>
    %1012 = arith.select %1001, %1010, %1011 : vector<1x256xi1>, vector<1x256xf32>
    %1013 = arith.addf %992, %1012 : vector<1x256xf32>
    %1014 = vector.extract_strided_slice %12 {offsets = [0, 49], sizes = [2, 207], strides = [1, 1]} : vector<2x256xf32> to vector<2x207xf32>
    %1015 = vector.extract_strided_slice %12 {offsets = [0, 0], sizes = [2, 49], strides = [1, 1]} : vector<2x256xf32> to vector<2x49xf32>
    %1016 = tpu.concatenate %1014, %1015 in 1 : vector<2x207xf32>, vector<2x49xf32> -> vector<2x256xf32>
    %c-1_i32_151 = arith.constant -1 : i32
    %1017 = vector.broadcast %c-1_i32_151 : i32 to vector<1x256xi32>
    %1018 = arith.cmpi sge, %14, %1017 : vector<1x256xi32>
    %1019 = arith.andi %929, %1018 : vector<1x256xi1>
    %c15_i32_152 = arith.constant 15 : i32
    %1020 = vector.broadcast %c15_i32_152 : i32 to vector<1x256xi32>
    %1021 = arith.cmpi slt, %14, %1020 : vector<1x256xi32>
    %1022 = arith.andi %1019, %1021 : vector<1x256xi1>
    %c46 = arith.constant 46 : index
    %1023 = memref.load %arg5[%c46] : memref<98xf32, #tpu.memory_space<smem>>
    %1024 = vector.extract_strided_slice %1016 {offsets = [0, 0], sizes = [1, 256], strides = [1, 1]} : vector<2x256xf32> to vector<1x256xf32>
    %1025 = vector.broadcast %1023 : f32 to vector<1x256xf32>
    %1026 = arith.mulf %1025, %1024 : vector<1x256xf32>
    %c95 = arith.constant 95 : index
    %1027 = memref.load %arg5[%c95] : memref<98xf32, #tpu.memory_space<smem>>
    %1028 = vector.extract_strided_slice %1016 {offsets = [1, 0], sizes = [1, 256], strides = [1, 1]} : vector<2x256xf32> to vector<1x256xf32>
    %1029 = vector.broadcast %1027 : f32 to vector<1x256xf32>
    %1030 = arith.mulf %1029, %1028 : vector<1x256xf32>
    %1031 = arith.addf %1026, %1030 : vector<1x256xf32>
    %cst_153 = arith.constant 0.000000e+00 : f32
    %1032 = vector.broadcast %cst_153 : f32 to vector<1x256xf32>
    %1033 = arith.select %1022, %1031, %1032 : vector<1x256xi1>, vector<1x256xf32>
    %1034 = arith.addf %1013, %1033 : vector<1x256xf32>
    %1035 = vector.extract_strided_slice %12 {offsets = [0, 50], sizes = [2, 206], strides = [1, 1]} : vector<2x256xf32> to vector<2x206xf32>
    %1036 = vector.extract_strided_slice %12 {offsets = [0, 0], sizes = [2, 50], strides = [1, 1]} : vector<2x256xf32> to vector<2x50xf32>
    %1037 = tpu.concatenate %1035, %1036 in 1 : vector<2x206xf32>, vector<2x50xf32> -> vector<2x256xf32>
    %c-2_i32_154 = arith.constant -2 : i32
    %1038 = vector.broadcast %c-2_i32_154 : i32 to vector<1x256xi32>
    %1039 = arith.cmpi sge, %14, %1038 : vector<1x256xi32>
    %1040 = arith.andi %929, %1039 : vector<1x256xi1>
    %c14_i32_155 = arith.constant 14 : i32
    %1041 = vector.broadcast %c14_i32_155 : i32 to vector<1x256xi32>
    %1042 = arith.cmpi slt, %14, %1041 : vector<1x256xi32>
    %1043 = arith.andi %1040, %1042 : vector<1x256xi1>
    %c47 = arith.constant 47 : index
    %1044 = memref.load %arg5[%c47] : memref<98xf32, #tpu.memory_space<smem>>
    %1045 = vector.extract_strided_slice %1037 {offsets = [0, 0], sizes = [1, 256], strides = [1, 1]} : vector<2x256xf32> to vector<1x256xf32>
    %1046 = vector.broadcast %1044 : f32 to vector<1x256xf32>
    %1047 = arith.mulf %1046, %1045 : vector<1x256xf32>
    %c96 = arith.constant 96 : index
    %1048 = memref.load %arg5[%c96] : memref<98xf32, #tpu.memory_space<smem>>
    %1049 = vector.extract_strided_slice %1037 {offsets = [1, 0], sizes = [1, 256], strides = [1, 1]} : vector<2x256xf32> to vector<1x256xf32>
    %1050 = vector.broadcast %1048 : f32 to vector<1x256xf32>
    %1051 = arith.mulf %1050, %1049 : vector<1x256xf32>
    %1052 = arith.addf %1047, %1051 : vector<1x256xf32>
    %cst_156 = arith.constant 0.000000e+00 : f32
    %1053 = vector.broadcast %cst_156 : f32 to vector<1x256xf32>
    %1054 = arith.select %1043, %1052, %1053 : vector<1x256xi1>, vector<1x256xf32>
    %1055 = arith.addf %1034, %1054 : vector<1x256xf32>
    %1056 = vector.extract_strided_slice %12 {offsets = [0, 51], sizes = [2, 205], strides = [1, 1]} : vector<2x256xf32> to vector<2x205xf32>
    %1057 = vector.extract_strided_slice %12 {offsets = [0, 0], sizes = [2, 51], strides = [1, 1]} : vector<2x256xf32> to vector<2x51xf32>
    %1058 = tpu.concatenate %1056, %1057 in 1 : vector<2x205xf32>, vector<2x51xf32> -> vector<2x256xf32>
    %c-3_i32_157 = arith.constant -3 : i32
    %1059 = vector.broadcast %c-3_i32_157 : i32 to vector<1x256xi32>
    %1060 = arith.cmpi sge, %14, %1059 : vector<1x256xi32>
    %1061 = arith.andi %929, %1060 : vector<1x256xi1>
    %c13_i32_158 = arith.constant 13 : i32
    %1062 = vector.broadcast %c13_i32_158 : i32 to vector<1x256xi32>
    %1063 = arith.cmpi slt, %14, %1062 : vector<1x256xi32>
    %1064 = arith.andi %1061, %1063 : vector<1x256xi1>
    %c48 = arith.constant 48 : index
    %1065 = memref.load %arg5[%c48] : memref<98xf32, #tpu.memory_space<smem>>
    %1066 = vector.extract_strided_slice %1058 {offsets = [0, 0], sizes = [1, 256], strides = [1, 1]} : vector<2x256xf32> to vector<1x256xf32>
    %1067 = vector.broadcast %1065 : f32 to vector<1x256xf32>
    %1068 = arith.mulf %1067, %1066 : vector<1x256xf32>
    %c97 = arith.constant 97 : index
    %1069 = memref.load %arg5[%c97] : memref<98xf32, #tpu.memory_space<smem>>
    %1070 = vector.extract_strided_slice %1058 {offsets = [1, 0], sizes = [1, 256], strides = [1, 1]} : vector<2x256xf32> to vector<1x256xf32>
    %1071 = vector.broadcast %1069 : f32 to vector<1x256xf32>
    %1072 = arith.mulf %1071, %1070 : vector<1x256xf32>
    %1073 = arith.addf %1068, %1072 : vector<1x256xf32>
    %cst_159 = arith.constant 0.000000e+00 : f32
    %1074 = vector.broadcast %cst_159 : f32 to vector<1x256xf32>
    %1075 = arith.select %1064, %1073, %1074 : vector<1x256xi1>, vector<1x256xf32>
    %1076 = arith.addf %1055, %1075 : vector<1x256xf32>
    %cst_160 = arith.constant 0.000000e+00 : f32
    %1077 = vector.broadcast %cst_160 : f32 to vector<1x256xf32>
    %1078 = arith.subf %1077, %1076 : vector<1x256xf32>
    %1079 = math.exp %1078 : vector<1x256xf32>
    %cst_161 = arith.constant 1.000000e+00 : f32
    %1080 = vector.broadcast %cst_161 : f32 to vector<1x256xf32>
    %1081 = arith.addf %1080, %1079 : vector<1x256xf32>
    %cst_162 = arith.constant 1.000000e+00 : f32
    %1082 = vector.broadcast %cst_162 : f32 to vector<1x256xf32>
    %1083 = arith.divf %1082, %1081 : vector<1x256xf32>
    %1084 = vector.broadcast %1083 : vector<1x256xf32> to vector<32x256xf32>
    %1085 = arith.mulf %5, %1084 : vector<32x256xf32>
    %c0_163 = arith.constant 0 : index
    %c0_164 = arith.constant 0 : index
    %c0_165 = arith.constant 0 : index
    %1086 = vector.load %arg6[%c0_163, %c0_164, %c0_165] : memref<1x32x256xf32, #tpu.memory_space<vmem>>, vector<1x32x256xf32>
    %1087 = vector.shape_cast %1086 : vector<1x32x256xf32> to vector<32x256xf32>
    %1088 = vector.shape_cast %1085 : vector<32x256xf32> to vector<1x32x256xf32>
    tpu.vector_store %arg6[%c0_163, %c0_164, %c0_165], %1088 {strides = array<i32>} : memref<1x32x256xf32, #tpu.memory_space<vmem>>, vector<1x32x256xf32>,
    return
  }
  func.func @transform_0(%arg0: i32) -> (i32, i32) {
    %c0_i32 = arith.constant 0 : i32
    %c0_i32_0 = arith.constant 0 : i32
    %c0_i32_1 = arith.constant 0 : i32
    return %c0_i32, %c0_i32_0 : i32, i32
  }
  func.func @transform_1(%arg0: i32) -> (i32, i32) {
    %c0_i32 = arith.constant 0 : i32
    %c0_i32_0 = arith.constant 0 : i32
    %c0_i32_1 = arith.constant 0 : i32
    return %c0_i32, %c0_i32_0 : i32, i32
  }
  func.func @transform_2(%arg0: i32) -> (i32, i32, i32) {
    %c0_i32 = arith.constant 0 : i32
    %c0_i32_0 = arith.constant 0 : i32
    %c0_i32_1 = arith.constant 0 : i32
    return %arg0, %c0_i32, %c0_i32_0 : i32, i32, i32
  }
  func.func @transform_3(%arg0: i32) -> (i32, i32, i32) {
    %c0_i32 = arith.constant 0 : i32
    %c0_i32_0 = arith.constant 0 : i32
    %c0_i32_1 = arith.constant 0 : i32
    return %arg0, %c0_i32, %c0_i32_0 : i32, i32, i32
  }
  func.func @transform_4(%arg0: i32) -> i32 {
    %c0_i32 = arith.constant 0 : i32
    %c0_i32_0 = arith.constant 0 : i32
    return %c0_i32 : i32
  }
  func.func @transform_5(%arg0: i32) -> (i32, i32, i32) {
    %c0_i32 = arith.constant 0 : i32
    %c0_i32_0 = arith.constant 0 : i32
    %c0_i32_1 = arith.constant 0 : i32
    return %arg0, %c0_i32, %c0_i32_0 : i32, i32, i32
  }
}

</mosaic_0001>

<bundles_post_ra>
// kernel: cbam_forward.2
= control target key start
LH: loop header
LB: loop body
LE: loop exit
PB: predicated region body
PF: predicated region fallthrough
CT: control target
= control target key end

     0   :  { %s1832_s12 = smov 0   ;;  %s1834_s13 = smov 0   ;;  %s1928_s0 = inlined_call_operand.vmem [shape: f32[2,32,256], index: 0, kind: input, shape index: {}]   ;;  %s1929_s1 = inlined_call_operand.vmem [shape: f32[8,32], index: 1, kind: input, shape index: {}]   ;;  %s1930_s2 = inlined_call_operand.vmem [shape: f32[32,8], index: 2, kind: input, shape index: {}]   ;;  %s1931_s3 = inlined_call_operand.vmem [shape: f32[2,32,1], index: 3, kind: output, shape index: {}]  }
   0x1   :  { %s1836_s14 = smov 0  }
   0x2 LB: > { %s25_s15 = sadd.s32 1, %s1802_s13  ;;  %p1491_p0 = scmp.ge.s32.totalorder %s1806_s14, 1  ;;  %s1806_s14 = sphi %s1836_s14, %s13_s14   ;;  %s1802_s13 = sphi %s1834_s13, %s1933_s13   ;;  %s1798_s12 = sphi %s1832_s12, %s1932_s12  }
   0x3   : > { %p27_p1 = scmp.ge.s32.totalorder %s25_s15, 2  ;;  %p156_p2 = scmp.lt.s32.totalorder %s1806_s14, 3 }
   0x5   : > { %s1935_s15 = smov (%p27_p1, %s25_s15), 0  ;;  %p157_p3 = pnand %p1491_p0, %p156_p2 }
   0x6   : > { %p185_p4 = scmp.lt.s32.totalorder (!%p157_p3), %s1798_s12, 1  ;;  %v1808_v16 = vmov (!%p157_p3), 0.0|0.0   ;;  %vm1809_vm0 = vmmov (!%p157_p3), 0   ;;  %v1810_v17 = vmov (!%p157_p3), 0.0   ;;  %v287_v18 = vld [vmem:[%s1929_s1] sm:$0xff] (!%p157_p3)  ;;  %vm288_vm1 = vcmask (!%p157_p3), 261120  }
   0x7   : > { %160 = sbr.rel (%p157_p3) target bundleno = 847 (0x34f), region = 32  ;;  %1674 = vmatprep.subr.bf16.mxu0 (!%p157_p3), %v1808_v16  ;;  %1568 = vmatprep.mubr.msk.f32.mxu0 (!%p157_p3), %vm1809_vm0, %v1810_v17  ;;  %v290_v19 = vsel (!%p157_p3), %vm288_vm1, %v287_v18, 0  ;;  %vm282_vm2 = vcmask (!%p157_p3), 7168   ;;  %vm782_vm3 = vcmask (!%p157_p3), 64512   ;;  %s1811_s30 = smov (!%p157_p3), 127  }
   0x8   : > { %v1862_v23 = vand.u32 (!%p157_p3), 4294901760, %v290_v19 }
   0xa   : > { %v362_v29 = vsub.f32 (!%p157_p3), %v290_v19, %v1862_v23 }
   0xc   : > { %v363_v35 = vand.u32 (!%p157_p3), 4294901760, %v362_v29 }
   0xe   : > { %s1937_s12 = smov (!%p185_p4, %s1798_s12), 1  ;;  %v364_v46 = vsub.f32 %v362_v29, %v363_v35 }
   0xf   : > { %s1498_s16 = sshll.u32 %s1937_s12, 6  ;;  %s1499_s4 = sshll.u32 %s1937_s12, 5 }
  0x10   : > { %s192_s19 = scalar_lea.vmem %s1928_s0, %s1498_s16  ;;  %v365_v55 = vand.u32 4294901760, %v364_v46  ;;  %s198_s7 = scalar_lea.vmem %s1931_s3, %s1499_s4 }
  0x11   : > { %v211_v0 = vld [vmem:[%s192_s19] sm:$0xff]  ;;  %v212_v1 = vld [vmem:[%s192_s19 + $0x8] sm:$0xff]  ;;  %v213_v2 = vld [vmem:[%s192_s19 + $0x10] sm:$0xff] }
  0x12   : > { %v239_v3 = vmax.f32 %v211_v0, %v212_v1  ;;  %v235_v4 = vadd.f32 %v212_v1, %v211_v0  ;;  %v214_v5 = vld [vmem:[%s192_s19 + $0x18] sm:$0xff]  ;;  %v217_v8 = vld [vmem:[%s192_s19 + $0x30] sm:$0xff]  ;;  %v215_v10 = vld [vmem:[%s192_s19 + $0x20] sm:$0xff] }
  0x13   : > { %v240_v6 = vmax.f32 %v213_v2, %v214_v5  ;;  %v236_v7 = vadd.f32 %v214_v5, %v213_v2  ;;  %v218_v9 = vld [vmem:[%s192_s19 + $0x38] sm:$0xff]  ;;  %v216_v11 = vld [vmem:[%s192_s19 + $0x28] sm:$0xff]  ;;  %v778_v5 = vld [vmem:[%s1930_s2] sm:$0xff] }
  0x14   : > { %274 = vmax.xlane.f32.xlu1 %v239_v3  ;;  %258 = vadd.xlane.f32.xlu0 %v235_v4  ;;  %v238_v12 = vadd.f32 %v218_v9, %v217_v8  ;;  %v237_v13 = vadd.f32 %v216_v11, %v215_v10  ;;  %v242_v14 = vmax.f32 %v217_v8, %v218_v9 }
  0x15   : > { %v241_v15 = vmax.f32 %v215_v10, %v216_v11 }
  0x18   : > { %276 = vmax.xlane.f32.xlu1 %v240_v6  ;;  %260 = vadd.xlane.f32.xlu0 %v236_v7  ;;  %v784_v6 = vsel %vm782_vm3, %v778_v5, 0 }
  0x19   : > { %v1896_v7 = vand.u32 4294901760, %v784_v6 }
  0x1b   : > { %v862_v8 = vsub.f32 %v784_v6, %v1896_v7 }
  0x1c   : > { %264 = vadd.xlane.f32.xlu1 %v238_v12  ;;  %262 = vadd.xlane.f32.xlu0 %v237_v13  ;;  %v779_v12 = vld [vmem:[%s1930_s2 + $0x8] sm:$0xff]  ;;  %v780_v13 = vld [vmem:[%s1930_s2 + $0x10] sm:$0xff] }
  0x1d   : > { %v863_v9 = vand.u32 4294901760, %v862_v8 }
  0x1f   : > { %v864_v10 = vsub.f32 %v862_v8, %v863_v9 }
  0x20   : > { %280 = vmax.xlane.f32.xlu1 %v242_v14  ;;  %278 = vmax.xlane.f32.xlu0 %v241_v15  ;;  %v787_v14 = vsel %vm782_vm3, %v779_v12, 0  ;;  %v790_v15 = vsel %vm782_vm3, %v780_v13, 0 }
  0x21   : > { %v865_v11 = vand.u32 4294901760, %v864_v10  ;;  %v881_v18 = vand.u32 4294901760, %v790_v15 }
  0x23   : > { %1628 = vmatprep.mubr.f32.mxu1 %v865_v11 }
  0xa1   : > { %v275_v20 = vpop.xlane.xlu1 %274  ;;  %v259_v21 = vpop.xlane.xlu0 %258 }
  0xa2   : > { %v266_v22 = vmul.f32 0.00390625, %v259_v21 }
  0xa4   : > { %v283_v24 = vsel %vm282_vm2, %v266_v22, %v275_v20  ;;  %v882_v22 = vsub.f32 %v790_v15, %v881_v18 }
  0xa5   : > { %v293_v25 = vand.u32 4294901760, %v283_v24  ;;  %v277_v26 = vpop.xlane.xlu1 %276  ;;  %v261_v27 = vpop.xlane.xlu0 %260 }
  0xa6   : > { %v267_v28 = vmul.f32 0.00390625, %v261_v27 }
  0xa7   : > { %v373_v30 = vsub.f32 %v283_v24, %v293_v25 }
  0xa8   : > { %v284_v31 = vsel %vm282_vm2, %v267_v28, %v277_v26 }
  0xa9   : > { %v296_v32 = vand.u32 4294901760, %v284_v31  ;;  %v265_v33 = vpop.xlane.xlu1 %264  ;;  %v263_v34 = vpop.xlane.xlu0 %262  ;;  %v374_v36 = vand.u32 4294901760, %v373_v30 }
  0xaa   : > { %v269_v39 = vmul.f32 0.00390625, %v265_v33  ;;  %v268_v40 = vmul.f32 0.00390625, %v263_v34 }
  0xab   : > { %v380_v37 = vsub.f32 %v284_v31, %v296_v32  ;;  %v1675_v38 = vpack.c.bf16 %v296_v32, %v293_v25  ;;  %v375_v49 = vsub.f32 %v373_v30, %v374_v36  ;;  %v883_v25 = vand.u32 4294901760, %v882_v22 }
  0xad   : > { %v381_v41 = vand.u32 4294901760, %v380_v37  ;;  %v281_v42 = vpop.xlane.xlu1 %280  ;;  %1676 = vmatpush3.bf16.msra.mxu0 %v1675_v38  ;;  %v279_v43 = vpop.xlane.xlu0 %278  ;;  %v376_v58 = vand.u32 4294901760, %v375_v49  ;;  %v1687_v1 = vpack.c.bf16 %v380_v37, %v373_v30 }
  0xae   : > { %v286_v44 = vsel %vm282_vm2, %v269_v39, %v281_v42  ;;  %v285_v45 = vsel %vm282_vm2, %v268_v40, %v279_v43  ;;  %1677 = vmatprep.subr.bf16.mxu0 %v1808_v16 }
  0xaf   : > { %v302_v47 = vand.u32 4294901760, %v286_v44  ;;  %v299_v48 = vand.u32 4294901760, %v285_v45  ;;  %v382_v50 = vsub.f32 %v380_v37, %v381_v41  ;;  %v1699_v3 = vpack.c.bf16 %v381_v41, %v374_v36 }
  0xb1   : > { %v394_v51 = vsub.f32 %v286_v44, %v302_v47  ;;  %v387_v52 = vsub.f32 %v285_v45, %v299_v48  ;;  %v1678_v53 = vpack.c.bf16 %v302_v47, %v299_v48  ;;  %v383_v54 = vand.u32 4294901760, %v382_v50 }
  0xb3   : > { %v395_v56 = vand.u32 4294901760, %v394_v51  ;;  %v388_v57 = vand.u32 4294901760, %v387_v52  ;;  %1679 = vmatpush3.bf16.msra.mxu0 %v1678_v53  ;;  %v1681_v61 = vpack.c.bf16 %v383_v54, %v376_v58  ;;  %v1690_v2 = vpack.c.bf16 %v394_v51, %v387_v52 }
  0xb4   : > { %1680 = vmatprep.subr.bf16.mxu0 %v1808_v16 }
  0xb5   : > { %v396_v59 = vsub.f32 %v394_v51, %v395_v56  ;;  %v389_v60 = vsub.f32 %v387_v52, %v388_v57  ;;  %v1702_v4 = vpack.c.bf16 %v395_v56, %v388_v57 }
  0xb6   : > { %1569 = vmatmul.mubr.f32.vlgmr.msra.gmra.mrb[0].mxu0 %v365_v55 }
  0xb7   : > { %v397_v62 = vand.u32 4294901760, %v396_v59  ;;  %v390_v63 = vand.u32 4294901760, %v389_v60  ;;  %1682 = vmatpush3.bf16.msra.mxu0 %v1681_v61  ;;  %1579 = vmatprep.mubr.msk.f32.mxu0 %vm1809_vm0, %v1810_v17 }
  0xb8   : > { %1683 = vmatprep.subr.bf16.mxu0 %v1808_v16 }
  0xb9   : > { %v1684_v0 = vpack.c.bf16 %v397_v62, %v390_v63 }
  0xbb   : > { %1685 = vmatpush3.bf16.msra.mxu0 %v1684_v0 }
  0xbc   : > { %1686 = vmatprep.subr.bf16.mxu0 %v1808_v16 }
  0xbe   : > { %1580 = vmatmul.mubr.f32.vlgmr.msra.gmra.mrb[0].mxu0 %v1862_v23 }
  0xbf   : > { %1688 = vmatpush3.bf16.msra.mxu0 %v1687_v1  ;;  %1590 = vmatprep.mubr.msk.f32.mxu0 %vm1809_vm0, %v1810_v17 }
  0xc0   : > { %1689 = vmatprep.subr.bf16.mxu0 %v1808_v16 }
  0xc3   : > { %1691 = vmatpush3.bf16.msra.mxu0 %v1690_v2 }
  0xc4   : > { %1692 = vmatprep.subr.bf16.mxu0 %v1808_v16 }
  0xc6   : > { %1591 = vmatmul.mubr.f32.vlgmr.msra.gmra.mrb[0].mxu0 %v362_v29  ;;  %v884_v29 = vsub.f32 %v882_v22, %v883_v25 }
  0xc7   : > { %1694 = vmatpush3.bf16.msra.mxu0 %v1675_v38  ;;  %1601 = vmatprep.mubr.msk.f32.mxu0 %vm1809_vm0, %v1810_v17 }
  0xc8   : > { %1695 = vmatprep.subr.bf16.mxu0 %v1808_v16 }
  0xcb   : > { %1697 = vmatpush3.bf16.msra.mxu0 %v1678_v53 }
  0xcc   : > { %1698 = vmatprep.subr.bf16.mxu0 %v1808_v16 }
  0xce   : > { %1602 = vmatmul.mubr.f32.vlgmr.msra.gmra.mrb[0].mxu0 %v363_v35  ;;  %v885_v35 = vand.u32 4294901760, %v884_v29 }
  0xcf   : > { %1700 = vmatpush3.bf16.msra.mxu0 %v1699_v3  ;;  %1612 = vmatprep.mubr.msk.f32.mxu0 %vm1809_vm0, %v1810_v17 }
  0xd0   : > { %1701 = vmatprep.subr.bf16.mxu0 %v1808_v16 }
  0xd3   : > { %1703 = vmatpush3.bf16.msra.mxu0 %v1702_v4 }
  0xd4   : > { %1704 = vmatprep.subr.bf16.mxu0 %v1808_v16 }
  0xd6   : > { %1613 = vmatmul.mubr.f32.vlgmr.msra.gmra.mrb[0].mxu0 %v1862_v23 }
  0xd7   : > { %1706 = vmatpush3.bf16.msra.mxu0 %v1675_v38  ;;  %1623 = vmatprep.mubr.msk.f32.mxu0 %vm1809_vm0, %v1810_v17  ;;  %v871_v17 = vand.u32 4294901760, %v787_v14 }
  0xd8   : > { %1707 = vmatprep.subr.bf16.mxu0 %v1808_v16  ;;  %v781_v16 = vld [vmem:[%s1930_s2 + $0x18] sm:$0xff] }
  0xd9   : > { %v793_v19 = vsel %vm782_vm3, %v781_v16, 0  ;;  %v872_v20 = vsub.f32 %v787_v14, %v871_v17 }
  0xda   : > { %v891_v21 = vand.u32 4294901760, %v793_v19 }
  0xdb   : > { %1709 = vmatpush3.bf16.msra.mxu0 %v1678_v53 }
  0xdc   : > { %v892_v24 = vsub.f32 %v793_v19, %v891_v21 }
  0xde   : > { %1624 = vmatmul.mubr.f32.vlgmr.msra.gmra.mrb[0].mxu0 %v1862_v23  ;;  %v873_v23 = vand.u32 4294901760, %v872_v20  ;;  %v893_v27 = vand.u32 4294901760, %v892_v24 }
  0xe0   : > { %v874_v26 = vsub.f32 %v872_v20, %v873_v23  ;;  %v894_v34 = vsub.f32 %v892_v24, %v893_v27 }
  0xe2   : > { %v875_v33 = vand.u32 4294901760, %v874_v26  ;;  %v895_v37 = vand.u32 4294901760, %v894_v34 }
 0x1b1   : > { %v773_v28 = vpop.f32.mrb[0].mxu0 }
 0x1b2   : > { %v777_v30 = vmax.f32 %v773_v28, 0.0  ;;  %v1625_v31 = vpop.f32.mrb[1].mxu0 }
 0x1b4   : > { %v796_v32 = vand.u32 4294901760, %v777_v30 }
 0x1b6   : > { %v903_v36 = vsub.f32 %v777_v30, %v796_v32  ;;  %1626 = vmatprep.subr.mxu1 %v796_v32 }
 0x1b7   : > { %1627 = vmatpush3.msra.mxu1 %v796_v32 }
 0x1b8   : > { %1629 = vmatmul.mubr.f32.vlgmr.msra.gmra.mrb[0].mxu1 %v875_v33  ;;  %v904_v38 = vand.u32 4294901760, %v903_v36 }
 0x1b9   : > { %1631 = vmatprep.mubr.f32.mxu1 %v885_v35 }
 0x1ba   : > { %v905_v39 = vsub.f32 %v903_v36, %v904_v38 }
 0x1bc   : > { %1632 = vmatmul.mubr.f32.gmra.mrb[2].mxu1 %v895_v37  ;;  %v906_v40 = vand.u32 4294901760, %v905_v39 }
 0x1bd   : > { %1636 = vmatprep.mubr.f32.mxu1 %v1896_v7 }
 0x1be   : > { %1634 = vmatprep.subr.mxu1 %v906_v40 }
 0x1bf   : > { %1635 = vmatpush3.msra.mxu1 %v906_v40 }
 0x1c0   : > { %1637 = vmatmul.mubr.f32.vlgmr.msra.gmra.mrb[0].mxu1 %v871_v17  ;;  %1642 = vmatprep.subr.mxu1 %v903_v36 }
 0x1c1   : > { %1643 = vmatpush3.msra.mxu1 %v903_v36  ;;  %1639 = vmatprep.mubr.f32.mxu1 %v881_v18 }
 0x1c2   : > { %1650 = vmatprep.subr.mxu1 %v796_v32 }
 0x1c4   : > { %1640 = vmatmul.mubr.f32.gmra.mrb[2].mxu1 %v891_v21 }
 0x1c5   : > { %1644 = vmatprep.mubr.f32.mxu1 %v862_v8 }
 0x1c8   : > { %1645 = vmatmul.mubr.f32.vlgmr.msra.gmra.mrb[0].mxu1 %v872_v20 }
 0x1c9   : > { %1651 = vmatpush3.msra.mxu1 %v796_v32  ;;  %1647 = vmatprep.mubr.f32.mxu1 %v882_v22 }
 0x1ca   : > { %1658 = vmatprep.subr.mxu1 %v904_v38 }
 0x1cc   : > { %1648 = vmatmul.mubr.f32.gmra.mrb[2].mxu1 %v892_v24 }
 0x1cd   : > { %1652 = vmatprep.mubr.f32.mxu1 %v863_v9 }
 0x1d0   : > { %1653 = vmatmul.mubr.f32.vlgmr.msra.gmra.mrb[0].mxu1 %v873_v23 }
 0x1d1   : > { %1659 = vmatpush3.msra.mxu1 %v904_v38  ;;  %1655 = vmatprep.mubr.f32.mxu1 %v883_v25 }
 0x1d2   : > { %1666 = vmatprep.subr.mxu1 %v796_v32 }
 0x1d4   : > { %1656 = vmatmul.mubr.f32.gmra.mrb[2].mxu1 %v893_v27 }
 0x1d5   : > { %1660 = vmatprep.mubr.f32.mxu1 %v1896_v7 }
 0x1d8   : > { %1661 = vmatmul.mubr.f32.vlgmr.msra.gmra.mrb[0].mxu1 %v871_v17 }
 0x1d9   : > { %1667 = vmatpush3.msra.mxu1 %v796_v32  ;;  %1663 = vmatprep.mubr.f32.mxu1 %v881_v18 }
 0x1dc   : > { %1664 = vmatmul.mubr.f32.gmra.mrb[2].mxu1 %v891_v21 }
 0x1dd   : > { %1668 = vmatprep.mubr.f32.mxu1 %v1896_v7 }
 0x1e0   : > { %1669 = vmatmul.mubr.f32.vlgmr.msra.gmra.mrb[0].mxu1 %v871_v17 }
 0x1e1   : > { %1671 = vmatprep.mubr.f32.mxu1 %v881_v18 }
 0x1e4   : > { %1672 = vmatmul.mubr.f32.gmra.mrb[2].mxu1 %v891_v21 }
 0x2b3   : > { %v1670_v41 = vpop.f32.mrb[0].mxu1 }
 0x2b4   : > { %1376 = vrot.lane.b32.xlu1 %v1670_v41, %s1811_s30  ;;  %v1348_v42 = vpop.f32.mrb[1].mxu1 }
 0x2b5   : > { %1374 = vrot.lane.b32.xlu0 %v1348_v42, %s1811_s30 }
 0x2b7   : > { %v1673_v43 = vpop.f32.mrb[2].mxu1 }
 0x2b8   : > { %v1360_v44 = vpop.f32.mrb[3].mxu1 }
 0x2b9   : > { %1378 = vrot.lane.b32.xlu1 %v1360_v44, %s1811_s30 }
 0x2bd   : > { %1380 = vrot.lane.b32.xlu1 %v1673_v43, %s1811_s30 }
 0x326   : > { %v1377_v45 = vpop.permute.xlu1 %1376 }
 0x327   : > { %v1387_v46 = vadd.f32 %v1670_v41, %v1377_v45  ;;  %v1375_v47 = vpop.permute.xlu0 %1374 }
 0x328   : > { %v1386_v48 = vadd.f32 %v1375_v47, %v1348_v42 }
 0x329   : > { %v1391_v49 = vsub.f32 0.0, %v1387_v46 }
 0x32a   : > { %v1390_v50 = vsub.f32 0.0, %v1386_v48 }
 0x32b   : > { %v1396_v51 = vmul.f32 1.442695, %v1391_v49  ;;  %v1379_v52 = vpop.permute.xlu1 %1378 }
 0x32c   : > { %v1394_v53 = vmul.f32 1.442695, %v1390_v50  ;;  %v1388_v54 = vadd.f32 %v1379_v52, %v1360_v44 }
 0x32d   : > { %1768 = vpow2.f32 %v1396_v51 }
 0x32e   : > { %1770 = vpow2.f32 %v1394_v53  ;;  %v1392_v55 = vsub.f32 0.0, %v1388_v54 }
 0x32f   : > { %v1381_v56 = vpop.permute.xlu1 %1380 }
 0x330   : > { %v1398_v57 = vmul.f32 1.442695, %v1392_v55  ;;  %v1389_v58 = vadd.f32 %v1673_v43, %v1381_v56 }
 0x332   : > { %1772 = vpow2.f32 %v1398_v57  ;;  %v1393_v59 = vsub.f32 0.0, %v1389_v58 }
 0x334   : > { %v1400_v60 = vmul.f32 1.442695, %v1393_v59 }
 0x336   : > { %1774 = vpow2.f32 %v1400_v60 }
 0x337   : > { %v1769_v61 = vpop.eup %1768 }
 0x338   : > { %v1771_v62 = vpop.eup %1770  ;;  %v1403_v63 = vadd.f32 1.0, %v1769_v61 }
 0x339   : > { %v1402_v0 = vadd.f32 1.0, %v1771_v62 }
 0x33a   : > { %1776 = vrcp.f32 %v1403_v63 }
 0x33b   : > { %1778 = vrcp.f32 %v1402_v0 }
 0x33c   : > { %v1773_v1 = vpop.eup %1772 }
 0x33d   : > { %v1404_v2 = vadd.f32 1.0, %v1773_v1 }
 0x33f   : > { %1780 = vrcp.f32 %v1404_v2 }
 0x340   : > { %v1775_v3 = vpop.eup %1774 }
 0x341   : > { %v1405_v4 = vadd.f32 1.0, %v1775_v3 }
 0x343   : > { %1782 = vrcp.f32 %v1405_v4 }
 0x344   : > { %v1777_v5 = vpop.eup %1776 }
 0x345   : > { %v1779_v6 = vpop.eup %1778  ;;  %1415 = vst.msk [vmem:[%s198_s7 + $0x8] sm:$0xff] %vm282_vm2, %v1777_v5 }
 0x346   : > { %1414 = vst.msk [vmem:[%s198_s7] sm:$0xff] %vm282_vm2, %v1779_v6 }
 0x349   : > { %v1781_v7 = vpop.eup %1780 }
 0x34a   : > { %1416 = vst.msk [vmem:[%s198_s7 + $0x10] sm:$0xff] %vm282_vm2, %v1781_v7 }
 0x34d   : > { %v1783_v8 = vpop.eup %1782 }
 0x34e   : > { %1417 = vst.msk [vmem:[%s198_s7 + $0x18] sm:$0xff] %vm282_vm2, %v1783_v8 }
 0x34f PF: > { %s13_s14 = sadd.s32 1, %s1806_s14   ;;  %s1932_s12 = smov %s1802_s13 }
 0x350   : > { %p10_p5 = scmp.ge.s32.totalorder %s13_s14, 4   ;;  %s1933_s13 = smov %s1935_s15 }
 0x352   :  { %12 = sbr.rel (!%p10_p5) target bundleno = 2 (0x2), region = 70 }

// kernel: cbam_forward.3
= control target key start
LH: loop header
LB: loop body
LE: loop exit
PB: predicated region body
PF: predicated region fallthrough
CT: control target
= control target key end

     0   :  { %s5053_s0 = inlined_call_operand.vmem [shape: s32[1,256], index: 0, kind: input, shape index: {}]   ;;  %s5054_s1 = inlined_call_operand.vmem [shape: s32[1,256], index: 1, kind: input, shape index: {}]   ;;  %s5055_s2 = inlined_call_operand.vmem [shape: f32[2,32,256], index: 2, kind: input, shape index: {}]   ;;  %s5056_s3 = inlined_call_operand.vmem [shape: f32[2,32,1], index: 3, kind: input, shape index: {}]   ;;  %s5057_s4 = inlined_call_operand.vmem [shape: f32[98], index: 4, kind: input, shape index: {}]   ;;  %s5058_s5 = inlined_call_operand.vmem [shape: f32[2,32,256], index: 5, kind: output, shape index: {}]  }
   0x1   :  { %5087 = sst [smem:[#allocation15_spill]] %s5053_s0 }
   0x2   :  { %5088 = sst [smem:[#allocation16_spill]] %s5054_s1 }
   0x3   :  { %5089 = sst [smem:[#allocation17_spill]] %s5055_s2 }
   0x4   :  { %5090 = sst [smem:[#allocation18_spill]] %s5056_s3 }
   0x5   :  { %5091 = sst [smem:[#allocation19_spill]] %s5057_s4 }
   0x6   :  { %5092 = sst [smem:[#allocation20_spill]] %s5058_s5 }
   0x7   :  { %10 = vsyncpa [#allocation3], 0  ;;  %s3132_s18 = smov 0  }
   0x8 LB: > { %5093 = sst [smem:[#allocation5_spill]] %s3049_s18  ;;  %s2833_s19 = sadd.s32 4294967295, %s3049_s18   ;;  %s3049_s18 = sphi %s3132_s18, %s16_s18  }
   0x9   : > { %p2835_p0 = scmp.ge.s32.totalorder %s3049_s18, 1  ;;  %p162_p1 = scmp.lt.s32.totalorder %s3049_s18, 3 }
   0xa   : > { %s5094_s4 = sld [smem:[#allocation19_spill]]  ;;  %p2956_p3 = scmp.eq.s32.totalorder %s2833_s19, 0 }
   0xb   : > { %p3143_p2 = pnand %p2835_p0, %p162_p1 }
   0xd   : > { %p2952_p4 = pneg %p3143_p2 }
   0xf   : > { %p2953_p5 = pnand %p2956_p3, %p2952_p4 }
  0x10   : > { %s181_s22 = sshll.u32 %s5094_s4, 4  ;;  %s182_s22 = int_to_ptr.vmem [resolvable:$true] %s181_s22 }
  0x11   : > { %s3024_s24 = scalar_lea.vmem %s182_s22, 16  ;;  %p3026_p7 = pneg %p2953_p5 }
  0x12   : > { %p3025_p6 = scmp.ne.s32.totalorder %s182_s22, %s3024_s24  ;;  %p3032_p10 = scmp.lt.s32.totalorder %s182_s22, %s182_s22 }
  0x13   : > { %p3033_p11 = scmp.lt.s32.totalorder %s3024_s24, %s3024_s24 }
  0x14   : > { %p3027_p8 = pnand %p3026_p7, %p3025_p6 }
  0x15   : > { %p3034_p12 = por %p3033_p11, %p3032_p10 }
  0x16   : > { %p3028_p9 = pneg %p3027_p8 }
  0x18   : > { %p3035_p13 = pnand %p3034_p12, %p3028_p9 }
  0x1a   : > { %3038 = shalt.err (!%p3035_p13)
}
  0x1b   : > { %s3051_s25 = smov [#allocation2]   ;;  %210 = sbr.rel (%p3143_p2) target bundleno = 587 (0x24b), region = 40 }
  0x1c   : > { %2955 = dma.vmem_to_smem (!%p2953_p5), %s182_s22, 16, %s3051_s25, [#allocation3]  }
  0x22   : > { %3044 = dma.done.wait (%p2956_p3), [#allocation3], 16  }
  0x23   : > { %3046 = vsyncadd (%p2956_p3), [#allocation3], 4294967280 }
  0x24   : > { %216 = sfence }
  0x25   : > { %p244_p0 = scmp.lt.s32.totalorder %s2833_s19, 1  ;;  %v3052_v0 = vmov 0   ;;  %s5097_s3 = sld [smem:[#allocation18_spill]]  ;;  %vm337_vm0 = vcmask 1040384   ;;  %vm352_vm6 = vcmask 416768   ;;  %vm402_vm10 = vcmask 408576  }
  0x26   : > { %3018 = vset.pattern.permute.xlu1 %v3052_v0  ;;  %3017 = vset.pattern.permute.xlu0 %v3052_v0  ;;  %s5098_s2 = sld [smem:[#allocation17_spill]]  ;;  %s3053_s9 = smov 51   ;;  %vm452_vm11 = vcmask 400384   ;;  %vm502_vm15 = vcmask 392192  }
  0x27   : > { %s5363_s19 = smov (!%p244_p0, %s2833_s19), 1  ;;  %s3054_s10 = smov 50  }
  0x28   : > { %5096 = sst [smem:[#allocation6_spill]] %s5363_s19  ;;  %s2946_s26 = sshll.u32 %s5363_s19, 5 }
  0x29   : > { %s5059_s30 = sshll.u32 %s5363_s19, 6  ;;  %s3055_s11 = smov 49  }
  0x2a   : > { %s3056_s12 = smov 48   ;;  %s3057_s13 = smov 47  }
  0x2b   : > { %s253_s29 = scalar_lea.vmem %s5097_s3, %s2946_s26  ;;  %s3058_s14 = smov 46  }
  0x2c   : > { %v269_v1 = vld [vmem:[%s253_s29 + $0x10] sm:$0xff]  ;;  %v267_v2 = vld [vmem:[%s253_s29] sm:$0xff]  ;;  %v270_v3 = vld [vmem:[%s253_s29 + $0x18] sm:$0xff]  ;;  %s248_s8 = scalar_lea.vmem %s5098_s2, %s5059_s30  ;;  %s3059_s15 = smov 45  }
  0x2d   : > { %283 = vperm.xlu1 %3018, %v269_v1   ;;  %273 = vperm.xlu0 %3017, %v267_v2   ;;  %v268_v4 = vld [vmem:[%s253_s29 + $0x8] sm:$0xff]  ;;  %v263_v5 = vld [vmem:[%s248_s8 + $0x20] sm:$0xff]  ;;  %v265_v11 = vld [vmem:[%s248_s8 + $0x30] sm:$0xff]  ;;  %s3060_s16 = smov 35   ;;  %s3061_s17 = smov 34  }
  0x2e   : > { %v264_v6 = vld [vmem:[%s248_s8 + $0x28] sm:$0xff]  ;;  %v259_v7 = vld [vmem:[%s248_s8] sm:$0xff]  ;;  %v266_v16 = vld [vmem:[%s248_s8 + $0x38] sm:$0xff]  ;;  %s3062_s20 = smov 33   ;;  %s3063_s21 = smov 32  }
  0x2f   : > { %v260_v8 = vld [vmem:[%s248_s8 + $0x8] sm:$0xff]  ;;  %v261_v17 = vld [vmem:[%s248_s8 + $0x10] sm:$0xff]  ;;  %v262_v18 = vld [vmem:[%s248_s8 + $0x18] sm:$0xff]  ;;  %s3064_s22 = smov 31   ;;  %s3065_s23 = smov 30  }
  0x30   : > { %s3066_s24 = smov 29   ;;  %s3067_s25 = smov 19  }
  0x31   : > { %288 = vperm.xlu1 %3018, %v270_v3   ;;  %278 = vperm.xlu0 %3017, %v268_v4   ;;  %s3068_s26 = smov 18   ;;  %s3069_s27 = smov 17  }
  0x32   : > { %s3070_s28 = smov 16   ;;  %s3071_s29 = smov 15  }
  0x33   : > { %s3072_s6 = smov 14   ;;  %s3073_s7 = smov 13  }
  0x34   : > { %s2894_s8 = sld [smem:[#allocation2 + $0x49]]  ;;  %s5099_s0 = sld [smem:[#allocation15_spill]] }
  0x35   : > { %s5101_s1 = sld [smem:[#allocation16_spill]]  ;;  %s3081_s30 = smov 115  }
  0x36   : > { %s3327_s2 = sld [smem:[#allocation2 + $0x3c]]  ;;  %s3337_s3 = sld [smem:[#allocation2 + $0x3d]] }
  0x37   : > { %s3348_s4 = sld [smem:[#allocation2 + $0xd]]  ;;  %s3082_s18 = smov 114  }
  0x38   : > { %s3366_s5 = sld [smem:[#allocation2 + $0xe]]  ;;  %s3368_s19 = sld [smem:[#allocation2 + $0x3f]] }
  0x3a   : > { %v1529_v1 = vstv %s2894_s8  ;;  %s3291_s8 = sld [smem:[#allocation2 + $0x37]] }
  0x3c   : > { %5109 = sst [smem:[#allocation13_spill]] %s3337_s3 }
  0x3e   : > { %5112 = sst [smem:[#allocation14_spill]] %s3368_s19 }
  0xac   : > { %v284_v9 = vpop.permute.xlu1 %283  ;;  %v274_v10 = vpop.permute.xlu0 %273 }
  0xad   : > { %v3166_v12 = vmul.f32 %v284_v9, %v263_v5  ;;  %v3168_v13 = vmul.f32 %v284_v9, %v264_v6  ;;  %v3170_v14 = vmul.f32 %v274_v10, %v259_v7  ;;  %v3172_v15 = vmul.f32 %v274_v10, %v260_v8 }
  0xae   : > { %v3078_v5 = vmov 1966171168   ;;  %v383_v7 = vlaneseq }
  0xaf   : > { %v319_v25 = vmax.f32 %v3170_v14, %v3166_v12  ;;  %v328_v26 = vmax.f32 %v3172_v15, %v3168_v13  ;;  %v381_v6 = vunpack.c.l.s4 %v3078_v5 }
  0xb0   : > { %v289_v19 = vpop.permute.xlu1 %288  ;;  %v279_v20 = vpop.permute.xlu0 %278 }
  0xb1   : > { %v3174_v21 = vmul.f32 %v289_v19, %v265_v11  ;;  %v3176_v22 = vmul.f32 %v289_v19, %v266_v16  ;;  %v3178_v23 = vmul.f32 %v279_v20, %v261_v17  ;;  %v3180_v24 = vmul.f32 %v279_v20, %v262_v18  ;;  %v3283_v20 = vld [vmem:[%s5099_s0] sm:$0x3]  ;;  %s3375_s0 = sld [smem:[#allocation2 + $0x40]] }
  0xb2   : > { %v382_v16 = vunpack.c.0.s8 %v381_v6  ;;  %v3274_v17 = vshrl.u32 %v383_v7, 7  ;;  %vm1375_vm1 = vcmp.ge.s32.totalorder %v3283_v20, 0  ;;  %vm1376_vm2 = vcmp.lt.s32.totalorder %v3283_v20, 16 }
  0xb3   : > { %v299_v27 = vadd.f32 %v3178_v23, %v3170_v14  ;;  %v308_v28 = vadd.f32 %v3180_v24, %v3172_v15  ;;  %v320_v29 = vmax.f32 %v3178_v23, %v3174_v21  ;;  %v329_v30 = vmax.f32 %v3180_v24, %v3176_v22  ;;  %vm3329_vm5 = vmand %vm1375_vm1, %vm1376_vm2 }
  0xb4   : > { %vm342_vm8 = vcmp.ge.s32.totalorder %v3283_v20, 3  ;;  %vm343_vm9 = vcmp.lt.s32.totalorder %v3283_v20, 19 }
  0xb5   : > { %v300_v31 = vadd.f32 %v299_v27, %v3166_v12  ;;  %v309_v32 = vadd.f32 %v308_v28, %v3168_v13  ;;  %v321_v33 = vmax.f32 %v319_v25, %v320_v29  ;;  %v330_v34 = vmax.f32 %v328_v26, %v329_v30  ;;  %v3298_v25 = vld [vmem:[%s5101_s1] sm:$0x3]  ;;  %s3325_s1 = sld [smem:[#allocation2 + $0xb]] }
  0xb6   : > { %v3305_v26 = vsub.s32 %v382_v16, %v3274_v17  ;;  %vm5081_vm3 = vcmp.ge.s32.totalorder %v3298_v25, 0  ;;  %vm5085_vm4 = vcmp.lt.s32.totalorder %v3298_v25, 16  ;;  %vm5084_vm13 = vcmp.ge.s32.totalorder %v3298_v25, 3 }
  0xb7   : > { %v301_v35 = vadd.f32 %v300_v31, %v3174_v21  ;;  %v310_v36 = vadd.f32 %v309_v32, %v3176_v22  ;;  %v322_v37 = vrot.slane %v321_v33, 4  ;;  %v331_v38 = vrot.slane %v330_v34, 4  ;;  %vm3356_vm7 = vmand %vm3329_vm5, %vm5081_vm3 }
  0xb8   : > { %vm3388_vm12 = vmand %vm3356_vm7, %vm5085_vm4  ;;  %vm5078_vm14 = vcmp.ge.s32.totalorder %v3298_v25, 2  ;;  %vm5080_vm1 = vcmp.lt.s32.totalorder %v3298_v25, 18  ;;  %v1001_v16 = vstv %s3348_s4  ;;  %vm5079_vm2 = vcmp.ge.s32.totalorder %v3298_v25, 1  ;;  %s3098_s4 = smov 80  }
  0xb9   : > { %v302_v39 = vrot.slane %v301_v35, 4  ;;  %v311_v40 = vrot.slane %v310_v36, 4  ;;  %v323_v41 = vmax.f32 %v321_v33, %v322_v37  ;;  %v332_v42 = vmax.f32 %v330_v34, %v331_v38  ;;  %vm3455_vm7 = vmand %vm342_vm8, %vm343_vm9 }
  0xba   : > { %vm602_vm8 = vcmask 375808   ;;  %vm3478_vm9 = vmand %vm3455_vm7, %vm5084_vm13 }
  0xbb   : > { %v303_v43 = vadd.f32 %v302_v39, %v301_v35  ;;  %v312_v44 = vadd.f32 %v311_v40, %v310_v36  ;;  %v324_v45 = vrot.slane %v323_v41, 2  ;;  %v333_v46 = vrot.slane %v332_v42, 2 }
  0xbd   : > { %v304_v47 = vrot.slane %v303_v43, 2  ;;  %v313_v48 = vrot.slane %v312_v44, 2  ;;  %v325_v49 = vmax.f32 %v323_v41, %v324_v45  ;;  %v334_v50 = vmax.f32 %v332_v42, %v333_v46 }
  0xbf   : > { %v305_v51 = vadd.f32 %v304_v47, %v303_v43  ;;  %v314_v52 = vadd.f32 %v313_v48, %v312_v44  ;;  %v326_v55 = vrot.slane %v325_v49, 1  ;;  %v335_v56 = vrot.slane %v334_v50, 1 }
  0xc0   : > { %v666_v44 = vstv %s3291_s8  ;;  %s3666_s8 = sld [smem:[#allocation2 + $0x48]] }
  0xc1   : > { %v306_v53 = vrot.slane %v305_v51, 1  ;;  %v315_v54 = vrot.slane %v314_v52, 1  ;;  %v327_v61 = vmax.f32 %v325_v49, %v326_v55  ;;  %v336_v62 = vmax.f32 %v334_v50, %v335_v56 }
  0xc3   : > { %v307_v57 = vadd.f32 %v306_v53, %v305_v51  ;;  %v316_v58 = vadd.f32 %v315_v54, %v314_v52 }
  0xc5   : > { %v317_v59 = vmul.f32 0.03125, %v307_v57  ;;  %v318_v60 = vmul.f32 0.03125, %v316_v58 }
  0xc7   : > { %v3198_v63 = vsel %vm337_vm0, %v317_v59, %v327_v61  ;;  %v3200_v0 = vsel %vm337_vm0, %v318_v60, %v336_v62  ;;  %v905_v61 = vstv %s3325_s1  ;;  %v909_v62 = vstv %s3327_s2  ;;  %s3096_s1 = smov 82   ;;  %s3923_s2 = sld [smem:[#allocation2 + $0x1c]] }
  0xc8   : > { %346 = vrot.lane.b32.xlu0 %v3200_v0, %s3053_s9  ;;  %350 = vrot.lane.b32.xlu1 %v3198_v63, %s3053_s9  ;;  %s3074_s9 = smov 3   ;;  %v1531_v2 = vmul.f32 %v1529_v1, %v3200_v0  ;;  %v1530_v3 = vmul.f32 %v1529_v1, %v3198_v63  ;;  %vm5083_vm0 = vcmp.lt.s32.totalorder %v3298_v25, 19 }
  0xca   : > { %v1535_v8 = vrot.slane %v1531_v2, 1  ;;  %v1534_v9 = vrot.slane %v1530_v3, 1  ;;  %v957_v2 = vstv %s3337_s3  ;;  %s3433_s3 = sld [smem:[#allocation2 + $0x13]] }
  0xcc   : > { %397 = vrot.lane.b32.xlu0 %v3200_v0, %s3054_s10  ;;  %400 = vrot.lane.b32.xlu1 %v3198_v63, %s3054_s10  ;;  %s3075_s10 = smov 2  }
  0xd0   : > { %447 = vrot.lane.b32.xlu0 %v3200_v0, %s3055_s11  ;;  %450 = vrot.lane.b32.xlu1 %v3198_v63, %s3055_s11  ;;  %s2893_s11 = sld [smem:[#allocation2 + $0x18]] }
  0xd4   : > { %497 = vrot.lane.b32.xlu0 %v3200_v0, %s3056_s12  ;;  %500 = vrot.lane.b32.xlu1 %v3198_v63, %s3056_s12  ;;  %s3076_s12 = smov 1  }
  0xd6   : > { %v1525_v4 = vstv %s2893_s11  ;;  %s3319_s11 = sld [smem:[#allocation2 + $0x3b]] }
  0xd7   : > { %v1527_v10 = vmul.f32 %v1525_v4, %v3200_v0  ;;  %v1526_v11 = vmul.f32 %v1525_v4, %v3198_v63 }
  0xd8   : > { %547 = vrot.lane.b32.xlu0 %v3200_v0, %s3057_s13  ;;  %550 = vrot.lane.b32.xlu1 %v3198_v63, %s3057_s13  ;;  %s3077_s13 = smov 127  }
  0xd9   : > { %v1539_v18 = vadd.f32 %v1535_v8, %v1527_v10  ;;  %v1538_v19 = vadd.f32 %v1534_v9, %v1526_v11 }
  0xdb   : > { %v1542_v27 = vcombine.low %v1538_v19, %v1539_v18 }
  0xdc   : > { %597 = vrot.lane.b32.xlu0 %v3200_v0, %s3058_s14  ;;  %600 = vrot.lane.b32.xlu1 %v3198_v63, %s3058_s14  ;;  %s3254_s14 = sld [smem:[#allocation2]]  ;;  %v861_v60 = vstv %s3319_s11  ;;  %s3094_s11 = smov 93  }
  0xdd   : > { %v1549_v31 = vrot.slane %v1542_v27, %v3305_v26 }
  0xdf   : > { %v1556_v46 = vrot.slane %v1549_v31, %v3305_v26 }
  0xe0   : > { %647 = vrot.lane.b32.xlu0 %v3200_v0, %s3059_s15  ;;  %650 = vrot.lane.b32.xlu1 %v3198_v63, %s3059_s15  ;;  %s3256_s15 = sld [smem:[#allocation2 + $0x31]] }
  0xe1   : > { %v3413_v3 = vsel %vm3388_vm12, %v1556_v46, 0.0  ;;  %vm652_vm12 = vcmask 367616  }
  0xe2   : > { %v362_v29 = vstv %s3254_s14  ;;  %s3084_s14 = smov 112  }
  0xe4   : > { %700 = vrot.lane.b32.xlu0 %v3200_v0, %s3060_s16  ;;  %703 = vrot.lane.b32.xlu1 %v3198_v63, %s3060_s16  ;;  %s3258_s16 = sld [smem:[#allocation2 + $0x1]] }
  0xe6   : > { %v366_v30 = vstv %s3256_s15  ;;  %s3350_s15 = sld [smem:[#allocation2 + $0x3e]] }
  0xe8   : > { %748 = vrot.lane.b32.xlu0 %v3200_v0, %s3061_s17  ;;  %751 = vrot.lane.b32.xlu1 %v3198_v63, %s3061_s17  ;;  %s3260_s17 = sld [smem:[#allocation2 + $0x32]] }
  0xea   : > { %v412_v32 = vstv %s3258_s16  ;;  %s3085_s16 = smov 111  }
  0xec   : > { %796 = vrot.lane.b32.xlu0 %v3200_v0, %s3062_s20  ;;  %799 = vrot.lane.b32.xlu1 %v3198_v63, %s3062_s20  ;;  %s3262_s20 = sld [smem:[#allocation2 + $0x2]]  ;;  %v1005_v18 = vstv %s3350_s15  ;;  %s3097_s15 = smov 81  }
  0xee   : > { %v416_v33 = vstv %s3260_s17  ;;  %s3449_s17 = sld [smem:[#allocation2 + $0x14]] }
  0xf0   : > { %844 = vrot.lane.b32.xlu0 %v3200_v0, %s3063_s21  ;;  %847 = vrot.lane.b32.xlu1 %v3198_v63, %s3063_s21  ;;  %s3264_s21 = sld [smem:[#allocation2 + $0x33]] }
  0xf2   : > { %v462_v34 = vstv %s3262_s20  ;;  %s3086_s20 = smov 110  }
  0xf4   : > { %892 = vrot.lane.b32.xlu0 %v3200_v0, %s3064_s22  ;;  %895 = vrot.lane.b32.xlu1 %v3198_v63, %s3064_s22  ;;  %s3079_s22 = smov 126  }
  0xf6   : > { %v466_v35 = vstv %s3264_s21  ;;  %s3487_s21 = sld [smem:[#allocation2 + $0x15]] }
  0xf8   : > { %940 = vrot.lane.b32.xlu0 %v3200_v0, %s3065_s23  ;;  %943 = vrot.lane.b32.xlu1 %v3198_v63, %s3065_s23  ;;  %s3270_s23 = sld [smem:[#allocation2 + $0x3]] }
  0xfc   : > { %988 = vrot.lane.b32.xlu0 %v3200_v0, %s3066_s24  ;;  %991 = vrot.lane.b32.xlu1 %v3198_v63, %s3066_s24  ;;  %s3272_s24 = sld [smem:[#allocation2 + $0x34]] }
  0xfe   : > { %v512_v36 = vstv %s3270_s23  ;;  %s3087_s23 = smov 109  }
 0x100   : > { %1039 = vrot.lane.b32.xlu0 %v3200_v0, %s3067_s25  ;;  %1042 = vrot.lane.b32.xlu1 %v3198_v63, %s3067_s25  ;;  %s3276_s25 = sld [smem:[#allocation2 + $0x4]] }
 0x102   : > { %v516_v37 = vstv %s3272_s24  ;;  %s3548_s24 = sld [smem:[#allocation2 + $0x46]] }
 0x104   : > { %1087 = vrot.lane.b32.xlu0 %v3200_v0, %s3068_s26  ;;  %1090 = vrot.lane.b32.xlu1 %v3198_v63, %s3068_s26  ;;  %s3278_s26 = sld [smem:[#allocation2 + $0x35]] }
 0x106   : > { %v562_v38 = vstv %s3276_s25  ;;  %s3089_s25 = smov 98  }
 0x108   : > { %1135 = vrot.lane.b32.xlu0 %v3200_v0, %s3069_s27  ;;  %1138 = vrot.lane.b32.xlu1 %v3198_v63, %s3069_s27  ;;  %s3309_s27 = sld [smem:[#allocation2 + $0x39]] }
 0x10a   : > { %v566_v39 = vstv %s3278_s26  ;;  %s3588_s26 = sld [smem:[#allocation2 + $0x16]] }
 0x10c   : > { %1183 = vrot.lane.b32.xlu0 %v3200_v0, %s3070_s28  ;;  %1186 = vrot.lane.b32.xlu1 %v3198_v63, %s3070_s28  ;;  %s3313_s28 = sld [smem:[#allocation2 + $0x9]] }
 0x10e   : > { %5103 = sst [smem:[#allocation9_spill]] %s3309_s27  ;;  %v765_v51 = vstv %s3309_s27  ;;  %s3403_s27 = sld [smem:[#allocation2 + $0x11]] }
 0x110   : > { %1231 = vrot.lane.b32.xlu0 %v3200_v0, %s3071_s29  ;;  %1234 = vrot.lane.b32.xlu1 %v3198_v63, %s3071_s29  ;;  %s3285_s29 = sld [smem:[#allocation2 + $0x5]] }
 0x112   : > { %5104 = sst [smem:[#allocation10_spill]] %s3313_s28  ;;  %v809_v52 = vstv %s3313_s28  ;;  %s3083_s28 = smov 113  }
 0x114   : > { %1279 = vrot.lane.b32.xlu0 %v3200_v0, %s3072_s6  ;;  %1282 = vrot.lane.b32.xlu1 %v3198_v63, %s3072_s6  ;;  %s3287_s6 = sld [smem:[#allocation2 + $0x36]] }
 0x116   : > { %5100 = sst [smem:[#allocation7_spill]] %s3285_s29  ;;  %v612_v41 = vstv %s3285_s29  ;;  %s3382_s29 = sld [smem:[#allocation2 + $0x10]] }
 0x118   : > { %1327 = vrot.lane.b32.xlu0 %v3200_v0, %s3073_s7  ;;  %1330 = vrot.lane.b32.xlu1 %v3198_v63, %s3073_s7  ;;  %s3289_s7 = sld [smem:[#allocation2 + $0x6]] }
 0x11a   : > { %v616_v42 = vstv %s3287_s6  ;;  %s3631_s6 = sld [smem:[#allocation2 + $0x47]] }
 0x11c   : > { %1378 = vrot.lane.b32.xlu0 %v3200_v0, %s3074_s9  ;;  %1381 = vrot.lane.b32.xlu1 %v3198_v63, %s3074_s9  ;;  %s3080_s9 = smov 125  }
 0x11e   : > { %v662_v43 = vstv %s3289_s7  ;;  %s3090_s7 = smov 97  }
 0x120   : > { %1426 = vrot.lane.b32.xlu0 %v3200_v0, %s3075_s10  ;;  %1429 = vrot.lane.b32.xlu1 %v3198_v63, %s3075_s10  ;;  %s3317_s10 = sld [smem:[#allocation2 + $0xa]] }
 0x124   : > { %1474 = vrot.lane.b32.xlu0 %v3200_v0, %s3076_s12  ;;  %1477 = vrot.lane.b32.xlu1 %v3198_v63, %s3076_s12  ;;  %s3300_s12 = sld [smem:[#allocation2 + $0x7]] }
 0x126   : > { %5105 = sst [smem:[#allocation11_spill]] %s3317_s10  ;;  %v857_v57 = vstv %s3317_s10  ;;  %s3409_s10 = sld [smem:[#allocation2 + $0x42]] }
 0x128   : > { %1560 = vrot.lane.b32.xlu0 %v3198_v63, %s3077_s13  ;;  %1562 = vrot.lane.b32.xlu1 %v3200_v0, %s3077_s13  ;;  %s3302_s13 = sld [smem:[#allocation2 + $0x38]] }
 0x12a   : > { %v713_v45 = vstv %s3300_s12  ;;  %s3095_s12 = smov 83  }
 0x12c   : > { %1608 = vrot.lane.b32.xlu0 %v3198_v63, %s3079_s22  ;;  %1610 = vrot.lane.b32.xlu1 %v3200_v0, %s3079_s22  ;;  %s3307_s22 = sld [smem:[#allocation2 + $0x8]] }
 0x12e   : > { %v717_v49 = vstv %s3302_s13  ;;  %s3091_s13 = smov 96  }
 0x130   : > { %1656 = vrot.lane.b32.xlu0 %v3198_v63, %s3080_s9  ;;  %1658 = vrot.lane.b32.xlu1 %v3200_v0, %s3080_s9  ;;  %s3315_s9 = sld [smem:[#allocation2 + $0x3a]] }
 0x132   : > { %5102 = sst [smem:[#allocation8_spill]] %s3307_s22  ;;  %v761_v50 = vstv %s3307_s22  ;;  %s3401_s22 = sld [smem:[#allocation2 + $0x41]] }
 0x134   : > { %1707 = vrot.lane.b32.xlu0 %v3198_v63, %s3081_s30  ;;  %1709 = vrot.lane.b32.xlu1 %v3200_v0, %s3081_s30  ;;  %s3335_s30 = sld [smem:[#allocation2 + $0xc]] }
 0x136   : > { %v813_v56 = vstv %s3315_s9  ;;  %s3093_s9 = smov 94  }
 0x138   : > { %1755 = vrot.lane.b32.xlu0 %v3198_v63, %s3082_s18  ;;  %1757 = vrot.lane.b32.xlu1 %v3200_v0, %s3082_s18  ;;  %s3373_s18 = sld [smem:[#allocation2 + $0xf]] }
 0x13a   : > { %5108 = sst [smem:[#allocation12_spill]] %s3335_s30  ;;  %v347_v47 = vpop.permute.xlu0 %346  ;;  %v351_v48 = vpop.permute.xlu1 %350  ;;  %v953_v1 = vstv %s3335_s30  ;;  %s3431_s30 = sld [smem:[#allocation2 + $0x43]] }
 0x13b   : > { %v353_v54 = vsel %vm352_vm6, %v351_v48, %v347_v47  ;;  %v356_v55 = vsel %vm352_vm6, %v347_v47, %v351_v48  ;;  %vm552_vm6 = vcmask 384000   ;;  %v1104_v47 = vstv %s3375_s0  ;;  %s3099_s0 = smov 79  }
 0x13c   : > { %v367_v58 = vmul.f32 %v366_v30, %v356_v55  ;;  %v368_v59 = vmul.f32 %v366_v30, %v353_v54  ;;  %1803 = vrot.lane.b32.xlu0 %v3198_v63, %s3083_s28  ;;  %1805 = vrot.lane.b32.xlu1 %v3200_v0, %s3083_s28  ;;  %v363_v4 = vmul.f32 %v362_v29, %v356_v55  ;;  %s3420_s28 = sld [smem:[#allocation2 + $0x12]]  ;;  %v1056_v30 = vstv %s3368_s19  ;;  %s3447_s19 = sld [smem:[#allocation2 + $0x44]] }
 0x13d   : > { %v364_v5 = vmul.f32 %v362_v29, %v353_v54  ;;  %v1052_v29 = vstv %s3366_s5  ;;  %s3963_s5 = sld [smem:[#allocation2 + $0x4d]] }
 0x13e   : > { %v371_v6 = vrot.slane %v367_v58, 1  ;;  %v372_v7 = vrot.slane %v368_v59, 1  ;;  %v398_v8 = vpop.permute.xlu0 %397  ;;  %v401_v9 = vpop.permute.xlu1 %400  ;;  %v1100_v46 = vstv %s3373_s18  ;;  %v1148_v59 = vstv %s3382_s29  ;;  %s3999_s18 = sld [smem:[#allocation2 + $0x1d]]  ;;  %s4037_s29 = sld [smem:[#allocation2 + $0x1e]] }
 0x13f   : > { %v403_v10 = vsel %vm402_vm10, %v401_v9, %v398_v8  ;;  %v406_v11 = vsel %vm402_vm10, %v398_v8, %v401_v9  ;;  %vm5082_vm10 = vcmp.lt.s32.totalorder %v3298_v25, 17  ;;  %v1152_v9 = vstv %s3401_s22  ;;  %s4021_s22 = sld [smem:[#allocation2 + $0x4e]] }
 0x140   : > { %v375_v19 = vadd.f32 %v371_v6, %v363_v4  ;;  %v376_v27 = vadd.f32 %v372_v7, %v364_v5  ;;  %1851 = vrot.lane.b32.xlu0 %v3198_v63, %s3084_s14  ;;  %v417_v31 = vmul.f32 %v416_v33, %v406_v11  ;;  %v418_v40 = vmul.f32 %v416_v33, %v403_v10 }
 0x141   : > { %1853 = vrot.lane.b32.xlu1 %v3200_v0, %s3084_s14  ;;  %v413_v53 = vmul.f32 %v412_v32, %v406_v11  ;;  %v414_v54 = vmul.f32 %v412_v32, %v403_v10  ;;  %s3468_s14 = sld [smem:[#allocation2 + $0x45]] }
 0x142   : > { %v379_v48 = vcombine.low %v375_v19, %v376_v27  ;;  %v448_v55 = vpop.permute.xlu0 %447  ;;  %v451_v58 = vpop.permute.xlu1 %450  ;;  %v421_v4 = vrot.slane %v417_v31, 1  ;;  %v422_v32 = vrot.slane %v418_v40, 1 }
 0x143   : > { %v453_v5 = vsel %vm452_vm11, %v451_v58, %v448_v55  ;;  %v456_v6 = vsel %vm452_vm11, %v448_v55, %v451_v58  ;;  %vm3493_vm11 = vmand %vm3455_vm7, %vm5078_vm14 }
 0x144   : > { %v386_v7 = vrot.slane %v379_v48, %v3305_v26  ;;  %v467_v8 = vmul.f32 %v466_v35, %v456_v6  ;;  %1899 = vrot.lane.b32.xlu0 %v3198_v63, %s3085_s16  ;;  %v425_v11 = vadd.f32 %v421_v4, %v413_v53  ;;  %v426_v19 = vadd.f32 %v422_v32, %v414_v54  ;;  %vm3507_vm14 = vmand %vm3478_vm9, %vm5083_vm0 }
 0x145   : > { %v468_v27 = vmul.f32 %v466_v35, %v453_v5  ;;  %1901 = vrot.lane.b32.xlu1 %v3200_v0, %s3085_s16  ;;  %v463_v48 = vmul.f32 %v462_v34, %v456_v6  ;;  %v464_v55 = vmul.f32 %v462_v34, %v453_v5  ;;  %vm557_vm9 = vcmp.ge.s32.totalorder %v3298_v25, 4294967295  ;;  %s3745_s16 = sld [smem:[#allocation2 + $0x4a]] }
 0x146   : > { %v471_v53 = vrot.slane %v467_v8, 1  ;;  %v498_v54 = vpop.permute.xlu0 %497  ;;  %v501_v35 = vpop.permute.xlu1 %500  ;;  %v429_v32 = vcombine.low %v425_v11, %v426_v19  ;;  %v393_v8 = vrot.slane %v386_v7, %v3305_v26  ;;  %vm698_vm0 = vcmp.lt.s32.totalorder %v3283_v20, 18 }
 0x147   : > { %v472_v34 = vrot.slane %v468_v27, 1  ;;  %v503_v5 = vsel %vm502_vm15, %v501_v35, %v498_v54  ;;  %v506_v6 = vsel %vm502_vm15, %v498_v54, %v501_v35  ;;  %vm3521_vm15 = vmand %vm3493_vm11, %vm5080_vm1  ;;  %vm705_vm1 = vcmask 285696  }
 0x148   : > { %v475_v58 = vadd.f32 %v471_v53, %v463_v48  ;;  %1947 = vrot.lane.b32.xlu0 %v3198_v63, %s3086_s20  ;;  %v436_v19 = vrot.slane %v429_v32, %v3305_v26  ;;  %v517_v27 = vmul.f32 %v516_v37, %v506_v6  ;;  %v518_v48 = vmul.f32 %v516_v37, %v503_v5  ;;  %vm3537_vm11 = vmand %vm3455_vm7, %vm5079_vm2 }
 0x149   : > { %v476_v7 = vadd.f32 %v472_v34, %v464_v55  ;;  %1949 = vrot.lane.b32.xlu1 %v3200_v0, %s3086_s20  ;;  %v513_v40 = vmul.f32 %v512_v36, %v506_v6  ;;  %v514_v54 = vmul.f32 %v512_v36, %v503_v5  ;;  %v1296_v37 = vstv %s3447_s19  ;;  %s3088_s20 = smov 99   ;;  %s4205_s19 = sld [smem:[#allocation2 + $0x51]] }
 0x14a   : > { %v548_v35 = vpop.permute.xlu0 %547  ;;  %v551_v55 = vpop.permute.xlu1 %550  ;;  %v443_v34 = vrot.slane %v436_v19, %v3305_v26  ;;  %v521_v31 = vrot.slane %v517_v27, 1  ;;  %v522_v36 = vrot.slane %v518_v48, 1  ;;  %v395_v5 = vsel %vm3507_vm14, %v393_v8, 0.0 }
 0x14b   : > { %v479_v6 = vcombine.low %v475_v58, %v476_v7  ;;  %v553_v10 = vsel %vm552_vm6, %v551_v55, %v548_v35  ;;  %v556_v32 = vsel %vm552_vm6, %v548_v35, %v551_v55  ;;  %vm5086_vm2 = vcmp.ge.s32.totalorder %v3298_v25, 4294967294  ;;  %vm3559_vm6 = vmand %vm3537_vm11, %vm5082_vm10 }
 0x14c   : > { %1995 = vrot.lane.b32.xlu0 %v3198_v63, %s3087_s23  ;;  %v1344_v19 = vstv %s3468_s14  ;;  %v445_v58 = vsel %vm3521_vm15, %v443_v34, 0.0  ;;  %v525_v11 = vadd.f32 %v521_v31, %v513_v40  ;;  %v526_v7 = vadd.f32 %v522_v36, %v514_v54  ;;  %vm3573_vm15 = vmand %vm3455_vm7, %vm5081_vm3  ;;  %s4283_s14 = sld [smem:[#allocation2 + $0x22]] }
 0x14d   : > { %v486_v8 = vrot.slane %v479_v6, %v3305_v26  ;;  %vm559_vm14 = vcmp.lt.s32.totalorder %v3298_v25, 15  ;;  %1997 = vrot.lane.b32.xlu1 %v3200_v0, %s3087_s23  ;;  %v446_v27 = vadd.f32 %v445_v58, %v395_v5  ;;  %v563_v53 = vmul.f32 %v562_v38, %v556_v32  ;;  %vm3602_vm13 = vmand %vm3573_vm15, %vm5085_vm4  ;;  %s3633_s23 = sld [smem:[#allocation2 + $0x17]] }
 0x14e   : > { %v567_v31 = vmul.f32 %v566_v39, %v556_v32  ;;  %v598_v40 = vpop.permute.xlu0 %597  ;;  %v601_v54 = vpop.permute.xlu1 %600  ;;  %v1391_v35 = vstv %s3487_s21  ;;  %v529_v4 = vcombine.low %v525_v11, %v526_v7  ;;  %v568_v6 = vmul.f32 %v566_v39, %v553_v10  ;;  %vm3622_vm4 = vmand %vm3455_vm7, %vm557_vm9  ;;  %s4285_s21 = sld [smem:[#allocation2 + $0x53]] }
 0x14f   : > { %v493_v55 = vrot.slane %v486_v8, %v3305_v26  ;;  %vm609_vm11 = vcmp.lt.s32.totalorder %v3298_v25, 14  ;;  %v603_v32 = vsel %vm602_vm8, %v601_v54, %v598_v40  ;;  %v564_v36 = vmul.f32 %v562_v38, %v553_v10 }
 0x150   : > { %v571_v5 = vrot.slane %v567_v31, 1  ;;  %v606_v58 = vsel %vm602_vm8, %v598_v40, %v601_v54  ;;  %v618_v8 = vmul.f32 %v616_v42, %v603_v32  ;;  %2046 = vrot.lane.b32.xlu0 %v3198_v63, %s3088_s20  ;;  %vm657_vm3 = vcmp.ge.s32.totalorder %v3298_v25, 4294967293 }
 0x151   : > { %vm753_vm10 = vcmask 277504   ;;  %v495_v39 = vsel %vm3559_vm6, %v493_v55, 0.0  ;;  %v536_v11 = vrot.slane %v529_v4, %v3305_v26  ;;  %v572_v38 = vrot.slane %v568_v6, 1  ;;  %2048 = vrot.lane.b32.xlu1 %v3200_v0, %s3088_s20  ;;  %s3092_s20 = smov 95  }
 0x152   : > { %v614_v10 = vmul.f32 %v612_v41, %v603_v32  ;;  %vm697_vm8 = vcmp.ge.s32.totalorder %v3283_v20, 2  ;;  %v496_v7 = vadd.f32 %v495_v39, %v446_v27  ;;  %v575_v31 = vadd.f32 %v571_v5, %v563_v53  ;;  %v648_v55 = vpop.permute.xlu0 %647  ;;  %v651_v4 = vpop.permute.xlu1 %650 }
 0x153   : > { %v617_v40 = vmul.f32 %v616_v42, %v606_v58  ;;  %v622_v54 = vrot.slane %v618_v8, 1  ;;  %v543_v6 = vrot.slane %v536_v11, %v3305_v26  ;;  %v576_v27 = vadd.f32 %v572_v38, %v564_v36 }
 0x154   : > { %vm659_vm6 = vcmp.lt.s32.totalorder %v3298_v25, 13  ;;  %v653_v34 = vsel %vm652_vm12, %v651_v4, %v648_v55  ;;  %v656_v32 = vsel %vm652_vm12, %v648_v55, %v651_v4  ;;  %v613_v39 = vmul.f32 %v612_v41, %v606_v58  ;;  %2094 = vrot.lane.b32.xlu0 %v3198_v63, %s3089_s25  ;;  %vm3653_vm12 = vmand %vm3622_vm4, %vm559_vm14 }
 0x155   : > { %v621_v53 = vrot.slane %v617_v40, 1  ;;  %v626_v5 = vadd.f32 %v622_v54, %v614_v10  ;;  %vm801_vm15 = vcmask 269312   ;;  %v1395_v42 = vstv %s3548_s24  ;;  %2096 = vrot.lane.b32.xlu1 %v3200_v0, %s3089_s25  ;;  %s4299_s24 = sld [smem:[#allocation2 + $0x23]]  ;;  %s4391_s25 = sld [smem:[#allocation2 + $0x27]] }
 0x156   : > { %v545_v36 = vsel %vm3602_vm13, %v543_v6, 0.0  ;;  %v579_v41 = vcombine.low %v575_v31, %v576_v27  ;;  %v667_v58 = vmul.f32 %v666_v44, %v656_v32  ;;  %v668_v11 = vmul.f32 %v666_v44, %v653_v34  ;;  %v701_v54 = vpop.permute.xlu0 %700  ;;  %v704_v31 = vpop.permute.xlu1 %703  ;;  %vm3644_vm13 = vmand %vm3455_vm7, %vm5086_vm2 }
 0x157   : > { %v546_v38 = vadd.f32 %v545_v36, %v496_v7  ;;  %v625_v10 = vadd.f32 %v621_v53, %v613_v39  ;;  %v663_v48 = vmul.f32 %v662_v43, %v656_v32  ;;  %v664_v40 = vmul.f32 %v662_v43, %v653_v34  ;;  %vm3672_vm4 = vmand %vm3644_vm13, %vm609_vm11 }
 0x158   : > { %v586_v55 = vrot.slane %v579_v41, %v3305_v26  ;;  %v671_v7 = vrot.slane %v667_v58, 1  ;;  %v672_v4 = vrot.slane %v668_v11, 1  ;;  %v706_v6 = vsel %vm705_vm1, %v704_v31, %v701_v54  ;;  %2142 = vrot.lane.b32.xlu0 %v3198_v63, %s3090_s7  ;;  %vm3698_vm13 = vmand %vm697_vm8, %vm698_vm0 }
 0x159   : > { %v629_v27 = vcombine.low %v625_v10, %v626_v5  ;;  %v709_v34 = vsel %vm705_vm1, %v701_v54, %v704_v31  ;;  %v719_v32 = vmul.f32 %v717_v49, %v706_v6  ;;  %vm849_vm2 = vcmask 261120   ;;  %2144 = vrot.lane.b32.xlu1 %v3200_v0, %s3090_s7  ;;  %vm3687_vm1 = vmand %vm3455_vm7, %vm657_vm3  ;;  %s3737_s7 = sld [smem:[#allocation2 + $0x19]] }
 0x15a   : > { %v1439_v39 = vstv %s3588_s26  ;;  %v593_v53 = vrot.slane %v586_v55, %v3305_v26  ;;  %v675_v36 = vadd.f32 %v671_v7, %v663_v48  ;;  %v676_v8 = vadd.f32 %v672_v4, %v664_v40  ;;  %v749_v40 = vpop.permute.xlu0 %748  ;;  %v752_v54 = vpop.permute.xlu1 %751  ;;  %vm3715_vm0 = vmand %vm3687_vm1, %vm659_vm6  ;;  %s4316_s26 = sld [smem:[#allocation2 + $0x54]] }
 0x15b   : > { %v715_v41 = vmul.f32 %v713_v45, %v706_v6  ;;  %v636_v58 = vrot.slane %v629_v27, %v3305_v26  ;;  %v714_v11 = vmul.f32 %v713_v45, %v709_v34  ;;  %v718_v10 = vmul.f32 %v717_v49, %v709_v34 }
 0x15c   : > { %v723_v48 = vrot.slane %v719_v32, 1  ;;  %v595_v31 = vsel %vm3653_vm12, %v593_v53, 0.0  ;;  %v679_v45 = vcombine.low %v675_v36, %v676_v8  ;;  %v754_v49 = vsel %vm753_vm10, %v752_v54, %v749_v40  ;;  %2190 = vrot.lane.b32.xlu0 %v3198_v63, %s3091_s13 }
 0x15d   : > { %v757_v44 = vsel %vm753_vm10, %v749_v40, %v752_v54  ;;  %v596_v7 = vadd.f32 %v595_v31, %v546_v38  ;;  %v643_v4 = vrot.slane %v636_v58, %v3305_v26  ;;  %v722_v6 = vrot.slane %v718_v10, 1  ;;  %2192 = vrot.lane.b32.xlu1 %v3200_v0, %s3091_s13  ;;  %s3781_s13 = sld [smem:[#allocation2 + $0x1a]] }
 0x15e   : > { %v727_v43 = vadd.f32 %v723_v48, %v715_v41  ;;  %vm897_vm7 = vcmask 252928   ;;  %v686_v38 = vrot.slane %v679_v45, %v3305_v26  ;;  %v766_v27 = vmul.f32 %v765_v51, %v757_v44  ;;  %v797_v10 = vpop.permute.xlu0 %796  ;;  %v800_v48 = vpop.permute.xlu1 %799 }
 0x15f   : > { %v1443_v34 = vstv %s3631_s6  ;;  %v1487_v32 = vstv %s3633_s23  ;;  %v645_v53 = vsel %vm3672_vm4, %v643_v4, 0.0  ;;  %v726_v8 = vadd.f32 %v722_v6, %v714_v11  ;;  %s4318_s6 = sld [smem:[#allocation2 + $0x24]]  ;;  %s4342_s23 = sld [smem:[#allocation2 + $0x55]] }
 0x160   : > { %v762_v41 = vmul.f32 %v761_v50, %v757_v44  ;;  %v767_v58 = vmul.f32 %v765_v51, %v754_v49  ;;  %v646_v40 = vadd.f32 %v645_v53, %v596_v7  ;;  %v693_v5 = vrot.slane %v686_v38, %v3305_v26  ;;  %2238 = vrot.lane.b32.xlu0 %v3198_v63, %s3092_s20 }
 0x161   : > { %vm5150_vm10 = vcmp.ge.s32.totalorder %v3298_v25, 3  ;;  %v770_v11 = vrot.slane %v766_v27, 1  ;;  %v802_v31 = vsel %vm801_vm15, %v800_v48, %v797_v10  ;;  %v730_v55 = vcombine.low %v726_v8, %v727_v43  ;;  %2240 = vrot.lane.b32.xlu1 %v3200_v0, %s3092_s20  ;;  %s3813_s20 = sld [smem:[#allocation2 + $0x4b]] }
 0x162   : > { %vm3728_vm8 = vmand %vm3698_vm13, %vm5150_vm10  ;;  %v763_v51 = vmul.f32 %v761_v50, %v754_v49  ;;  %v771_v45 = vrot.slane %v767_v58, 1  ;;  %v805_v44 = vsel %vm801_vm15, %v797_v10, %v800_v48  ;;  %vm945_vm12 = vcmask 244736   ;;  %v845_v36 = vpop.permute.xlu0 %844  ;;  %v848_v8 = vpop.permute.xlu1 %847 }
 0x163   : > { %v695_v7 = vsel %vm3715_vm0, %v693_v5, 0.0  ;;  %v774_v4 = vadd.f32 %v770_v11, %v762_v41  ;;  %v814_v6 = vmul.f32 %v813_v56, %v805_v44  ;;  %v1491_v50 = vstv %s3666_s8  ;;  %s4344_s8 = sld [smem:[#allocation2 + $0x25]] }
 0x164   : > { %v696_v49 = vadd.f32 %v695_v7, %v646_v40  ;;  %vm5154_vm15 = vcmp.lt.s32.totalorder %v3298_v25, 19  ;;  %v737_v38 = vrot.slane %v730_v55, %v3305_v26  ;;  %v775_v27 = vadd.f32 %v771_v45, %v763_v51  ;;  %2286 = vrot.lane.b32.xlu0 %v3198_v63, %s3093_s9 }
 0x165   : > { %vm3751_vm4 = vmand %vm3728_vm8, %vm5154_vm15  ;;  %v815_v53 = vmul.f32 %v813_v56, %v802_v31  ;;  %vm5158_vm1 = vcmp.ge.s32.totalorder %v3298_v25, 2  ;;  %v810_v58 = vmul.f32 %v809_v52, %v805_v44  ;;  %v818_v10 = vrot.slane %v814_v6, 1  ;;  %2288 = vrot.lane.b32.xlu1 %v3200_v0, %s3093_s9  ;;  %s3879_s9 = sld [smem:[#allocation2 + $0x1b]] }
 0x166   : > { %vm3762_vm0 = vmand %vm3698_vm13, %vm5158_vm1  ;;  %v850_v48 = vsel %vm849_vm2, %v848_v8, %v845_v36  ;;  %v853_v56 = vsel %vm849_vm2, %v845_v36, %v848_v8  ;;  %v744_v40 = vrot.slane %v737_v38, %v3305_v26  ;;  %v778_v5 = vcombine.low %v774_v4, %v775_v27  ;;  %v893_v6 = vpop.permute.xlu0 %892  ;;  %v896_v38 = vpop.permute.xlu1 %895 }
 0x167   : > { %v811_v54 = vmul.f32 %v809_v52, %v802_v31  ;;  %v819_v11 = vrot.slane %v815_v53, 1  ;;  %vm993_vm10 = vcmask 236544   ;;  %v822_v55 = vadd.f32 %v818_v10, %v810_v58 }
 0x168   : > { %v858_v51 = vmul.f32 %v857_v57, %v853_v56  ;;  %v862_v45 = vmul.f32 %v861_v60, %v853_v56  ;;  %v863_v44 = vmul.f32 %v861_v60, %v850_v48  ;;  %v746_v7 = vsel %vm3751_vm4, %v744_v40, 0.0  ;;  %2334 = vrot.lane.b32.xlu0 %v3198_v63, %s3094_s11 }
 0x169   : > { %vm5161_vm2 = vcmp.lt.s32.totalorder %v3298_v25, 18  ;;  %v785_v31 = vrot.slane %v778_v5, %v3305_v26  ;;  %v823_v4 = vadd.f32 %v819_v11, %v811_v54  ;;  %v859_v60 = vmul.f32 %v857_v57, %v850_v48  ;;  %2336 = vrot.lane.b32.xlu1 %v3200_v0, %s3094_s11  ;;  %s3887_s11 = sld [smem:[#allocation2 + $0x4c]] }
 0x16a   : > { %vm3789_vm8 = vmand %vm3762_vm0, %vm5161_vm2  ;;  %v747_v27 = vadd.f32 %v746_v7, %v696_v49  ;;  %vm5164_vm15 = vcmp.ge.s32.totalorder %v3298_v25, 1  ;;  %v866_v53 = vrot.slane %v862_v45, 1  ;;  %v867_v36 = vrot.slane %v863_v44, 1  ;;  %v941_v45 = vpop.permute.xlu0 %940  ;;  %v944_v44 = vpop.permute.xlu1 %943 }
 0x16b   : > { %vm3800_vm4 = vmand %vm3698_vm13, %vm5164_vm15  ;;  %v898_v8 = vsel %vm897_vm7, %v896_v38, %v893_v6  ;;  %v792_v41 = vrot.slane %v785_v31, %v3305_v26  ;;  %v826_v57 = vcombine.low %v822_v55, %v823_v4  ;;  %v901_v49 = vsel %vm897_vm7, %v893_v6, %v896_v38 }
 0x16c   : > { %vm1044_vm1 = vcmask 154624   ;;  %v1573_v58 = vstv %s3737_s7  ;;  %v870_v10 = vadd.f32 %v866_v53, %v858_v51  ;;  %v871_v48 = vadd.f32 %v867_v36, %v859_v60  ;;  %2385 = vrot.lane.b32.xlu0 %v3198_v63, %s3095_s12  ;;  %s4361_s7 = sld [smem:[#allocation2 + $0x56]] }
 0x16d   : > { %v910_v56 = vmul.f32 %v909_v62, %v901_v49  ;;  %v1577_v40 = vstv %s3745_s16  ;;  %v794_v5 = vsel %vm3789_vm8, %v792_v41, 0.0  ;;  %vm5167_vm7 = vcmp.lt.s32.totalorder %v3298_v25, 17  ;;  %2387 = vrot.lane.b32.xlu1 %v3200_v0, %s3095_s12  ;;  %s3100_s12 = smov 78   ;;  %s4363_s16 = sld [smem:[#allocation2 + $0x26]] }
 0x16e   : > { %vm3821_vm0 = vmand %vm3800_vm4, %vm5167_vm7  ;;  %v833_v11 = vrot.slane %v826_v57, %v3305_v26  ;;  %v906_v55 = vmul.f32 %v905_v61, %v901_v49  ;;  %v911_v51 = vmul.f32 %v909_v62, %v898_v8  ;;  %v795_v7 = vadd.f32 %v794_v5, %v747_v27 }
 0x16f   : > { %vm5171_vm2 = vcmp.ge.s32.totalorder %v3298_v25, 0  ;;  %v874_v31 = vcombine.low %v870_v10, %v871_v48  ;;  %v914_v4 = vrot.slane %v910_v56, 1  ;;  %v946_v60 = vsel %vm945_vm12, %v944_v44, %v941_v45  ;;  %v989_v48 = vpop.permute.xlu0 %988  ;;  %v992_v56 = vpop.permute.xlu1 %991 }
 0x170   : > { %vm3834_vm8 = vmand %vm3698_vm13, %vm5171_vm2  ;;  %v840_v6 = vrot.slane %v833_v11, %v3305_v26  ;;  %v907_v62 = vmul.f32 %v905_v61, %v898_v8  ;;  %v915_v38 = vrot.slane %v911_v51, 1  ;;  %v949_v27 = vsel %vm945_vm12, %v941_v45, %v944_v44  ;;  %2433 = vrot.lane.b32.xlu0 %v3198_v63, %s3096_s1 }
 0x171   : > { %vm1092_vm15 = vcmask 146432   ;;  %v881_v43 = vrot.slane %v874_v31, %v3305_v26  ;;  %v918_v53 = vadd.f32 %v914_v4, %v906_v55  ;;  %v958_v36 = vmul.f32 %v957_v2, %v949_v27  ;;  %2435 = vrot.lane.b32.xlu1 %v3200_v0, %s3096_s1  ;;  %s4079_s1 = sld [smem:[#allocation2 + $0x1f]] }
 0x172   : > { %vm1036_vm4 = vcmp.ge.s32.totalorder %v3283_v20, 1  ;;  %vm1037_vm7 = vcmp.lt.s32.totalorder %v3283_v20, 17  ;;  %v1621_v61 = vstv %s3781_s13  ;;  %v842_v8 = vsel %vm3821_vm0, %v840_v6, 0.0  ;;  %vm3870_vm0 = vmand %vm3698_vm13, %vm557_vm9 }
 0x173   : > { %vm5175_vm12 = vcmp.lt.s32.totalorder %v3298_v25, 16  ;;  %v919_v57 = vadd.f32 %v915_v38, %v907_v62  ;;  %v954_v49 = vmul.f32 %v953_v1, %v949_v27  ;;  %v959_v10 = vmul.f32 %v957_v2, %v946_v60 }
 0x174   : > { %vm3857_vm2 = vmand %vm3834_vm8, %vm5175_vm12  ;;  %v843_v5 = vadd.f32 %v842_v8, %v795_v7  ;;  %v888_v54 = vrot.slane %v881_v43, %v3305_v26  ;;  %v962_v55 = vrot.slane %v958_v36, 1  ;;  %v994_v51 = vsel %vm993_vm10, %v992_v56, %v989_v48  ;;  %v1040_v43 = vpop.permute.xlu0 %1039  ;;  %2481 = vrot.lane.b32.xlu0 %v3198_v63, %s3097_s15 }
 0x175   : > { %v922_v45 = vcombine.low %v918_v53, %v919_v57  ;;  %v955_v2 = vmul.f32 %v953_v1, %v946_v60  ;;  %v963_v44 = vrot.slane %v959_v10, 1  ;;  %v997_v7 = vsel %vm993_vm10, %v989_v48, %v992_v56  ;;  %vm3893_vm10 = vmand %vm3870_vm0, %vm559_vm14  ;;  %v1043_v53 = vpop.permute.xlu1 %1042  ;;  %2483 = vrot.lane.b32.xlu1 %v3200_v0, %s3097_s15  ;;  %s4425_s15 = sld [smem:[#allocation2 + $0x58]] }
 0x176   : > { %vm1140_vm8 = vcmask 138240   ;;  %v890_v52 = vsel %vm3857_vm2, %v888_v54, 0.0  ;;  %v966_v31 = vadd.f32 %v962_v55, %v954_v49  ;;  %v1006_v4 = vmul.f32 %v1005_v18, %v997_v7 }
 0x177   : > { %v1625_v1 = vstv %s3813_s20  ;;  %v891_v60 = vadd.f32 %v890_v52, %v843_v5  ;;  %v929_v62 = vrot.slane %v922_v45, %v3305_v26  ;;  %v967_v38 = vadd.f32 %v963_v44, %v955_v2 }
 0x178   : > { %v1007_v27 = vmul.f32 %v1005_v18, %v994_v51  ;;  %vm5183_vm12 = vcmp.ge.s32.totalorder %v3298_v25, 4294967294  ;;  %v1002_v8 = vmul.f32 %v1001_v16, %v997_v7  ;;  %v1010_v41 = vrot.slane %v1006_v4, 1  ;;  %v1088_v44 = vpop.permute.xlu0 %1087  ;;  %2529 = vrot.lane.b32.xlu0 %v3198_v63, %s3098_s4 }
 0x179   : > { %vm3904_vm2 = vmand %vm3698_vm13, %vm5183_vm12  ;;  %v1045_v57 = vsel %vm1044_vm1, %v1043_v53, %v1040_v43  ;;  %v1048_v18 = vsel %vm1044_vm1, %v1040_v43, %v1043_v53  ;;  %v936_v49 = vrot.slane %v929_v62, %v3305_v26  ;;  %v970_v10 = vcombine.low %v966_v31, %v967_v38  ;;  %v1091_v7 = vpop.permute.xlu1 %1090  ;;  %2531 = vrot.lane.b32.xlu1 %v3200_v0, %s3098_s4  ;;  %s4498_s4 = sld [smem:[#allocation2 + $0x59]] }
 0x17a   : > { %v1003_v48 = vmul.f32 %v1001_v16, %v994_v51  ;;  %v1011_v56 = vrot.slane %v1007_v27, 1  ;;  %vm1188_vm0 = vcmask 130048   ;;  %v1014_v5 = vadd.f32 %v1010_v41, %v1002_v8  ;;  %vm3931_vm1 = vmand %vm3904_vm2, %vm609_vm11 }
 0x17b   : > { %v1053_v54 = vmul.f32 %v1052_v29, %v1048_v18  ;;  %v1057_v11 = vmul.f32 %v1056_v30, %v1048_v18  ;;  %v1058_v55 = vmul.f32 %v1056_v30, %v1045_v57  ;;  %v938_v45 = vsel %vm3893_vm10, %v936_v49, 0.0  ;;  %vm3942_vm10 = vmand %vm3698_vm13, %vm657_vm3 }
 0x17c   : > { %v977_v51 = vrot.slane %v970_v10, %v3305_v26  ;;  %v1015_v2 = vadd.f32 %v1011_v56, %v1003_v48  ;;  %v1054_v30 = vmul.f32 %v1052_v29, %v1045_v57  ;;  %v939_v52 = vadd.f32 %v938_v45, %v891_v60  ;;  %vm3952_vm12 = vmand %vm1036_vm4, %vm1037_vm7  ;;  %v1136_v10 = vpop.permute.xlu0 %1135  ;;  %2577 = vrot.lane.b32.xlu0 %v3198_v63, %s3099_s0 }
 0x17d   : > { %v1061_v4 = vrot.slane %v1057_v11, 1  ;;  %v1062_v6 = vrot.slane %v1058_v55, 1  ;;  %v1093_v62 = vsel %vm1092_vm15, %v1091_v7, %v1088_v44  ;;  %v1096_v33 = vsel %vm1092_vm15, %v1088_v44, %v1091_v7  ;;  %vm3971_vm15 = vmand %vm3942_vm10, %vm659_vm6  ;;  %v1139_v48 = vpop.permute.xlu1 %1138  ;;  %2579 = vrot.lane.b32.xlu1 %v3200_v0, %s3099_s0  ;;  %s4584_s0 = sld [smem:[#allocation2 + $0x5a]] }
 0x17e   : > { %v984_v38 = vrot.slane %v977_v51, %v3305_v26  ;;  %v1018_v29 = vcombine.low %v1014_v5, %v1015_v2  ;;  %vm1236_vm13 = vcmask 121856   ;;  %v1669_v27 = vstv %s3879_s9  ;;  %s5263_s9 = sld [smem:[#allocation15_spill]] }
 0x17f   : > { %v1065_v43 = vadd.f32 %v1061_v4, %v1053_v54  ;;  %v1066_v53 = vadd.f32 %v1062_v6, %v1054_v30  ;;  %v1105_v36 = vmul.f32 %v1104_v47, %v1096_v33  ;;  %v1673_v20 = vstv %s3887_s11  ;;  %s4377_s11 = sld [smem:[#allocation2 + $0x57]] }
 0x180   : > { %v986_v8 = vsel %vm3931_vm1, %v984_v38, 0.0  ;;  %v1025_v57 = vrot.slane %v1018_v29, %v3305_v26  ;;  %v1101_v18 = vmul.f32 %v1100_v46, %v1096_v33  ;;  %v1106_v49 = vmul.f32 %v1104_v47, %v1093_v62  ;;  %2625 = vrot.lane.b32.xlu0 %v3198_v63, %s3100_s12 }
 0x181   : > { %v987_v56 = vadd.f32 %v986_v8, %v939_v52  ;;  %vm5194_vm4 = vcmp.ge.s32.totalorder %v3298_v25, 3  ;;  %v1069_v54 = vcombine.low %v1065_v43, %v1066_v53  ;;  %v1109_v11 = vrot.slane %v1105_v36, 1  ;;  %v1187_v38 = vpop.permute.xlu1 %1186  ;;  %2627 = vrot.lane.b32.xlu1 %v3200_v0, %s3100_s12  ;;  %s4688_s12 = sld [smem:[#allocation2 + $0x5b]] }
 0x182   : > { %vm3984_vm7 = vmand %vm3952_vm12, %vm5194_vm4  ;;  %v1141_v55 = vsel %vm1140_vm8, %v1139_v48, %v1136_v10  ;;  %v1032_v45 = vrot.slane %v1025_v57, %v3305_v26  ;;  %v1102_v47 = vmul.f32 %v1100_v46, %v1093_v62  ;;  %v1110_v16 = vrot.slane %v1106_v49, 1  ;;  %v1184_v62 = vpop.permute.xlu0 %1183 }
 0x183   : > { %v1144_v51 = vsel %vm1140_vm8, %v1136_v10, %v1139_v48  ;;  %vm1284_vm2 = vcmask 113664   ;;  %v1076_v2 = vrot.slane %v1069_v54, %v3305_v26  ;;  %v1113_v30 = vadd.f32 %v1109_v11, %v1101_v18 }
 0x184   : > { %v1153_v44 = vmul.f32 %v1152_v9, %v1144_v51  ;;  %v1720_v7 = vstv %s3923_s2  ;;  %v1034_v46 = vsel %vm3971_vm15, %v1032_v45, 0.0  ;;  %vm5197_vm8 = vcmp.lt.s32.totalorder %v3298_v25, 19  ;;  %s4466_s2 = sld [smem:[#allocation2 + $0x28]] }
 0x185   : > { %vm4007_vm1 = vmand %vm3984_vm7, %vm5197_vm8  ;;  %v1114_v31 = vadd.f32 %v1110_v16, %v1102_v47  ;;  %v1149_v4 = vmul.f32 %v1148_v59, %v1144_v51  ;;  %v1154_v6 = vmul.f32 %v1152_v9, %v1141_v55  ;;  %v1035_v29 = vadd.f32 %v1034_v46, %v987_v56  ;;  %v1235_v47 = vpop.permute.xlu1 %1234 }
 0x186   : > { %v1083_v33 = vrot.slane %v1076_v2, %v3305_v26  ;;  %v1157_v43 = vrot.slane %v1153_v44, 1  ;;  %v1189_v53 = vsel %vm1188_vm0, %v1187_v38, %v1184_v62  ;;  %v1150_v8 = vmul.f32 %v1148_v59, %v1141_v55  ;;  %v1232_v45 = vpop.permute.xlu0 %1231 }
 0x187   : > { %v1117_v36 = vcombine.low %v1113_v30, %v1114_v31  ;;  %v1158_v41 = vrot.slane %v1154_v6, 1  ;;  %v1192_v57 = vsel %vm1188_vm0, %v1184_v62, %v1187_v38  ;;  %vm1332_vm10 = vcmask 105472  }
 0x188   : > { %v1085_v9 = vsel %vm4007_vm1, %v1083_v33, 0.0  ;;  %vm5200_vm15 = vcmp.ge.s32.totalorder %v3298_v25, 2  ;;  %v1161_v18 = vadd.f32 %v1157_v43, %v1149_v4  ;;  %v5203_v49 = vstv %s3409_s10  ;;  %s3101_s10 = smov 77  }
 0x189   : > { %vm4029_vm4 = vmand %vm3952_vm12, %vm5200_vm15  ;;  %v1201_v10 = vmul.f32 %v5203_v49, %v1192_v57  ;;  %v1724_v48 = vstv %s3963_s5  ;;  %v1086_v56 = vadd.f32 %v1085_v9, %v1035_v29  ;;  %v1124_v5 = vrot.slane %v1117_v36, %v3305_v26  ;;  %2673 = vrot.lane.b32.xlu0 %v3198_v63, %s3101_s10  ;;  %2675 = vrot.lane.b32.xlu1 %v3200_v0, %s3101_s10  ;;  %s4582_s5 = sld [smem:[#allocation2 + $0x29]]  ;;  %s4748_s10 = sld [smem:[#allocation2 + $0x2c]] }
 0x18a   : > { %v1162_v54 = vadd.f32 %v1158_v41, %v1150_v8  ;;  %v5204_v11 = vmov %v5203_v49  ;;  %v5205_v16 = vstv %s3403_s27  ;;  %v1237_v30 = vsel %vm1236_vm13, %v1235_v47, %v1232_v45  ;;  %s4072_s27 = sld [smem:[#allocation2 + $0x4f]]  ;;  %v1280_v49 = vpop.permute.xlu0 %1279 }
 0x18b   : > { %v1202_v55 = vmul.f32 %v5204_v11, %v1189_v53  ;;  %v1197_v51 = vmul.f32 %v5205_v16, %v1192_v57  ;;  %v1205_v2 = vrot.slane %v1201_v10, 1  ;;  %v1240_v44 = vsel %vm1236_vm13, %v1232_v45, %v1235_v47  ;;  %v1283_v10 = vpop.permute.xlu1 %1282 }
 0x18c   : > { %vm5206_vm0 = vcmp.lt.s32.totalorder %v3298_v25, 18  ;;  %v1131_v52 = vrot.slane %v1124_v5, %v3305_v26  ;;  %v1165_v31 = vcombine.low %v1161_v18, %v1162_v54  ;;  %v5209_v4 = vmov %v5205_v16 }
 0x18d   : > { %vm4050_vm7 = vmand %vm4029_vm4, %vm5206_vm0  ;;  %v1198_v6 = vmul.f32 %v5209_v4, %v1189_v53  ;;  %v1206_v62 = vrot.slane %v1202_v55, 1  ;;  %vm1383_vm13 = vcmask 23552   ;;  %vm5210_vm8 = vcmp.ge.s32.totalorder %v3298_v25, 1 }
 0x18e   : > { %vm4062_vm1 = vmand %vm3952_vm12, %vm5210_vm8  ;;  %v1209_v29 = vadd.f32 %v1205_v2, %v1197_v51  ;;  %v5213_v33 = vstv %s3431_s30  ;;  %v1768_v53 = vstv %s3999_s18  ;;  %v1172_v63 = vrot.slane %v1165_v31, %v3305_v26  ;;  %s4106_s30 = sld [smem:[#allocation2 + $0x50]]  ;;  %s4643_s18 = sld [smem:[#allocation2 + $0x2a]] }
 0x18f   : > { %v1249_v43 = vmul.f32 %v5213_v33, %v1240_v44  ;;  %v5214_v36 = vmov %v5213_v33  ;;  %v1210_v41 = vadd.f32 %v1206_v62, %v1198_v6  ;;  %v5215_v57 = vstv %s3420_s28  ;;  %v1331_v33 = vpop.permute.xlu1 %1330  ;;  %s4212_s28 = sld [smem:[#allocation2 + $0x21]] }
 0x190   : > { %v1250_v8 = vmul.f32 %v5214_v36, %v1237_v30  ;;  %v1245_v9 = vmul.f32 %v5215_v57, %v1240_v44  ;;  %v5216_v59 = vmov %v5215_v57  ;;  %v1133_v0 = vsel %vm4050_vm7, %v1131_v52, 0.0 }
 0x191   : > { %v1246_v18 = vmul.f32 %v5216_v59, %v1237_v30  ;;  %v1253_v5 = vrot.slane %v1249_v43, 1  ;;  %v1285_v11 = vsel %vm1284_vm2, %v1283_v10, %v1280_v49  ;;  %vm5217_vm15 = vcmp.lt.s32.totalorder %v3298_v25, 17 }
 0x192   : > { %v1254_v54 = vrot.slane %v1250_v8, 1  ;;  %vm4088_vm4 = vmand %vm4062_vm1, %vm5217_vm15  ;;  %v1179_v45 = vrot.slane %v1172_v63, %v3305_v26  ;;  %v1213_v47 = vcombine.low %v1209_v29, %v1210_v41  ;;  %v1288_v16 = vsel %vm1284_vm2, %v1280_v49, %v1283_v10  ;;  %v1328_v29 = vpop.permute.xlu0 %1327 }
 0x193   : > { %vm1431_vm0 = vcmask 15360   ;;  %v1772_v51 = vstv %s4021_s22  ;;  %vm5220_vm7 = vcmp.ge.s32.totalorder %v3298_v25, 0  ;;  %v1257_v30 = vadd.f32 %v1253_v5, %v1245_v9  ;;  %s4716_s22 = sld [smem:[#allocation2 + $0x2b]] }
 0x194   : > { %vm4099_vm8 = vmand %vm3952_vm12, %vm5220_vm7  ;;  %v1258_v44 = vadd.f32 %v1254_v54, %v1246_v18  ;;  %v1297_v46 = vmul.f32 %v1296_v37, %v1288_v16  ;;  %v1816_v52 = vstv %s4037_s29  ;;  %v1134_v31 = vadd.f32 %v1133_v0, %v1086_v56  ;;  %s4718_s29 = sld [smem:[#allocation2 + $0x5c]] }
 0x195   : > { %v1220_v4 = vrot.slane %v1213_v47, %v3305_v26  ;;  %v5223_v6 = vstv %s3433_s3  ;;  %v1298_v38 = vmul.f32 %v1296_v37, %v1285_v11  ;;  %v1181_v43 = vsel %vm4088_vm4, %v1179_v45, 0.0  ;;  %v1382_v47 = vpop.permute.xlu1 %1381  ;;  %s4163_s3 = sld [smem:[#allocation2 + $0x20]] }
 0x196   : > { %v1293_v62 = vmul.f32 %v5223_v6, %v1288_v16  ;;  %v1261_v36 = vcombine.low %v1257_v30, %v1258_v44  ;;  %v1301_v8 = vrot.slane %v1297_v46, 1  ;;  %v1333_v63 = vsel %vm1332_vm10, %v1331_v33, %v1328_v29  ;;  %v1379_v45 = vpop.permute.xlu0 %1378 }
 0x197   : > { %vm5224_vm2 = vcmp.lt.s32.totalorder %v3298_v25, 16  ;;  %v1227_v37 = vrot.slane %v1220_v4, %v3305_v26  ;;  %v5227_v41 = vmov %v5223_v6  ;;  %v1302_v9 = vrot.slane %v1298_v38, 1 }
 0x198   : > { %vm4120_vm1 = vmand %vm4099_vm8, %vm5224_vm2  ;;  %v1294_v57 = vmul.f32 %v5227_v41, %v1285_v11  ;;  %v1336_v59 = vsel %vm1332_vm10, %v1328_v29, %v1331_v33  ;;  %vm1479_vm15 = vcmask 7168   ;;  %v1268_v18 = vrot.slane %v1261_v36, %v3305_v26 }
 0x199   : > { %v1305_v49 = vadd.f32 %v1301_v8, %v1293_v62  ;;  %v1345_v10 = vmul.f32 %v1344_v19, %v1336_v59  ;;  %v1820_v0 = vstv %s4072_s27  ;;  %v1182_v5 = vadd.f32 %v1181_v43, %v1134_v31  ;;  %vm4141_vm10 = vmand %vm3952_vm12, %vm557_vm9  ;;  %s4753_s27 = sld [smem:[#allocation2 + $0x5d]] }
 0x19a   : > { %v1306_v54 = vadd.f32 %v1302_v9, %v1294_v57  ;;  %v1346_v55 = vmul.f32 %v1344_v19, %v1333_v63  ;;  %v1864_v11 = vstv %s4079_s1  ;;  %v1229_v16 = vsel %vm4120_vm1, %v1227_v37, 0.0  ;;  %v1427_v9 = vpop.permute.xlu0 %1426  ;;  %s4755_s1 = sld [smem:[#allocation2 + $0x2d]] }
 0x19b   : > { %v5230_v30 = vstv %s3449_s17  ;;  %v1349_v46 = vrot.slane %v1345_v10, 1  ;;  %v1384_v19 = vsel %vm1383_vm13, %v1382_v47, %v1379_v45  ;;  %v1387_v38 = vsel %vm1383_vm13, %v1379_v45, %v1382_v47  ;;  %vm4169_vm13 = vmand %vm4141_vm10, %vm559_vm14  ;;  %s4238_s17 = sld [smem:[#allocation2 + $0x52]] }
 0x19c   : > { %v1341_v44 = vmul.f32 %v5230_v30, %v1336_v59  ;;  %v1309_v31 = vcombine.low %v1305_v49, %v1306_v54  ;;  %v5231_v4 = vmov %v5230_v30  ;;  %v1350_v62 = vrot.slane %v1346_v55, 1  ;;  %v1430_v59 = vpop.permute.xlu1 %1429 }
 0x19d   : > { %v1342_v6 = vmul.f32 %v5231_v4, %v1333_v63  ;;  %vm1564_vm4 = vcmask 1039360   ;;  %v1275_v29 = vrot.slane %v1268_v18, %v3305_v26  ;;  %vm5232_vm7 = vcmp.ge.s32.totalorder %v3298_v25, 4294967294 }
 0x19e   : > { %vm4156_vm8 = vmand %vm3952_vm12, %vm5232_vm7  ;;  %v1353_v43 = vadd.f32 %v1349_v46, %v1341_v44  ;;  %v1396_v36 = vmul.f32 %v1395_v42, %v1387_v38  ;;  %v1868_v8 = vstv %s4106_s30  ;;  %v1230_v63 = vadd.f32 %v1229_v16, %v1182_v5  ;;  %s4772_s30 = sld [smem:[#allocation2 + $0x5e]] }
 0x19f   : > { %v1316_v37 = vrot.slane %v1309_v31, %v3305_v26  ;;  %v1354_v41 = vadd.f32 %v1350_v62, %v1342_v6  ;;  %v1397_v57 = vmul.f32 %v1395_v42, %v1384_v19  ;;  %v1392_v18 = vmul.f32 %v1391_v35, %v1387_v38  ;;  %vm4184_vm2 = vmand %vm4156_vm8, %vm609_vm11  ;;  %v1475_v6 = vpop.permute.xlu0 %1474 }
 0x1a0   : > { %v1400_v49 = vrot.slane %v1396_v36, 1  ;;  %v1432_v10 = vsel %vm1431_vm0, %v1430_v59, %v1427_v9  ;;  %v1435_v5 = vsel %vm1431_vm0, %v1427_v9, %v1430_v59  ;;  %v1393_v45 = vmul.f32 %v1391_v35, %v1384_v19  ;;  %vm4197_vm0 = vmand %vm3952_vm12, %vm657_vm3  ;;  %v1478_v60 = vpop.permute.xlu1 %1477 }
 0x1a1   : > { %v1323_v42 = vrot.slane %v1316_v37, %v3305_v26  ;;  %v1357_v55 = vcombine.low %v1353_v43, %v1354_v41  ;;  %v1401_v47 = vrot.slane %v1397_v57, 1  ;;  %vm1612_vm1 = vcmask 1031168   ;;  %vm4221_vm12 = vmand %vm4197_vm0, %vm659_vm6 }
 0x1a2   : > { %v1277_v16 = vsel %vm4169_vm13, %v1275_v29, 0.0  ;;  %v1404_v30 = vadd.f32 %v1400_v49, %v1392_v18  ;;  %v1444_v44 = vmul.f32 %v1443_v34, %v1435_v5  ;;  %v1445_v46 = vmul.f32 %v1443_v34, %v1432_v10 }
 0x1a3   : > { %v1364_v35 = vrot.slane %v1357_v55, %v3305_v26  ;;  %v1405_v19 = vadd.f32 %v1401_v47, %v1393_v45  ;;  %v1440_v31 = vmul.f32 %v1439_v39, %v1435_v5  ;;  %v1441_v4 = vmul.f32 %v1439_v39, %v1432_v10  ;;  %v1561_v5 = vpop.permute.xlu0 %1560 }
 0x1a4   : > { %v1325_v62 = vsel %vm4184_vm2, %v1323_v42, 0.0  ;;  %v1448_v38 = vrot.slane %v1444_v44, 1  ;;  %v1449_v34 = vrot.slane %v1445_v46, 1  ;;  %v1480_v29 = vsel %vm1479_vm15, %v1478_v60, %v1475_v6  ;;  %v1563_v54 = vpop.permute.xlu1 %1562 }
 0x1a5   : > { %v1278_v33 = vadd.f32 %v1277_v16, %v1230_v63  ;;  %v1371_v43 = vrot.slane %v1364_v35, %v3305_v26  ;;  %v1408_v36 = vcombine.low %v1404_v30, %v1405_v19  ;;  %v1483_v56 = vsel %vm1479_vm15, %v1475_v6, %v1478_v60 }
 0x1a6   : > { %vm1660_vm10 = vcmask 1022976   ;;  %vm5243_vm7 = vcmp.ge.s32.totalorder %v3298_v25, 3  ;;  %v1452_v37 = vadd.f32 %v1448_v38, %v1440_v31  ;;  %v1453_v41 = vadd.f32 %v1449_v34, %v1441_v4 }
 0x1a7   : > { %vm4231_vm8 = vmand %vm3329_vm5, %vm5243_vm7  ;;  %v1492_v57 = vmul.f32 %v1491_v50, %v1483_v56  ;;  %v1912_v9 = vstv %s4163_s3  ;;  %v1326_v59 = vadd.f32 %v1325_v62, %v1278_v33  ;;  %v1415_v18 = vrot.slane %v1408_v36, %v3305_v26  ;;  %v1609_v62 = vpop.permute.xlu0 %1608  ;;  %s4787_s3 = sld [smem:[#allocation2 + $0x2e]] }
 0x1a8   : > { %v1488_v49 = vmul.f32 %v1487_v32, %v1483_v56  ;;  %v1493_v10 = vmul.f32 %v1491_v50, %v1480_v29  ;;  %v1373_v42 = vsel %vm4221_vm12, %v1371_v43, 0.0  ;;  %v1456_v55 = vcombine.low %v1452_v37, %v1453_v41  ;;  %v1611_v38 = vpop.permute.xlu1 %1610 }
 0x1a9   : > { %v1496_v45 = vrot.slane %v1492_v57, 1  ;;  %v1565_v47 = vsel %vm1564_vm4, %v1561_v5, %v1563_v54  ;;  %vm5246_vm15 = vcmp.lt.s32.totalorder %v3298_v25, 19  ;;  %v1422_v50 = vrot.slane %v1415_v18, %v3305_v26 }
 0x1aa   : > { %vm4252_vm13 = vmand %vm4231_vm8, %vm5246_vm15  ;;  %v1489_v2 = vmul.f32 %v1487_v32, %v1480_v29  ;;  %v1497_v30 = vrot.slane %v1493_v10, 1  ;;  %v1569_v44 = vsel %vm1564_vm4, %v1563_v54, %v1561_v5  ;;  %vm1711_vm2 = vcmask 941056  }
 0x1ab   : > { %v1463_v46 = vrot.slane %v1456_v55, %v3305_v26  ;;  %v1500_v35 = vadd.f32 %v1496_v45, %v1488_v49  ;;  %v1578_v19 = vmul.f32 %v1577_v40, %v1565_v47  ;;  %v1916_v31 = vstv %s4205_s19  ;;  %s4789_s19 = sld [smem:[#allocation2 + $0x5f]] }
 0x1ac   : > { %v1374_v4 = vadd.f32 %v1373_v42, %v1326_v59  ;;  %v1501_v6 = vadd.f32 %v1497_v30, %v1489_v2  ;;  %v1579_v60 = vmul.f32 %v1577_v40, %v1569_v44  ;;  %v1960_v34 = vstv %s4212_s28  ;;  %v1657_v42 = vpop.permute.xlu0 %1656  ;;  %v1659_v55 = vpop.permute.xlu1 %1658  ;;  %s4829_s28 = sld [smem:[#allocation2 + $0x2f]] }
 0x1ad   : > { %v1424_v32 = vsel %vm4252_vm13, %v1422_v50, 0.0  ;;  %vm5249_vm4 = vcmp.ge.s32.totalorder %v3298_v25, 2  ;;  %v1574_v33 = vmul.f32 %v1573_v58, %v1565_v47  ;;  %v1582_v39 = vrot.slane %v1578_v19, 1 }
 0x1ae   : > { %vm4273_vm0 = vmand %vm3329_vm5, %vm5249_vm4  ;;  %v1613_v40 = vsel %vm1612_vm1, %v1609_v62, %v1611_v38  ;;  %v1504_v43 = vcombine.low %v1500_v35, %v1501_v6  ;;  %v1575_v36 = vmul.f32 %v1573_v58, %v1569_v44  ;;  %v1583_v56 = vrot.slane %v1579_v60, 1 }
 0x1af   : > { %v1617_v63 = vsel %vm1612_vm1, %v1611_v38, %v1609_v62  ;;  %vm1759_vm12 = vcmask 932864   ;;  %v1470_v37 = vrot.slane %v1463_v46, %v3305_v26  ;;  %vm5252_vm7 = vcmp.ge.s32.totalorder %v3298_v25, 1 }
 0x1b0   : > { %vm4292_vm8 = vmand %vm3329_vm5, %vm5252_vm7  ;;  %v1586_v58 = vadd.f32 %v1582_v39, %v1574_v33  ;;  %v1626_v57 = vmul.f32 %v1625_v1, %v1613_v40  ;;  %v1964_v59 = vstv %s4238_s17  ;;  %v1425_v18 = vadd.f32 %v1424_v32, %v1374_v4  ;;  %v1710_v29 = vpop.permute.xlu1 %1709  ;;  %s4831_s17 = sld [smem:[#allocation2 + $0x60]] }
 0x1b1   : > { %vm5255_vm1 = vcmp.lt.s32.totalorder %v3298_v25, 18  ;;  %v1511_v10 = vrot.slane %v1504_v43, %v3305_v26  ;;  %v1587_v5 = vadd.f32 %v1583_v56, %v1575_v36  ;;  %v1627_v54 = vmul.f32 %v1625_v1, %v1617_v63 }
 0x1b2   : > { %vm4305_vm15 = vmand %vm4273_vm0, %vm5255_vm1  ;;  %v1622_v45 = vmul.f32 %v1621_v61, %v1613_v40  ;;  %v1630_v47 = vrot.slane %v1626_v57, 1  ;;  %v1661_v16 = vsel %vm1660_vm10, %v1657_v42, %v1659_v55  ;;  %v1665_v50 = vsel %vm1660_vm10, %v1659_v55, %v1657_v42 }
 0x1b3   : > { %vm5258_vm13 = vcmp.lt.s32.totalorder %v3298_v25, 17  ;;  %v1518_v2 = vrot.slane %v1511_v10, %v3305_v26  ;;  %v1590_v30 = vcombine.low %v1586_v58, %v1587_v5  ;;  %v1623_v44 = vmul.f32 %v1621_v61, %v1617_v63  ;;  %v1708_v61 = vpop.permute.xlu0 %1707  ;;  %vm4353_vm0 = vmand %vm3329_vm5, %vm557_vm9  ;;  %v4369_v10 = vld [vmem:[%s5263_s9] sm:$0x3] }
 0x1b4   : > { %vm4324_vm4 = vmand %vm4292_vm8, %vm5258_vm13  ;;  %v1631_v46 = vrot.slane %v1627_v54, 1  ;;  %v1472_v35 = vsel %vm4305_vm15, %v1470_v37, 0.0  ;;  %v1634_v19 = vadd.f32 %v1630_v47, %v1622_v45  ;;  %v1674_v4 = vmul.f32 %v1673_v20, %v1661_v16  ;;  %v1758_v55 = vpop.permute.xlu1 %1757 }
 0x1b5   : > { %v1675_v6 = vmul.f32 %v1673_v20, %v1665_v50  ;;  %vm1807_vm10 = vcmask 924672   ;;  %v1597_v60 = vrot.slane %v1590_v30, %v3305_v26  ;;  %v1670_v38 = vmul.f32 %v1669_v27, %v1661_v16  ;;  %vm4383_vm1 = vmand %vm4353_vm0, %vm559_vm14 }
 0x1b6   : > { %v1635_v62 = vadd.f32 %v1631_v46, %v1623_v44  ;;  %v1671_v32 = vmul.f32 %v1669_v27, %v1665_v50  ;;  %v1520_v20 = vsel %vm4324_vm4, %v1518_v2, 0.0  ;;  %v1678_v33 = vrot.slane %v1674_v4, 1 }
 0x1b7   : > { %v1679_v39 = vrot.slane %v1675_v6, 1  ;;  %v1712_v40 = vsel %vm1711_vm2, %v1708_v61, %v1710_v29  ;;  %v1473_v43 = vadd.f32 %v1472_v35, %v1425_v18  ;;  %v1716_v36 = vsel %vm1711_vm2, %v1710_v29, %v1708_v61  ;;  %v1756_v42 = vpop.permute.xlu0 %1755 }
 0x1b8   : > { %v2008_v56 = vstv %s4283_s14  ;;  %v2012_v63 = vstv %s4285_s21  ;;  %v1638_v37 = vcombine.low %v1634_v19, %v1635_v62  ;;  %v1682_v41 = vadd.f32 %v1678_v33, %v1670_v38  ;;  %s4888_s14 = sld [smem:[#allocation2 + $0x61]]  ;;  %s4934_s21 = sld [smem:[#allocation2 + $0x30]] }
 0x1b9   : > { %v1683_v58 = vadd.f32 %v1679_v39, %v1671_v32  ;;  %vm1855_vm7 = vcmask 916480   ;;  %v2059_v57 = vstv %s4299_s24  ;;  %v1521_v18 = vadd.f32 %v1520_v20, %v1473_v43  ;;  %v1806_v20 = vpop.permute.xlu1 %1805  ;;  %s5358_s24 = sld [smem:[#allocation6_spill]] }
 0x1ba   : > { %v1604_v49 = vrot.slane %v1597_v60, %v3305_v26  ;;  %vm1704_vm2 = vcmp.ge.s32.totalorder %v4369_v10, 4294967295  ;;  %vm1705_vm8 = vcmp.lt.s32.totalorder %v4369_v10, 15  ;;  %v1725_v5 = vmul.f32 %v1724_v48, %v1712_v40 }
 0x1bb   : > { %v1726_v54 = vmul.f32 %v1724_v48, %v1716_v36  ;;  %v1760_v47 = vsel %vm1759_vm12, %v1756_v42, %v1758_v55  ;;  %v1764_v16 = vsel %vm1759_vm12, %v1758_v55, %v1756_v42  ;;  %v2063_v48 = vstv %s4316_s26  ;;  %v1804_v62 = vpop.permute.xlu0 %1803 }
 0x1bc   : > { %v2107_v50 = vstv %s4318_s6  ;;  %v1721_v1 = vmul.f32 %v1720_v7, %v1712_v40  ;;  %v1722_v2 = vmul.f32 %v1720_v7, %v1716_v36  ;;  %v1729_v30 = vrot.slane %v1725_v5, 1 }
 0x1bd   : > { %v1730_v44 = vrot.slane %v1726_v54, 1  ;;  %v1645_v46 = vrot.slane %v1638_v37, %v3305_v26  ;;  %v1686_v35 = vcombine.low %v1682_v41, %v1683_v58  ;;  %v1773_v19 = vmul.f32 %v1772_v51, %v1760_v47 }
 0x1be   : > { %v1774_v4 = vmul.f32 %v1772_v51, %v1764_v16  ;;  %vm1903_vm12 = vcmask 908288   ;;  %v1559_v6 = vadd.f32 %v3413_v3, %v1521_v18  ;;  %v1606_v60 = vsel %vm4383_vm1, %v1604_v49, 0.0 }
 0x1bf   : > { %v2111_v7 = vstv %s4342_s23  ;;  %v2155_v38 = vstv %s4344_s8  ;;  %vm5266_vm15 = vcmp.ge.s32.totalorder %v3298_v25, 4294967294  ;;  %v1733_v51 = vadd.f32 %v1729_v30, %v1721_v1  ;;  %v1852_v5 = vpop.permute.xlu0 %1851  ;;  %s5359_s26 = sshll.u32 %s5358_s24, 6  ;;  %s5360_s8 = sld [smem:[#allocation20_spill]] }
 0x1c0   : > { %vm4411_vm13 = vmand %vm3329_vm5, %vm5266_vm15  ;;  %v1734_v61 = vadd.f32 %v1730_v44, %v1722_v2  ;;  %v1777_v29 = vrot.slane %v1773_v19, 1  ;;  %v1778_v3 = vrot.slane %v1774_v4, 1  ;;  %v1769_v33 = vmul.f32 %v1768_v53, %v1760_v47 }
 0x1c1   : > { %v1770_v39 = vmul.f32 %v1768_v53, %v1764_v16  ;;  %v1808_v40 = vsel %vm1807_vm10, %v1804_v62, %v1806_v20  ;;  %v1812_v43 = vsel %vm1807_vm10, %v1806_v20, %v1804_v62  ;;  %v1652_v27 = vrot.slane %v1645_v46, %v3305_v26  ;;  %vm4431_vm0 = vmand %vm4411_vm13, %vm609_vm11  ;;  %v1854_v16 = vpop.permute.xlu1 %1853 }
 0x1c2   : > { %v1693_v36 = vrot.slane %v1686_v35, %v3305_v26  ;;  %vm1951_vm4 = vcmask 900096   ;;  %v2159_v37 = vstv %s4361_s7  ;;  %v2203_v41 = vstv %s4363_s16  ;;  %vm4442_vm10 = vmand %vm3329_vm5, %vm657_vm3 }
 0x1c3   : > { %v1781_v58 = vadd.f32 %v1777_v29, %v1769_v33  ;;  %v1782_v18 = vadd.f32 %v1778_v3, %v1770_v39  ;;  %v1821_v49 = vmul.f32 %v1820_v0, %v1808_v40  ;;  %v2207_v54 = vstv %s4377_s11  ;;  %vm4460_vm5 = vmand %vm1704_vm2, %vm1705_vm8 }
 0x1c4   : > { %v1607_v42 = vadd.f32 %v1606_v60, %v1559_v6  ;;  %v1737_v45 = vcombine.low %v1733_v51, %v1734_v61  ;;  %v1822_v47 = vmul.f32 %v1820_v0, %v1812_v43  ;;  %v2251_v1 = vstv %s4391_s25  ;;  %v1900_v61 = vpop.permute.xlu0 %1899 }
 0x1c5   : > { %v1817_v2 = vmul.f32 %v1816_v52, %v1808_v40  ;;  %v1825_v30 = vrot.slane %v1821_v49, 1  ;;  %v1856_v44 = vsel %vm1855_vm7, %v1852_v5, %v1854_v16  ;;  %v1860_v46 = vsel %vm1855_vm7, %v1854_v16, %v1852_v5  ;;  %vm4472_vm7 = vmand %vm4442_vm10, %vm659_vm6  ;;  %v1902_v33 = vpop.permute.xlu1 %1901  ;;  %s258_s7 = scalar_lea.vmem %s5360_s8, %s5359_s26 }
 0x1c6   : > { %v1654_v28 = vsel %vm4431_vm0, %v1652_v27, 0.0  ;;  %v1700_v35 = vrot.slane %v1693_v36, %v3305_v26  ;;  %v1818_v19 = vmul.f32 %v1816_v52, %v1812_v43  ;;  %v1826_v4 = vrot.slane %v1822_v47, 1 }
 0x1c7   : > { %v1785_v60 = vcombine.low %v1781_v58, %v1782_v18  ;;  %v1829_v62 = vadd.f32 %v1825_v30, %v1817_v2  ;;  %v1869_v32 = vmul.f32 %v1868_v8, %v1856_v44  ;;  %v1870_v51 = vmul.f32 %v1868_v8, %v1860_v46 }
 0x1c8   : > { %vm1999_vm2 = vcmask 891904   ;;  %v1744_v52 = vrot.slane %v1737_v45, %v3305_v26  ;;  %v1830_v29 = vadd.f32 %v1826_v4, %v1818_v19  ;;  %v1865_v3 = vmul.f32 %v1864_v11, %v1856_v44  ;;  %v1948_v45 = vpop.permute.xlu0 %1947 }
 0x1c9   : > { %v1866_v20 = vmul.f32 %v1864_v11, %v1860_v46  ;;  %vm5277_vm8 = vcmp.ge.s32.totalorder %v3298_v25, 3  ;;  %v1873_v8 = vrot.slane %v1869_v32, 1  ;;  %v1874_v40 = vrot.slane %v1870_v51, 1  ;;  %v1950_v44 = vpop.permute.xlu1 %1949 }
 0x1ca   : > { %vm4489_vm1 = vmand %vm4460_vm5, %vm5277_vm8  ;;  %v1904_v43 = vsel %vm1903_vm12, %v1900_v61, %v1902_v33  ;;  %v1908_v27 = vsel %vm1903_vm12, %v1902_v33, %v1900_v61  ;;  %v1655_v36 = vadd.f32 %v1654_v28, %v1607_v42  ;;  %v1702_v11 = vsel %vm4472_vm7, %v1700_v35, 0.0 }
 0x1cb   : > { %v1833_v53 = vcombine.low %v1829_v62, %v1830_v29  ;;  %vm2050_vm15 = vcmask 809984   ;;  %v2255_v58 = vstv %s4425_s15  ;;  %v1792_v18 = vrot.slane %v1785_v60, %v3305_v26 }
 0x1cc   : > { %v1877_v49 = vadd.f32 %v1873_v8, %v1865_v3  ;;  %v1878_v5 = vadd.f32 %v1874_v40, %v1866_v20  ;;  %v1917_v55 = vmul.f32 %v1916_v31, %v1904_v43  ;;  %vm5280_vm12 = vcmp.lt.s32.totalorder %v3298_v25, 19  ;;  %v1996_v3 = vpop.permute.xlu0 %1995 }
 0x1cd   : > { %vm4507_vm13 = vmand %vm4489_vm1, %vm5280_vm12  ;;  %v1751_v47 = vrot.slane %v1744_v52, %v3305_v26  ;;  %v1840_v16 = vrot.slane %v1833_v53, %v3305_v26  ;;  %v1913_v2 = vmul.f32 %v1912_v9, %v1904_v43  ;;  %v1918_v30 = vmul.f32 %v1916_v31, %v1908_v27 }
 0x1ce   : > { %vm5283_vm0 = vcmp.ge.s32.totalorder %v3298_v25, 2  ;;  %v1881_v28 = vcombine.low %v1877_v49, %v1878_v5  ;;  %v1921_v35 = vrot.slane %v1917_v55, 1  ;;  %v1952_v19 = vsel %vm1951_vm4, %v1948_v45, %v1950_v44 }
 0x1cf   : > { %vm4521_vm10 = vmand %vm4460_vm5, %vm5283_vm0  ;;  %v1956_v4 = vsel %vm1951_vm4, %v1950_v44, %v1948_v45  ;;  %v1703_v6 = vadd.f32 %v1702_v11, %v1655_v36  ;;  %vm5286_vm7 = vcmp.ge.s32.totalorder %v3298_v25, 1  ;;  %v1914_v60 = vmul.f32 %v1912_v9, %v1908_v27 }
 0x1d0   : > { %vm4531_vm8 = vmand %vm4460_vm5, %vm5286_vm7  ;;  %v1922_v62 = vrot.slane %v1918_v30, 1  ;;  %v2299_v32 = vstv %s4466_s2  ;;  %v1799_v51 = vrot.slane %v1792_v18, %v3305_v26  ;;  %v1925_v61 = vadd.f32 %v1921_v35, %v1913_v2 }
 0x1d1   : > { %v1965_v52 = vmul.f32 %v1964_v59, %v1952_v19  ;;  %v1966_v29 = vmul.f32 %v1964_v59, %v1956_v4  ;;  %vm2098_vm4 = vcmask 801792   ;;  %v1753_v20 = vsel %vm4507_vm13, %v1751_v47, 0.0  ;;  %v1998_v59 = vpop.permute.xlu1 %1997 }
 0x1d2   : > { %vm5289_vm1 = vcmp.lt.s32.totalorder %v3298_v25, 18  ;;  %v1847_v33 = vrot.slane %v1840_v16, %v3305_v26  ;;  %v1888_v39 = vrot.slane %v1881_v28, %v3305_v26  ;;  %v1926_v8 = vadd.f32 %v1922_v62, %v1914_v60  ;;  %v2047_v16 = vpop.permute.xlu0 %2046 }
 0x1d3   : > { %vm4549_vm12 = vmand %vm4521_vm10, %vm5289_vm1  ;;  %vm5292_vm0 = vcmp.lt.s32.totalorder %v3298_v25, 17  ;;  %v1961_v43 = vmul.f32 %v1960_v34, %v1952_v19  ;;  %v1962_v27 = vmul.f32 %v1960_v34, %v1956_v4  ;;  %v1969_v36 = vrot.slane %v1965_v52, 1 }
 0x1d4   : > { %vm4559_vm13 = vmand %vm4531_vm8, %vm5292_vm0  ;;  %v1970_v11 = vrot.slane %v1966_v29, 1  ;;  %vm5295_vm10 = vcmp.ge.s32.totalorder %v3298_v25, 0  ;;  %v1929_v18 = vcombine.low %v1925_v61, %v1926_v8  ;;  %v2000_v49 = vsel %vm1999_vm2, %v1996_v3, %v1998_v59 }
 0x1d5   : > { %vm4571_vm7 = vmand %vm4460_vm5, %vm5295_vm10  ;;  %v2004_v5 = vsel %vm1999_vm2, %v1998_v59, %v1996_v3  ;;  %vm2146_vm8 = vcmask 793600   ;;  %v2303_v55 = vstv %s4498_s4  ;;  %v1754_v45 = vadd.f32 %v1753_v20, %v1703_v6  ;;  %v2049_v28 = vpop.permute.xlu1 %2048 }
 0x1d6   : > { %v1801_v34 = vsel %vm4549_vm12, %v1799_v51, 0.0  ;;  %v1973_v42 = vadd.f32 %v1969_v36, %v1961_v43  ;;  %v1974_v47 = vadd.f32 %v1970_v11, %v1962_v27  ;;  %vm2043_vm1 = vcmp.ge.s32.totalorder %v4369_v10, 4294967294  ;;  %v2095_v9 = vpop.permute.xlu0 %2094 }
 0x1d7   : > { %vm2044_vm0 = vcmp.lt.s32.totalorder %v4369_v10, 14  ;;  %v1849_v2 = vsel %vm4559_vm13, %v1847_v33, 0.0  ;;  %v1895_v30 = vrot.slane %v1888_v39, %v3305_v26  ;;  %v1936_v44 = vrot.slane %v1929_v18, %v3305_v26  ;;  %vm4608_vm13 = vmand %vm4460_vm5, %vm557_vm9 }
 0x1d8   : > { %v2013_v46 = vmul.f32 %v2012_v63, %v2000_v49  ;;  %vm5298_vm2 = vcmp.lt.s32.totalorder %v3298_v25, 16  ;;  %v1977_v19 = vcombine.low %v1973_v42, %v1974_v47  ;;  %v2014_v4 = vmul.f32 %v2012_v63, %v2004_v5 }
 0x1d9   : > { %vm4596_vm12 = vmand %vm4571_vm7, %vm5298_vm2  ;;  %v2051_v6 = vsel %vm2050_vm15, %v2047_v16, %v2049_v28  ;;  %v2055_v31 = vsel %vm2050_vm15, %v2049_v28, %v2047_v16  ;;  %v1802_v60 = vadd.f32 %v1801_v34, %v1754_v45  ;;  %v2009_v51 = vmul.f32 %v2008_v56, %v2000_v49  ;;  %v2097_v59 = vpop.permute.xlu1 %2096 }
 0x1da   : > { %v2010_v61 = vmul.f32 %v2008_v56, %v2004_v5  ;;  %v2017_v52 = vrot.slane %v2013_v46, 1  ;;  %v1984_v63 = vrot.slane %v1977_v19, %v3305_v26  ;;  %v2018_v29 = vrot.slane %v2014_v4, 1  ;;  %vm4632_vm2 = vmand %vm4608_vm13, %vm559_vm14  ;;  %v2143_v34 = vpop.permute.xlu0 %2142 }
 0x1db   : > { %v2064_v3 = vmul.f32 %v2063_v48, %v2051_v6  ;;  %v2065_v20 = vmul.f32 %v2063_v48, %v2055_v31  ;;  %vm2194_vm15 = vcmask 785408   ;;  %v1850_v33 = vadd.f32 %v1849_v2, %v1802_v60 }
 0x1dc   : > { %v1897_v39 = vsel %vm4596_vm12, %v1895_v30, 0.0  ;;  %v1943_v8 = vrot.slane %v1936_v44, %v3305_v26  ;;  %vm5303_vm10 = vcmp.ge.s32.totalorder %v3298_v25, 4294967294  ;;  %v2021_v56 = vadd.f32 %v2017_v52, %v2009_v51 }
 0x1dd   : > { %vm1957_vm7 = vmand %vm4460_vm5, %vm5303_vm10  ;;  %v2022_v40 = vadd.f32 %v2018_v29, %v2010_v61  ;;  %v2060_v43 = vmul.f32 %v2059_v57, %v2051_v6  ;;  %v2061_v27 = vmul.f32 %v2059_v57, %v2055_v31  ;;  %v2068_v36 = vrot.slane %v2064_v3, 1  ;;  %v2145_v46 = vpop.permute.xlu1 %2144 }
 0x1de   : > { %v1991_v11 = vrot.slane %v1984_v63, %v3305_v26  ;;  %v2069_v53 = vrot.slane %v2065_v20, 1  ;;  %v2099_v18 = vsel %vm2098_vm4, %v2095_v9, %v2097_v59  ;;  %v2103_v49 = vsel %vm2098_vm4, %v2097_v59, %v2095_v9  ;;  %vm4647_vm13 = vmand %vm1957_vm7, %vm609_vm11  ;;  %v2191_v29 = vpop.permute.xlu0 %2190 }
 0x1df   : > { %vm2242_vm12 = vcmask 777216   ;;  %v2025_v57 = vcombine.low %v2021_v56, %v2022_v40  ;;  %v2072_v45 = vadd.f32 %v2068_v36, %v2060_v43  ;;  %v2347_v42 = vstv %s4582_s5  ;;  %vm4661_vm4 = vmand %vm4460_vm5, %vm657_vm3 }
 0x1e0   : > { %v2351_v47 = vstv %s4584_s0  ;;  %v1898_v16 = vadd.f32 %v1897_v39, %v1850_v33  ;;  %v1945_v2 = vsel %vm4632_vm2, %v1943_v8, 0.0  ;;  %v2073_v30 = vadd.f32 %v2069_v53, %v2061_v27  ;;  %vm4676_vm5 = vmand %vm2043_vm1, %vm2044_vm0 }
 0x1e1   : > { %v2112_v44 = vmul.f32 %v2111_v7, %v2099_v18  ;;  %v2032_v35 = vrot.slane %v2025_v57, %v3305_v26  ;;  %v2113_v19 = vmul.f32 %v2111_v7, %v2103_v49  ;;  %v2147_v4 = vsel %vm2146_vm8, %v2143_v34, %v2145_v46 }
 0x1e2   : > { %v2151_v6 = vsel %vm2146_vm8, %v2145_v46, %v2143_v34  ;;  %v1993_v31 = vsel %vm4647_vm13, %v1991_v11, 0.0  ;;  %v2076_v60 = vcombine.low %v2072_v45, %v2073_v30  ;;  %v2108_v62 = vmul.f32 %v2107_v50, %v2099_v18  ;;  %vm4694_vm8 = vmand %vm4661_vm4, %vm659_vm6  ;;  %v2239_v5 = vpop.permute.xlu0 %2238 }
 0x1e3   : > { %v2116_v7 = vrot.slane %v2112_v44, 1  ;;  %vm2290_vm10 = vcmask 769024   ;;  %v2109_v51 = vmul.f32 %v2107_v50, %v2103_v49  ;;  %v2117_v61 = vrot.slane %v2113_v19, 1 }
 0x1e4   : > { %v2160_v52 = vmul.f32 %v2159_v37, %v2147_v4  ;;  %v2161_v63 = vmul.f32 %v2159_v37, %v2151_v6  ;;  %v2039_v20 = vrot.slane %v2032_v35, %v3305_v26  ;;  %v2083_v50 = vrot.slane %v2076_v60, %v3305_v26  ;;  %v2193_v37 = vpop.permute.xlu1 %2192 }
 0x1e5   : > { %v2120_v9 = vadd.f32 %v2116_v7, %v2108_v62  ;;  %v2156_v33 = vmul.f32 %v2155_v38, %v2147_v4  ;;  %vm5314_vm1 = vcmp.ge.s32.totalorder %v3298_v25, 3  ;;  %v2121_v8 = vadd.f32 %v2117_v61, %v2109_v51 }
 0x1e6   : > { %vm4706_vm0 = vmand %vm4676_vm5, %vm5314_vm1  ;;  %v2157_v56 = vmul.f32 %v2155_v38, %v2151_v6  ;;  %v2164_v59 = vrot.slane %v2160_v52, 1  ;;  %v2165_v48 = vrot.slane %v2161_v63, 1  ;;  %v1946_v40 = vadd.f32 %v1945_v2, %v1898_v16  ;;  %v2287_v62 = vpop.permute.xlu0 %2286 }
 0x1e7   : > { %v2195_v43 = vsel %vm2194_vm15, %v2191_v29, %v2193_v37  ;;  %v2199_v27 = vsel %vm2194_vm15, %v2193_v37, %v2191_v29  ;;  %vm2338_vm7 = vcmask 760832   ;;  %v2398_v36 = vstv %s4643_s18 }
 0x1e8   : > { %v2090_v11 = vrot.slane %v2083_v50, %v3305_v26  ;;  %v2124_v53 = vcombine.low %v2120_v9, %v2121_v8  ;;  %v2168_v18 = vadd.f32 %v2164_v59, %v2156_v33  ;;  %v2169_v49 = vadd.f32 %v2165_v48, %v2157_v56  ;;  %v2241_v16 = vpop.permute.xlu1 %2240 }
 0x1e9   : > { %v1994_v38 = vadd.f32 %v1993_v31, %v1946_v40  ;;  %v2041_v57 = vsel %vm4694_vm8, %v2039_v20, 0.0  ;;  %vm5317_vm15 = vcmp.lt.s32.totalorder %v3298_v25, 19  ;;  %v2208_v45 = vmul.f32 %v2207_v54, %v2195_v43 }
 0x1ea   : > { %vm2057_vm2 = vmand %vm4706_vm0, %vm5317_vm15  ;;  %v2209_v34 = vmul.f32 %v2207_v54, %v2199_v27  ;;  %v2131_v2 = vrot.slane %v2124_v53, %v3305_v26  ;;  %v2172_v30 = vcombine.low %v2168_v18, %v2169_v49  ;;  %v2204_v44 = vmul.f32 %v2203_v41, %v2195_v43  ;;  %v2335_v8 = vpop.permute.xlu0 %2334 }
 0x1eb   : > { %v2243_v46 = vsel %vm2242_vm12, %v2239_v5, %v2241_v16  ;;  %vm5318_vm13 = vcmp.ge.s32.totalorder %v3298_v25, 2  ;;  %v2205_v54 = vmul.f32 %v2203_v41, %v2199_v27  ;;  %v2212_v35 = vrot.slane %v2208_v45, 1 }
 0x1ec   : > { %vm4738_vm4 = vmand %vm4676_vm5, %vm5318_vm13  ;;  %v2213_v19 = vrot.slane %v2209_v34, 1  ;;  %v2247_v4 = vsel %vm2242_vm12, %v2241_v16, %v2239_v5  ;;  %v2042_v6 = vadd.f32 %v2041_v57, %v1994_v38  ;;  %v2092_v31 = vsel %vm2057_vm2, %v2090_v11, 0.0  ;;  %v2289_v63 = vpop.permute.xlu1 %2288 }
 0x1ed   : > { %v2256_v60 = vmul.f32 %v2255_v58, %v2243_v46  ;;  %vm2389_vm8 = vcmask 678912   ;;  %v2402_v7 = vstv %s4688_s12  ;;  %v2138_v51 = vrot.slane %v2131_v2, %v3305_v26 }
 0x1ee   : > { %v2216_v61 = vadd.f32 %v2212_v35, %v2204_v44  ;;  %v2217_v52 = vadd.f32 %v2213_v19, %v2205_v54  ;;  %v2257_v41 = vmul.f32 %v2255_v58, %v2247_v4  ;;  %vm5321_vm12 = vcmp.lt.s32.totalorder %v3298_v25, 18  ;;  %v2386_v44 = vpop.permute.xlu0 %2385 }
 0x1ef   : > { %vm2105_vm1 = vmand %vm4738_vm4, %vm5321_vm12  ;;  %v2179_v29 = vrot.slane %v2172_v30, %v3305_v26  ;;  %v2252_v3 = vmul.f32 %v2251_v1, %v2243_v46  ;;  %v2260_v20 = vrot.slane %v2256_v60, 1  ;;  %v2291_v58 = vsel %vm2290_vm10, %v2287_v62, %v2289_v63 }
 0x1f0   : > { %v2220_v50 = vcombine.low %v2216_v61, %v2217_v52  ;;  %v2253_v9 = vmul.f32 %v2251_v1, %v2247_v4  ;;  %v2261_v33 = vrot.slane %v2257_v41, 1  ;;  %v2295_v37 = vsel %vm2290_vm10, %v2289_v63, %v2287_v62  ;;  %v2337_v11 = vpop.permute.xlu1 %2336 }
 0x1f1   : > { %v2264_v39 = vadd.f32 %v2260_v20, %v2252_v3  ;;  %vm2437_vm0 = vcmask 670720   ;;  %v2446_v56 = vstv %s4716_s22  ;;  %v2450_v59 = vstv %s4718_s29 }
 0x1f2   : > { %v2093_v48 = vadd.f32 %v2092_v31, %v2042_v6  ;;  %v2140_v40 = vsel %vm2105_vm1, %v2138_v51, 0.0  ;;  %v2265_v43 = vadd.f32 %v2261_v33, %v2253_v9  ;;  %v2304_v27 = vmul.f32 %v2303_v55, %v2291_v58  ;;  %v2434_v20 = vpop.permute.xlu0 %2433 }
 0x1f3   : > { %vm5322_vm15 = vcmp.ge.s32.totalorder %v3298_v25, 1  ;;  %v2186_v53 = vrot.slane %v2179_v29, %v3305_v26  ;;  %v2305_v18 = vmul.f32 %v2303_v55, %v2295_v37  ;;  %v2339_v49 = vsel %vm2338_vm7, %v2335_v8, %v2337_v11 }
 0x1f4   : > { %vm4778_vm10 = vmand %vm4676_vm5, %vm5322_vm15  ;;  %v2343_v5 = vsel %vm2338_vm7, %v2337_v11, %v2335_v8  ;;  %v2227_v38 = vrot.slane %v2220_v50, %v3305_v26  ;;  %v2300_v57 = vmul.f32 %v2299_v32, %v2291_v58  ;;  %v2301_v45 = vmul.f32 %v2299_v32, %v2295_v37  ;;  %v2388_v28 = vpop.permute.xlu1 %2387 }
 0x1f5   : > { %v2308_v34 = vrot.slane %v2304_v27, 1  ;;  %vm2485_vm2 = vcmask 662528   ;;  %v2268_v55 = vcombine.low %v2264_v39, %v2265_v43  ;;  %v2309_v16 = vrot.slane %v2305_v18, 1 }
 0x1f6   : > { %v2352_v2 = vmul.f32 %v2351_v47, %v2339_v49  ;;  %v2353_v30 = vmul.f32 %v2351_v47, %v2343_v5  ;;  %vm5325_vm7 = vcmp.lt.s32.totalorder %v3298_v25, 17  ;;  %v2494_v54 = vstv %s4748_s10 }
 0x1f7   : > { %vm4804_vm13 = vmand %vm4778_vm10, %vm5325_vm7  ;;  %v2312_v32 = vadd.f32 %v2308_v34, %v2300_v57  ;;  %v2498_v35 = vstv %s4753_s27  ;;  %v2542_v19 = vstv %s4755_s1  ;;  %v2141_v4 = vadd.f32 %v2140_v40, %v2093_v48 }
 0x1f8   : > { %vm5328_vm4 = vcmp.ge.s32.totalorder %v3298_v25, 0  ;;  %v2313_v6 = vadd.f32 %v2309_v16, %v2301_v45  ;;  %v2356_v31 = vrot.slane %v2352_v2, 1  ;;  %v2357_v60 = vrot.slane %v2353_v30, 1  ;;  %v2436_v33 = vpop.permute.xlu1 %2435  ;;  %vm4849_vm10 = vmand %vm4676_vm5, %vm557_vm9 }
 0x1f9   : > { %vm4815_vm12 = vmand %vm4676_vm5, %vm5328_vm4  ;;  %v2348_v62 = vmul.f32 %v2347_v42, %v2339_v49  ;;  %v2349_v51 = vmul.f32 %v2347_v42, %v2343_v5  ;;  %v2390_v61 = vsel %vm2389_vm8, %v2386_v44, %v2388_v28  ;;  %v2394_v52 = vsel %vm2389_vm8, %v2388_v28, %v2386_v44  ;;  %v2482_v5 = vpop.permute.xlu0 %2481 }
 0x1fa   : > { %vm2533_vm1 = vcmask 654336   ;;  %v2188_v41 = vsel %vm4804_vm13, %v2186_v53, 0.0  ;;  %v2234_v63 = vrot.slane %v2227_v38, %v3305_v26  ;;  %v2275_v29 = vrot.slane %v2268_v55, %v3305_v26 }
 0x1fb   : > { %v2316_v3 = vcombine.low %v2312_v32, %v2313_v6  ;;  %vm5331_vm15 = vcmp.lt.s32.totalorder %v3298_v25, 16  ;;  %v2360_v42 = vadd.f32 %v2356_v31, %v2348_v62  ;;  %v2361_v58 = vadd.f32 %v2357_v60, %v2349_v51 }
 0x1fc   : > { %vm2201_vm8 = vmand %vm4815_vm12, %vm5331_vm15  ;;  %v2403_v50 = vmul.f32 %v2402_v7, %v2390_v61  ;;  %v2404_v9 = vmul.f32 %v2402_v7, %v2394_v52  ;;  %v2438_v37 = vsel %vm2437_vm0, %v2434_v20, %v2436_v33  ;;  %v2546_v39 = vstv %s4772_s30  ;;  %v2484_v55 = vpop.permute.xlu1 %2483 }
 0x1fd   : > { %v2590_v8 = vstv %s4787_s3  ;;  %v2594_v48 = vstv %s4789_s19  ;;  %v2189_v40 = vadd.f32 %v2188_v41, %v2141_v4  ;;  %v2442_v11 = vsel %vm2437_vm0, %v2436_v33, %v2434_v20  ;;  %vm2249_vm0 = vmand %vm4849_vm10, %vm559_vm14  ;;  %v2530_v4 = vpop.permute.xlu0 %2529 }
 0x1fe   : > { %v2407_v27 = vrot.slane %v2403_v50, 1  ;;  %v2408_v7 = vrot.slane %v2404_v9, 1  ;;  %v2236_v1 = vsel %vm2201_vm8, %v2234_v63, 0.0  ;;  %v2282_v53 = vrot.slane %v2275_v29, %v3305_v26 }
 0x1ff   : > { %vm2382_vm7 = vcmp.ge.s32.totalorder %v4369_v10, 4294967293  ;;  %vm2383_vm13 = vcmp.lt.s32.totalorder %v4369_v10, 13  ;;  %v2399_v18 = vmul.f32 %v2398_v36, %v2390_v61  ;;  %v2451_v49 = vmul.f32 %v2450_v59, %v2438_v37 }
 0x200   : > { %vm2581_vm4 = vcmask 646144   ;;  %v2323_v38 = vrot.slane %v2316_v3, %v3305_v26  ;;  %v2364_v57 = vcombine.low %v2360_v42, %v2361_v58  ;;  %v2400_v45 = vmul.f32 %v2398_v36, %v2394_v52  ;;  %v2532_v61 = vpop.permute.xlu1 %2531 }
 0x201   : > { %v2452_v34 = vmul.f32 %v2450_v59, %v2442_v11  ;;  %v2447_v16 = vmul.f32 %v2446_v56, %v2438_v37  ;;  %v2448_v2 = vmul.f32 %v2446_v56, %v2442_v11  ;;  %v2455_v30 = vrot.slane %v2451_v49, 1 }
 0x202   : > { %v2486_v44 = vsel %vm2485_vm2, %v2482_v5, %v2484_v55  ;;  %v2411_v46 = vadd.f32 %v2407_v27, %v2399_v18  ;;  %v2412_v32 = vadd.f32 %v2408_v7, %v2400_v45  ;;  %v2490_v59 = vsel %vm2485_vm2, %v2484_v55, %v2482_v5 }
 0x203   : > { %v2456_v36 = vrot.slane %v2452_v34, 1  ;;  %v2237_v28 = vadd.f32 %v2236_v1, %v2189_v40  ;;  %vm2629_vm12 = vcmask 637952   ;;  %v2638_v47 = vstv %s4829_s28  ;;  %v2578_v40 = vpop.permute.xlu0 %2577 }
 0x204   : > { %v2642_v6 = vstv %s4831_s17  ;;  %v2284_v31 = vsel %vm2249_vm0, %v2282_v53, 0.0  ;;  %vm5334_vm15 = vcmp.ge.s32.totalorder %v3298_v25, 4294967294  ;;  %v2459_v60 = vadd.f32 %v2455_v30, %v2447_v16  ;;  %v2580_v1 = vpop.permute.xlu1 %2579 }
 0x205   : > { %vm4882_vm8 = vmand %vm4676_vm5, %vm5334_vm15  ;;  %v2460_v62 = vadd.f32 %v2456_v36, %v2448_v2  ;;  %v2499_v51 = vmul.f32 %v2498_v35, %v2486_v44  ;;  %v2330_v52 = vrot.slane %v2323_v38, %v3305_v26  ;;  %v2500_v41 = vmul.f32 %v2498_v35, %v2490_v59 }
 0x206   : > { %v2534_v63 = vsel %vm2533_vm1, %v2530_v4, %v2532_v61  ;;  %v2538_v29 = vsel %vm2533_vm1, %v2532_v61, %v2530_v4  ;;  %v2371_v3 = vrot.slane %v2364_v57, %v3305_v26  ;;  %v2415_v20 = vcombine.low %v2411_v46, %v2412_v32  ;;  %vm4902_vm10 = vmand %vm4882_vm8, %vm609_vm11 }
 0x207   : > { %v2495_v42 = vmul.f32 %v2494_v54, %v2486_v44  ;;  %v2503_v58 = vrot.slane %v2499_v51, 1  ;;  %vm2677_vm2 = vcmask 629760   ;;  %v2496_v35 = vmul.f32 %v2494_v54, %v2490_v59  ;;  %vm4914_vm1 = vmand %vm4676_vm5, %vm657_vm3  ;;  %v2626_v2 = vpop.permute.xlu0 %2625 }
 0x208   : > { %v2504_v9 = vrot.slane %v2500_v41, 1  ;;  %v2547_v33 = vmul.f32 %v2546_v39, %v2534_v63  ;;  %v2548_v37 = vmul.f32 %v2546_v39, %v2538_v29  ;;  %v2285_v43 = vadd.f32 %v2284_v31, %v2237_v28  ;;  %vm4927_vm5 = vmand %vm2382_vm7, %vm2383_vm13  ;;  %v2628_v46 = vpop.permute.xlu1 %2627 }
 0x209   : > { %v2463_v27 = vcombine.low %v2459_v60, %v2460_v62  ;;  %v2507_v7 = vadd.f32 %v2503_v58, %v2495_v42  ;;  %v2543_v11 = vmul.f32 %v2542_v19, %v2534_v63  ;;  %v2544_v54 = vmul.f32 %v2542_v19, %v2538_v29  ;;  %vm2345_vm7 = vmand %vm4914_vm1, %vm659_vm6 }
 0x20a   : > { %v2508_v18 = vadd.f32 %v2504_v9, %v2496_v35  ;;  %v2551_v39 = vrot.slane %v2547_v33, 1  ;;  %v2552_v49 = vrot.slane %v2548_v37, 1  ;;  %v2332_v5 = vsel %vm4902_vm10, %v2330_v52, 0.0 }
 0x20b   : > { %v2378_v38 = vrot.slane %v2371_v3, %v3305_v26  ;;  %v2582_v19 = vsel %vm2581_vm4, %v2578_v40, %v2580_v1  ;;  %v2586_v57 = vsel %vm2581_vm4, %v2580_v1, %v2578_v40  ;;  %v2422_v45 = vrot.slane %v2415_v20, %v3305_v26  ;;  %v2674_v41 = vpop.permute.xlu0 %2673 }
 0x20c   : > { %v2511_v34 = vcombine.low %v2507_v7, %v2508_v18  ;;  %v2555_v55 = vadd.f32 %v2551_v39, %v2543_v11  ;;  %v2556_v16 = vadd.f32 %v2552_v49, %v2544_v54  ;;  %v2470_v10 = vrot.slane %v2463_v27, %v3305_v26  ;;  %v2676_v58 = vpop.permute.xlu1 %2675 }
 0x20d   : > { %v2595_v30 = vmul.f32 %v2594_v48, %v2582_v19  ;;  %v2596_v44 = vmul.f32 %v2594_v48, %v2586_v57  ;;  %v2690_v32 = vstv %s4888_s14  ;;  %v2333_v36 = vadd.f32 %v2332_v5, %v2285_v43 }
 0x20e   : > { %vm5343_vm13 = vcmp.ge.s32.totalorder %v3298_v25, 3  ;;  %v2559_v59 = vcombine.low %v2555_v55, %v2556_v16  ;;  %v2591_v28 = vmul.f32 %v2590_v8, %v2582_v19  ;;  %v2630_v4 = vsel %vm2629_vm12, %v2626_v2, %v2628_v46 }
 0x20f   : > { %vm2395_vm4 = vmand %vm4927_vm5, %vm5343_vm13  ;;  %v2592_v31 = vmul.f32 %v2590_v8, %v2586_v57  ;;  %v2599_v56 = vrot.slane %v2595_v30, 1  ;;  %v2600_v60 = vrot.slane %v2596_v44, 1  ;;  %v2634_v48 = vsel %vm2629_vm12, %v2628_v46, %v2626_v2 }
 0x210   : > { %v2380_v62 = vsel %vm2345_vm7, %v2378_v38, 0.0  ;;  %v2429_v51 = vrot.slane %v2422_v45, %v3305_v26  ;;  %vm5344_vm0 = vcmp.ge.s32.totalorder %v3298_v25, 2  ;;  %v2518_v52 = vrot.slane %v2511_v34, %v3305_v26 }
 0x211   : > { %vm4961_vm15 = vmand %vm4927_vm5, %vm5344_vm0  ;;  %v2643_v8 = vmul.f32 %v2642_v6, %v2630_v4  ;;  %vm5347_vm8 = vcmp.lt.s32.totalorder %v3298_v25, 19  ;;  %v2477_v29 = vrot.slane %v2470_v10, %v3305_v26  ;;  %v2603_v3 = vadd.f32 %v2599_v56, %v2591_v28 }
 0x212   : > { %vm4970_vm12 = vmand %vm2395_vm4, %vm5347_vm8  ;;  %v2604_v20 = vadd.f32 %v2600_v60, %v2592_v31  ;;  %v2644_v42 = vmul.f32 %v2642_v6, %v2634_v48  ;;  %vm5350_vm10 = vcmp.ge.s32.totalorder %v3298_v25, 1  ;;  %v2566_v35 = vrot.slane %v2559_v59, %v3305_v26 }
 0x213   : > { %vm4981_vm1 = vmand %vm4927_vm5, %vm5350_vm10  ;;  %v2639_v9 = vmul.f32 %v2638_v47, %v2630_v4  ;;  %v2647_v33 = vrot.slane %v2643_v8, 1  ;;  %v2678_v37 = vsel %vm2677_vm2, %v2674_v41, %v2676_v58  ;;  %vm5353_vm7 = vcmp.lt.s32.totalorder %v3298_v25, 18 }
 0x214   : > { %vm2444_vm13 = vmand %vm4961_vm15, %vm5353_vm7  ;;  %v2607_v6 = vcombine.low %v2603_v3, %v2604_v20  ;;  %v2640_v40 = vmul.f32 %v2638_v47, %v2634_v48  ;;  %v2648_v43 = vrot.slane %v2644_v42, 1  ;;  %v2682_v27 = vsel %vm2677_vm2, %v2676_v58, %v2674_v41 }
 0x215   : > { %v2431_v7 = vsel %vm4970_vm12, %v2429_v51, 0.0  ;;  %v2525_v11 = vrot.slane %v2518_v52, %v3305_v26  ;;  %vm5354_vm4 = vcmp.ge.s32.totalorder %v3298_v25, 0  ;;  %v2651_v1 = vadd.f32 %v2647_v33, %v2639_v9  ;;  %vm2587_vm2 = vmand %vm4927_vm5, %vm557_vm9 }
 0x216   : > { %vm2539_vm0 = vmand %vm4927_vm5, %vm5354_vm4  ;;  %v2686_v53 = vstv %s4934_s21  ;;  %v2381_v18 = vadd.f32 %v2380_v62, %v2333_v36  ;;  %vm5355_vm15 = vcmp.lt.s32.totalorder %v3298_v25, 17  ;;  %v2614_v47 = vrot.slane %v2607_v6, %v3305_v26 }
 0x217   : > { %vm2492_vm8 = vmand %vm4981_vm1, %vm5355_vm15  ;;  %v2652_v54 = vadd.f32 %v2648_v43, %v2640_v40  ;;  %v2691_v39 = vmul.f32 %v2690_v32, %v2678_v37  ;;  %v2479_v49 = vsel %vm2444_vm13, %v2477_v29, 0.0  ;;  %v2573_v5 = vrot.slane %v2566_v35, %v3305_v26 }
 0x218   : > { %v2692_v38 = vmul.f32 %v2690_v32, %v2682_v27  ;;  %v2432_v19 = vadd.f32 %v2431_v7, %v2381_v18  ;;  %vm5356_vm12 = vcmp.lt.s32.totalorder %v3298_v25, 16  ;;  %v2687_v45 = vmul.f32 %v2686_v53, %v2678_v37  ;;  %vm2588_vm9 = vmand %vm2587_vm2, %vm559_vm14 }
 0x219   : > { %vm2540_vm10 = vmand %vm2539_vm0, %vm5356_vm12  ;;  %v2655_v57 = vcombine.low %v2651_v1, %v2652_v54  ;;  %v2695_v34 = vrot.slane %v2691_v39, 1  ;;  %v2527_v55 = vsel %vm2492_vm8, %v2525_v11, 0.0  ;;  %v2621_v16 = vrot.slane %v2614_v47, %v3305_v26 }
 0x21a   : > { %vm5357_vm1 = vcmp.ge.s32.totalorder %v3298_v25, 4294967294  ;;  %v2688_v2 = vmul.f32 %v2686_v53, %v2682_v27  ;;  %v2696_v10 = vrot.slane %v2692_v38, 1  ;;  %v2480_v30 = vadd.f32 %v2479_v49, %v2432_v19  ;;  %vm2683_vm4 = vmand %vm4927_vm5, %vm657_vm3 }
 0x21b   : > { %vm2635_vm7 = vmand %vm4927_vm5, %vm5357_vm1  ;;  %v2662_v44 = vrot.slane %v2655_v57, %v3305_v26  ;;  %v2699_v46 = vadd.f32 %v2695_v34, %v2687_v45  ;;  %v2575_v32 = vsel %vm2540_vm10, %v2573_v5, 0.0  ;;  %v2623_v4 = vsel %vm2588_vm9, %v2621_v16, 0.0 }
 0x21c   : > { %v2700_v36 = vadd.f32 %v2696_v10, %v2688_v2  ;;  %v2528_v59 = vadd.f32 %v2527_v55, %v2480_v30  ;;  %vm2636_vm13 = vmand %vm2635_vm7, %vm609_vm11  ;;  %v2730_v3 = vsub.s32 0, %v3274_v17  ;;  %v2734_v20 = vsub.s32 1, %v3274_v17 }
 0x21d   : > { %v2669_v28 = vrot.slane %v2662_v44, %v3305_v26  ;;  %vm2684_vm14 = vmand %vm2683_vm4, %vm659_vm6 }
 0x21e   : > { %v2703_v31 = vcombine.low %v2699_v46, %v2700_v36  ;;  %v2576_v56 = vadd.f32 %v2575_v32, %v2528_v59 }
 0x21f   : > { %v2671_v60 = vsel %vm2636_vm13, %v2669_v28, 0.0 }
 0x220   : > { %v2710_v48 = vrot.slane %v2703_v31, %v3305_v26  ;;  %v2624_v62 = vadd.f32 %v2623_v4, %v2576_v56 }
 0x222   : > { %v2717_v51 = vrot.slane %v2710_v48, %v3305_v26  ;;  %v2672_v61 = vadd.f32 %v2671_v60, %v2624_v62 }
 0x224   : > { %v2719_v52 = vsel %vm2684_vm14, %v2717_v51, 0.0 }
 0x225   : > { %v2720_v8 = vadd.f32 %v2719_v52, %v2672_v61 }
 0x227   : > { %v2721_v41 = vsub.f32 0.0, %v2720_v8 }
 0x229   : > { %v2722_v63 = vmul.f32 1.442695, %v2721_v41 }
 0x22b   : > { %3019 = vpow2.f32 %v2722_v63 }
 0x235   : > { %v3020_v0 = vpop.eup %3019 }
 0x236   : > { %v2724_v29 = vadd.f32 1.0, %v3020_v0 }
 0x238   : > { %3021 = vrcp.f32 %v2724_v29 }
 0x242   : > { %v3022_v42 = vpop.eup %3021 }
 0x243   : > { %v2731_v58 = vrot.slane %v3022_v42, %v2730_v3  ;;  %v2735_v25 = vrot.slane %v3022_v42, %v2734_v20 }
 0x245   : > { %v2738_v26 = vmul.f32 %v2731_v58, %v3170_v14  ;;  %v2739_v50 = vmul.f32 %v2735_v25, %v3172_v15  ;;  %v2740_v35 = vmul.f32 %v2731_v58, %v3178_v23  ;;  %v2741_v9 = vmul.f32 %v2735_v25, %v3180_v24 }
 0x246   : > { %v2742_v33 = vmul.f32 %v2731_v58, %v3166_v12  ;;  %v2743_v17 = vmul.f32 %v2735_v25, %v3168_v13  ;;  %v2744_v37 = vmul.f32 %v2731_v58, %v3174_v21  ;;  %v2745_v6 = vmul.f32 %v2735_v25, %v3176_v22 }
 0x247   : > { %2746 = vst [vmem:[%s258_s7] sm:$0xff] %v2738_v26  ;;  %2747 = vst [vmem:[%s258_s7 + $0x8] sm:$0xff] %v2739_v50 }
 0x248   : > { %2748 = vst [vmem:[%s258_s7 + $0x10] sm:$0xff] %v2740_v35  ;;  %2749 = vst [vmem:[%s258_s7 + $0x18] sm:$0xff] %v2741_v9 }
 0x249   : > { %2750 = vst [vmem:[%s258_s7 + $0x20] sm:$0xff] %v2742_v33  ;;  %2751 = vst [vmem:[%s258_s7 + $0x28] sm:$0xff] %v2743_v17 }
 0x24a   : > { %2752 = vst [vmem:[%s258_s7 + $0x30] sm:$0xff] %v2744_v37  ;;  %2753 = vst [vmem:[%s258_s7 + $0x38] sm:$0xff] %v2745_v6 }
 0x24b PF: > { %s5361_s16 = sld [smem:[#allocation5_spill]] }
 0x251   : > { %s16_s18 = sadd.s32 1, %s5361_s16  }
 0x252   : > { %p13_p1 = scmp.ge.s32.totalorder %s16_s18, 4  }
 0x254   :  { %15 = sbr.rel (!%p13_p1) target bundleno = 8 (0x8), region = 78 }
 0x25b   :  { %2775 = vsyncpa [#allocation3], 1 }
 0x25c   :  { %2777 = vsyncpa [#allocation3 + $0x1], 1 }

</bundles_post_ra>
